<compile_context>
chip_gen: v5e
topology: v5e:2x2
jax: 0.10.0
libtpu: 0.0.40
codegen_flags: <defaults>
</compile_context>

<pallas_src>
import math
from functools import partial

import jax
import jax.numpy as jnp
from jax import lax
from jax.experimental import pallas as pl
from jax.experimental.pallas import tpu as pltpu

WINDOW_SIZE = 4      # attentions.Encoder default relative-attention window
LN_EPS = 1e-5
NEG_MASK = -1e4      # masked_fill value used by the reference attention
NEG_PAD = -1e30      # bias for lane-padding output classes (excluded from softmax)
N_OUT = 62
N_OUT_PAD = 128      # lane-dense (unmasked vst) output width


# ---------------------------------------------------------------------------
# Fused kernel (one grid step == one batch element):
#   2 x (rel-pos MHA -> +res -> LN -> conv-FFN -> +res -> LN),
#   then mask, Linear(H, 62 padded to 128), log_softmax.
# ---------------------------------------------------------------------------
def _encoder_head_kernel(T, nH, dk, K, L,
                         x_ref, mcol_ref, mrow_ref,
                         wq_ref, bq_ref, wk_ref, bk_ref, wv_ref, bv_ref,
                         wo_ref, bo_ref, ek_ref, ev_ref,
                         ln1g_ref, ln1b_ref, w1_ref, b1_ref, w2_ref, b2_ref,
                         ln2g_ref, ln2b_ref, hw_ref, hb_ref, o_ref):
    f32 = jnp.float32
    bf16 = jnp.bfloat16
    nrel = 2 * WINDOW_SIZE + 1
    pad_l = (K - 1) // 2
    inv = 1.0 / math.sqrt(dk)

    mcol = mcol_ref[0]                                   # [T, 1] sequence mask
    mrow = mrow_ref[0]                                   # [1, T]
    amask = (mcol * mrow)[None] > 0.0                    # [1, T, T] attention mask
    h = x_ref[0] * mcol                                  # Encoder pre-mask: x * x_mask

    # Relative-position band indicators [1, T, T], built once, reused by layers.
    ii = lax.broadcasted_iota(jnp.int32, (T, T), 0)
    jj = lax.broadcasted_iota(jnp.int32, (T, T), 1)
    diff = jj - ii                                        # relative position j - i
    sel = [(diff == (r - WINDOW_SIZE)).astype(f32)[None] for r in range(nrel)]

    def layer_norm(s, g, b):
        mu = jnp.mean(s, axis=-1, keepdims=True)
        c = s - mu
        var = jnp.mean(c * c, axis=-1, keepdims=True)
        return c * lax.rsqrt(var + LN_EPS) * g + b

    def shift_rows(z, d):
        # zz[i] = z[i + d], zero where i + d is outside [0, T-1] ('same' padding).
        if d == 0:
            return z
        zeros = jnp.zeros((abs(d), z.shape[1]), z.dtype)
        if d > 0:
            return jnp.concatenate([z[d:, :], zeros], axis=0)
        return jnp.concatenate([zeros, z[:d, :]], axis=0)

    def conv1d_same(z, w_flat, bias):
        # z: [T, C_in] -> K sublane-shifted copies concatenated along lanes,
        # then ONE matmul with contraction K*C_in.
        taps = [shift_rows(z, kk - pad_l) for kk in range(K)]
        zc = jnp.concatenate(taps, axis=1).astype(bf16)   # [T, K*C_in]
        return jnp.dot(zc, w_flat, preferred_element_type=f32) + bias

    def split_heads(z):                                   # [T, H] -> [nH, T, dk]
        return jnp.stack([z[:, hh * dk:(hh + 1) * dk] for hh in range(nH)], axis=0)

    def merge_heads(z):                                   # [nH, T, dk] -> [T, H]
        return jnp.concatenate([z[hh] for hh in range(nH)], axis=1)

    for l in range(L):
        # ---- multi-head attention with relative positions (window = 4) ------
        h16 = h.astype(bf16)
        q = jnp.dot(h16, wq_ref[l], preferred_element_type=f32) + bq_ref[l]
        k = jnp.dot(h16, wk_ref[l], preferred_element_type=f32) + bk_ref[l]
        v = jnp.dot(h16, wv_ref[l], preferred_element_type=f32) + bv_ref[l]

        qh = split_heads(q * inv).astype(bf16)            # fold 1/sqrt(dk) once
        kh = split_heads(k).astype(bf16)
        vh = split_heads(v).astype(bf16)

        # scores over all heads at once
        scores = jnp.einsum('hqd,hkd->hqk', qh, kh, preferred_element_type=f32)
        rel_logits = jnp.einsum('hqd,rd->hqr', qh, ek_ref[l],
                                preferred_element_type=f32)      # [nH, T, nrel]
        for r in range(nrel):                             # scatter band logits
            scores = scores + rel_logits[:, :, r:r + 1] * sel[r]

        # masked_fill(-1e4) + softmax (denominator on the EUP)
        scores = jnp.where(amask, scores, jnp.float32(NEG_MASK))
        smax = jnp.max(scores, axis=-1, keepdims=True)
        e = jnp.exp(scores - smax)
        p = e * pl.reciprocal(jnp.sum(e, axis=-1, keepdims=True), approx=True)

        out = jnp.einsum('hqk,hkd->hqd', p.astype(bf16), vh,
                         preferred_element_type=f32)              # [nH, T, dk]
        # relative-value gather: band weights -> ONE [nrel]-contraction matmul
        w_all = jnp.concatenate(
            [jnp.sum(p * sel[r], axis=-1, keepdims=True) for r in range(nrel)],
            axis=-1)                                              # [nH, T, nrel]
        out = out + jnp.einsum('hqr,rd->hqd', w_all.astype(bf16), ev_ref[l],
                               preferred_element_type=f32)

        # heads merged onto contiguous lanes -> single output projection over H
        y = merge_heads(out).astype(bf16)                         # [T, H]
        y = jnp.dot(y, wo_ref[l], preferred_element_type=f32) + bo_ref[l]
        h = layer_norm(h + y, ln1g_ref[l], ln1b_ref[l])

        # ---- FFN: conv1d(K, same) -> relu -> conv1d(K, same), masked --------
        ff = conv1d_same(h * mcol, w1_ref[l], b1_ref[l])
        ff = jnp.maximum(ff, 0.0) * mcol
        y = conv1d_same(ff, w2_ref[l], b2_ref[l]) * mcol
        h = layer_norm(h + y, ln2g_ref[l], ln2b_ref[l])

    # ---- head: final mask, Linear(H -> 62 padded to 128 lanes), log_softmax -
    hm = (h * mcol).astype(bf16)
    logits = jnp.dot(hm, hw_ref[...], preferred_element_type=f32) + hb_ref[...]
    mx = jnp.max(logits, axis=-1, keepdims=True)
    z = logits - mx
    lse = jnp.log(jnp.sum(jnp.exp(z), axis=-1, keepdims=True))
    o_ref[0] = z - lse


# ---------------------------------------------------------------------------
# Parameters (deterministic, synthetic, stacked over the 2 encoder layers)
# ---------------------------------------------------------------------------
def init_params(key, hidden, filt, n_heads, kernel_size, n_layers=2, n_out=N_OUT):
    dk = hidden // n_heads
    nrel = 2 * WINDOW_SIZE + 1
    keys = jax.random.split(key, 32)
    it = iter(keys)

    def nrm(shape, scale):
        return jax.random.normal(next(it), shape, jnp.float32) * scale

    L, H, Fc, K = n_layers, hidden, filt, kernel_size
    return dict(
        wq_t=nrm((L, H, H), H ** -0.5),
        bq=nrm((L, 1, H), 0.02),
        wk_t=nrm((L, H, H), H ** -0.5),
        bk=nrm((L, 1, H), 0.02),
        wv_t=nrm((L, H, H), H ** -0.5),
        bv=nrm((L, 1, H), 0.02),
        wo_t=nrm((L, H, H), H ** -0.5),
        bo=nrm((L, 1, H), 0.02),
        emb_rel_k=nrm((L, nrel, dk), dk ** -0.5),
        emb_rel_v=nrm((L, nrel, dk), dk ** -0.5),
        ln1_g=jnp.ones((L, 1, H), jnp.float32),
        ln1_b=jnp.zeros((L, 1, H), jnp.float32),
        # conv weights stored as [L, K, C_in, C_out]; flattened to [L, K*C_in, C_out]
        # in the wrapper for the single wide-contraction matmul.
        w1=nrm((L, K, H, Fc), (H * K) ** -0.5),
        b1=nrm((L, 1, Fc), 0.02),
        w2=nrm((L, K, Fc, H), (Fc * K) ** -0.5),
        b2=nrm((L, 1, H), 0.02),
        ln2_g=jnp.ones((L, 1, H), jnp.float32),
        ln2_b=jnp.zeros((L, 1, H), jnp.float32),
        head_w=nrm((H, n_out), H ** -0.5),
        head_b=nrm((1, n_out), 0.02),
    )


# ---------------------------------------------------------------------------
# Forward glue: NCT -> channel-last [B, T, H], one pallas_call over a batch grid,
# output [T, B, 62] (matching x1.transpose(0, 1)).
# ---------------------------------------------------------------------------
def phonemes_predictor_forward(x, x_mask, params, *, n_heads, kernel_size):
    """x: [B, hidden, T] (PyTorch NCT), x_mask: [B, 1, T]. Returns [T, B, 62]."""
    B, H, T = x.shape
    L = params["wq_t"].shape[0]
    dk = H // n_heads
    K = kernel_size
    Fc = params["w1"].shape[-1]
    n_out = params["head_w"].shape[1]
    bf16 = jnp.bfloat16

    x_cl = jnp.transpose(x, (0, 2, 1)).astype(jnp.float32)     # [B, T, H]
    m = x_mask.astype(jnp.float32)[:, 0, :]                    # [B, T]
    mcol = m[:, :, None]                                       # [B, T, 1]
    mrow = m[:, None, :]                                       # [B, 1, T]

    pad_w = N_OUT_PAD - n_out
    hw = jnp.pad(params["head_w"], ((0, 0), (0, pad_w))).astype(bf16)
    hb = jnp.pad(params["head_b"], ((0, 0), (0, pad_w)), constant_values=NEG_PAD)

    w1 = params["w1"].reshape(L, K * H, Fc).astype(bf16)       # [L, K*H, Fc]
    w2 = params["w2"].reshape(L, K * Fc, H).astype(bf16)       # [L, K*Fc, H]

    inputs = (
        x_cl, mcol, mrow,
        params["wq_t"].astype(bf16), params["bq"],
        params["wk_t"].astype(bf16), params["bk"],
        params["wv_t"].astype(bf16), params["bv"],
        params["wo_t"].astype(bf16), params["bo"],
        params["emb_rel_k"].astype(bf16), params["emb_rel_v"].astype(bf16),
        params["ln1_g"], params["ln1_b"],
        w1, params["b1"], w2, params["b2"],
        params["ln2_g"], params["ln2_b"],
        hw, hb,
    )

    def per_batch(a):
        zeros = (0,) * (a.ndim - 1)
        return pl.BlockSpec((1,) + a.shape[1:], lambda b: (b,) + zeros)

    def resident(a):
        zeros = (0,) * a.ndim
        return pl.BlockSpec(a.shape, lambda b: zeros)          # stays in VMEM

    in_specs = [per_batch(x_cl), per_batch(mcol), per_batch(mrow)]
    in_specs += [resident(a) for a in inputs[3:]]

    kernel = partial(_encoder_head_kernel, T, n_heads, dk, K, L)
    out = pl.pallas_call(
        kernel,
        out_shape=jax.ShapeDtypeStruct((B, T, N_OUT_PAD), jnp.float32),
        grid=(B,),
        in_specs=in_specs,
        out_specs=pl.BlockSpec((1, T, N_OUT_PAD), lambda b: (b, 0, 0)),
        compiler_params=pltpu.CompilerParams(
            dimension_semantics=("parallel",),
            vmem_limit_bytes=32 * 1024 * 1024),
    )(*inputs)

    out = out[:, :, :n_out]                                    # drop lane-padding classes
    return jnp.transpose(out, (1, 0, 2))                       # [T, B, 62]


if __name__ == "__main__":
    # module hyper-params (n_layers in the Encoder is hard-coded to 2)
    n_vocab, out_channels = 40, 192
    hidden, filt, n_heads, kernel_size, p_dropout = 32, 64, 2, 3, 0.1
    B, T = 2, 16

    key = jax.random.PRNGKey(0)
    kx, kp = jax.random.split(key)
    params = init_params(kp, hidden, filt, n_heads, kernel_size)

    x = jax.random.normal(kx, (B, hidden, T), jnp.float32)
    lengths = jnp.array([T, 12], jnp.int32)
    x_mask = (jnp.arange(T)[None, None, :] < lengths[:, None, None]).astype(jnp.float32)

    fwd = jax.jit(partial(phonemes_predictor_forward,
                          n_heads=n_heads, kernel_size=kernel_size))
    out = fwd(x, x_mask, params)
    out = jax.block_until_ready(out)
    assert out.shape == (T, B, 62), out.shape
    assert bool(jnp.isfinite(out).all())
    print("KERNEL_OK")
</pallas_src>

<mosaic_0001>
module attributes {stable_mosaic.version = 11 : i64} {
  func.func @_encoder_head_kernel(%arg0: i32, %arg1: memref<1x16x32xf32, #tpu.memory_space<vmem>>, %arg2: memref<1x16x1xf32, #tpu.memory_space<vmem>>, %arg3: memref<1x1x16xf32, #tpu.memory_space<vmem>>, %arg4: memref<2x32x32xbf16, #tpu.memory_space<vmem>>, %arg5: memref<2x1x32xf32, #tpu.memory_space<vmem>>, %arg6: memref<2x32x32xbf16, #tpu.memory_space<vmem>>, %arg7: memref<2x1x32xf32, #tpu.memory_space<vmem>>, %arg8: memref<2x32x32xbf16, #tpu.memory_space<vmem>>, %arg9: memref<2x1x32xf32, #tpu.memory_space<vmem>>, %arg10: memref<2x32x32xbf16, #tpu.memory_space<vmem>>, %arg11: memref<2x1x32xf32, #tpu.memory_space<vmem>>, %arg12: memref<2x9x16xbf16, #tpu.memory_space<vmem>>, %arg13: memref<2x9x16xbf16, #tpu.memory_space<vmem>>, %arg14: memref<2x1x32xf32, #tpu.memory_space<vmem>>, %arg15: memref<2x1x32xf32, #tpu.memory_space<vmem>>, %arg16: memref<2x96x64xbf16, #tpu.memory_space<vmem>>, %arg17: memref<2x1x64xf32, #tpu.memory_space<vmem>>, %arg18: memref<2x192x32xbf16, #tpu.memory_space<vmem>>, %arg19: memref<2x1x32xf32, #tpu.memory_space<vmem>>, %arg20: memref<2x1x32xf32, #tpu.memory_space<vmem>>, %arg21: memref<2x1x32xf32, #tpu.memory_space<vmem>>, %arg22: memref<32x128xbf16, #tpu.memory_space<vmem>>, %arg23: memref<1x128xf32, #tpu.memory_space<vmem>>, %arg24: memref<1x16x128xf32, #tpu.memory_space<vmem>>) attributes {dimension_semantics = [#tpu.dimension_semantics<parallel>], iteration_bounds = array<i64: 2>, scalar_prefetch = 0 : i64, scratch_operands = 0 : i64, tpu.core_type = #tpu.core_type<tc>, window_params = [{transform_indices = @transform_0, window_bounds = array<i64: 1, 16, 32>}, {transform_indices = @transform_1, window_bounds = array<i64: 1, 16, 1>}, {transform_indices = @transform_2, window_bounds = array<i64: 1, 1, 16>}, {pipeline_mode = #tpu.pipeline_mode<synchronous>, transform_indices = @transform_3, window_bounds = array<i64: 2, 32, 32>}, {pipeline_mode = #tpu.pipeline_mode<synchronous>, transform_indices = @transform_4, window_bounds = array<i64: 2, 1, 32>}, {pipeline_mode = #tpu.pipeline_mode<synchronous>, transform_indices = @transform_5, window_bounds = array<i64: 2, 32, 32>}, {pipeline_mode = #tpu.pipeline_mode<synchronous>, transform_indices = @transform_6, window_bounds = array<i64: 2, 1, 32>}, {pipeline_mode = #tpu.pipeline_mode<synchronous>, transform_indices = @transform_7, window_bounds = array<i64: 2, 32, 32>}, {pipeline_mode = #tpu.pipeline_mode<synchronous>, transform_indices = @transform_8, window_bounds = array<i64: 2, 1, 32>}, {pipeline_mode = #tpu.pipeline_mode<synchronous>, transform_indices = @transform_9, window_bounds = array<i64: 2, 32, 32>}, {pipeline_mode = #tpu.pipeline_mode<synchronous>, transform_indices = @transform_10, window_bounds = array<i64: 2, 1, 32>}, {pipeline_mode = #tpu.pipeline_mode<synchronous>, transform_indices = @transform_11, window_bounds = array<i64: 2, 9, 16>}, {pipeline_mode = #tpu.pipeline_mode<synchronous>, transform_indices = @transform_12, window_bounds = array<i64: 2, 9, 16>}, {pipeline_mode = #tpu.pipeline_mode<synchronous>, transform_indices = @transform_13, window_bounds = array<i64: 2, 1, 32>}, {pipeline_mode = #tpu.pipeline_mode<synchronous>, transform_indices = @transform_14, window_bounds = array<i64: 2, 1, 32>}, {pipeline_mode = #tpu.pipeline_mode<synchronous>, transform_indices = @transform_15, window_bounds = array<i64: 2, 96, 64>}, {pipeline_mode = #tpu.pipeline_mode<synchronous>, transform_indices = @transform_16, window_bounds = array<i64: 2, 1, 64>}, {pipeline_mode = #tpu.pipeline_mode<synchronous>, transform_indices = @transform_17, window_bounds = array<i64: 2, 192, 32>}, {pipeline_mode = #tpu.pipeline_mode<synchronous>, transform_indices = @transform_18, window_bounds = array<i64: 2, 1, 32>}, {pipeline_mode = #tpu.pipeline_mode<synchronous>, transform_indices = @transform_19, window_bounds = array<i64: 2, 1, 32>}, {pipeline_mode = #tpu.pipeline_mode<synchronous>, transform_indices = @transform_20, window_bounds = array<i64: 2, 1, 32>}, {pipeline_mode = #tpu.pipeline_mode<synchronous>, transform_indices = @transform_21, window_bounds = array<i64: 32, 128>}, {pipeline_mode = #tpu.pipeline_mode<synchronous>, transform_indices = @transform_22, window_bounds = array<i64: 1, 128>}, {transform_indices = @transform_23, window_bounds = array<i64: 1, 16, 128>}]} {
    %c0 = arith.constant 0 : index
    %c0_0 = arith.constant 0 : index
    %c0_1 = arith.constant 0 : index
    %0 = vector.load %arg2[%c0, %c0_0, %c0_1] : memref<1x16x1xf32, #tpu.memory_space<vmem>>, vector<1x16x1xf32>
    %1 = vector.shape_cast %0 : vector<1x16x1xf32> to vector<16x1xf32>
    %c0_2 = arith.constant 0 : index
    %c0_3 = arith.constant 0 : index
    %c0_4 = arith.constant 0 : index
    %2 = vector.load %arg3[%c0_2, %c0_3, %c0_4] : memref<1x1x16xf32, #tpu.memory_space<vmem>>, vector<1x1x16xf32>
    %3 = vector.shape_cast %2 : vector<1x1x16xf32> to vector<1x16xf32>
    %4 = vector.broadcast %1 : vector<16x1xf32> to vector<16x16xf32>
    %5 = vector.broadcast %3 : vector<1x16xf32> to vector<16x16xf32>
    %6 = arith.mulf %4, %5 : vector<16x16xf32>
    %7 = vector.shape_cast %6 : vector<16x16xf32> to vector<1x16x16xf32>
    %cst = arith.constant 0.000000e+00 : f32
    %8 = vector.broadcast %cst : f32 to vector<1x16x16xf32>
    %9 = arith.cmpf ogt, %7, %8 : vector<1x16x16xf32>
    %c0_5 = arith.constant 0 : index
    %c0_6 = arith.constant 0 : index
    %c0_7 = arith.constant 0 : index
    %10 = vector.load %arg1[%c0_5, %c0_6, %c0_7] : memref<1x16x32xf32, #tpu.memory_space<vmem>>, vector<1x16x32xf32>
    %11 = vector.shape_cast %10 : vector<1x16x32xf32> to vector<16x32xf32>
    %12 = vector.broadcast %1 : vector<16x1xf32> to vector<16x32xf32>
    %13 = arith.mulf %11, %12 : vector<16x32xf32>
    %14 = tpu.iota {dimensions = array<i32: 0>} : vector<16x16xi32>
    %15 = tpu.iota {dimensions = array<i32: 1>} : vector<16x16xi32>
    %16 = arith.subi %15, %14 : vector<16x16xi32>
    %c-4_i32 = arith.constant -4 : i32
    %17 = vector.broadcast %c-4_i32 : i32 to vector<16x16xi32>
    %18 = arith.cmpi eq, %16, %17 : vector<16x16xi32>
    %19 = arith.extui %18 : vector<16x16xi1> to vector<16x16xi32>
    %20 = arith.sitofp %19 : vector<16x16xi32> to vector<16x16xf32>
    %21 = vector.shape_cast %20 : vector<16x16xf32> to vector<1x16x16xf32>
    %c-3_i32 = arith.constant -3 : i32
    %22 = vector.broadcast %c-3_i32 : i32 to vector<16x16xi32>
    %23 = arith.cmpi eq, %16, %22 : vector<16x16xi32>
    %24 = arith.extui %23 : vector<16x16xi1> to vector<16x16xi32>
    %25 = arith.sitofp %24 : vector<16x16xi32> to vector<16x16xf32>
    %26 = vector.shape_cast %25 : vector<16x16xf32> to vector<1x16x16xf32>
    %c-2_i32 = arith.constant -2 : i32
    %27 = vector.broadcast %c-2_i32 : i32 to vector<16x16xi32>
    %28 = arith.cmpi eq, %16, %27 : vector<16x16xi32>
    %29 = arith.extui %28 : vector<16x16xi1> to vector<16x16xi32>
    %30 = arith.sitofp %29 : vector<16x16xi32> to vector<16x16xf32>
    %31 = vector.shape_cast %30 : vector<16x16xf32> to vector<1x16x16xf32>
    %c-1_i32 = arith.constant -1 : i32
    %32 = vector.broadcast %c-1_i32 : i32 to vector<16x16xi32>
    %33 = arith.cmpi eq, %16, %32 : vector<16x16xi32>
    %34 = arith.extui %33 : vector<16x16xi1> to vector<16x16xi32>
    %35 = arith.sitofp %34 : vector<16x16xi32> to vector<16x16xf32>
    %36 = vector.shape_cast %35 : vector<16x16xf32> to vector<1x16x16xf32>
    %c0_i32 = arith.constant 0 : i32
    %37 = vector.broadcast %c0_i32 : i32 to vector<16x16xi32>
    %38 = arith.cmpi eq, %16, %37 : vector<16x16xi32>
    %39 = arith.extui %38 : vector<16x16xi1> to vector<16x16xi32>
    %40 = arith.sitofp %39 : vector<16x16xi32> to vector<16x16xf32>
    %41 = vector.shape_cast %40 : vector<16x16xf32> to vector<1x16x16xf32>
    %c1_i32 = arith.constant 1 : i32
    %42 = vector.broadcast %c1_i32 : i32 to vector<16x16xi32>
    %43 = arith.cmpi eq, %16, %42 : vector<16x16xi32>
    %44 = arith.extui %43 : vector<16x16xi1> to vector<16x16xi32>
    %45 = arith.sitofp %44 : vector<16x16xi32> to vector<16x16xf32>
    %46 = vector.shape_cast %45 : vector<16x16xf32> to vector<1x16x16xf32>
    %c2_i32 = arith.constant 2 : i32
    %47 = vector.broadcast %c2_i32 : i32 to vector<16x16xi32>
    %48 = arith.cmpi eq, %16, %47 : vector<16x16xi32>
    %49 = arith.extui %48 : vector<16x16xi1> to vector<16x16xi32>
    %50 = arith.sitofp %49 : vector<16x16xi32> to vector<16x16xf32>
    %51 = vector.shape_cast %50 : vector<16x16xf32> to vector<1x16x16xf32>
    %c3_i32 = arith.constant 3 : i32
    %52 = vector.broadcast %c3_i32 : i32 to vector<16x16xi32>
    %53 = arith.cmpi eq, %16, %52 : vector<16x16xi32>
    %54 = arith.extui %53 : vector<16x16xi1> to vector<16x16xi32>
    %55 = arith.sitofp %54 : vector<16x16xi32> to vector<16x16xf32>
    %56 = vector.shape_cast %55 : vector<16x16xf32> to vector<1x16x16xf32>
    %c4_i32 = arith.constant 4 : i32
    %57 = vector.broadcast %c4_i32 : i32 to vector<16x16xi32>
    %58 = arith.cmpi eq, %16, %57 : vector<16x16xi32>
    %59 = arith.extui %58 : vector<16x16xi1> to vector<16x16xi32>
    %60 = arith.sitofp %59 : vector<16x16xi32> to vector<16x16xf32>
    %61 = vector.shape_cast %60 : vector<16x16xf32> to vector<1x16x16xf32>
    %62 = arith.truncf %13 : vector<16x32xf32> to vector<16x32xbf16>
    %c0_8 = arith.constant 0 : index
    %c0_9 = arith.constant 0 : index
    %c0_10 = arith.constant 0 : index
    %63 = vector.load %arg4[%c0_8, %c0_9, %c0_10] : memref<2x32x32xbf16, #tpu.memory_space<vmem>>, vector<1x32x32xbf16>
    %64 = vector.shape_cast %63 : vector<1x32x32xbf16> to vector<32x32xbf16>
    %cst_11 = arith.constant dense<0.000000e+00> : vector<16x32xf32>
    %65 = tpu.matmul %62, %64, %cst_11 {dimension_numbers = #tpu.dot_dimension_numbers<[1], [0], [0], [1], [0, 0, 1, 1], [], []>} : vector<16x32xbf16>, vector<32x32xbf16>, vector<16x32xf32> -> vector<16x32xf32>
    %c0_12 = arith.constant 0 : index
    %c0_13 = arith.constant 0 : index
    %c0_14 = arith.constant 0 : index
    %66 = vector.load %arg5[%c0_12, %c0_13, %c0_14] : memref<2x1x32xf32, #tpu.memory_space<vmem>>, vector<1x1x32xf32>
    %67 = vector.shape_cast %66 : vector<1x1x32xf32> to vector<1x32xf32>
    %68 = vector.broadcast %67 : vector<1x32xf32> to vector<16x32xf32>
    %69 = arith.addf %65, %68 : vector<16x32xf32>
    %c0_15 = arith.constant 0 : index
    %c0_16 = arith.constant 0 : index
    %c0_17 = arith.constant 0 : index
    %70 = vector.load %arg6[%c0_15, %c0_16, %c0_17] : memref<2x32x32xbf16, #tpu.memory_space<vmem>>, vector<1x32x32xbf16>
    %71 = vector.shape_cast %70 : vector<1x32x32xbf16> to vector<32x32xbf16>
    %cst_18 = arith.constant dense<0.000000e+00> : vector<16x32xf32>
    %72 = tpu.matmul %62, %71, %cst_18 {dimension_numbers = #tpu.dot_dimension_numbers<[1], [0], [0], [1], [0, 0, 1, 1], [], []>} : vector<16x32xbf16>, vector<32x32xbf16>, vector<16x32xf32> -> vector<16x32xf32>
    %c0_19 = arith.constant 0 : index
    %c0_20 = arith.constant 0 : index
    %c0_21 = arith.constant 0 : index
    %73 = vector.load %arg7[%c0_19, %c0_20, %c0_21] : memref<2x1x32xf32, #tpu.memory_space<vmem>>, vector<1x1x32xf32>
    %74 = vector.shape_cast %73 : vector<1x1x32xf32> to vector<1x32xf32>
    %75 = vector.broadcast %74 : vector<1x32xf32> to vector<16x32xf32>
    %76 = arith.addf %72, %75 : vector<16x32xf32>
    %c0_22 = arith.constant 0 : index
    %c0_23 = arith.constant 0 : index
    %c0_24 = arith.constant 0 : index
    %77 = vector.load %arg8[%c0_22, %c0_23, %c0_24] : memref<2x32x32xbf16, #tpu.memory_space<vmem>>, vector<1x32x32xbf16>
    %78 = vector.shape_cast %77 : vector<1x32x32xbf16> to vector<32x32xbf16>
    %cst_25 = arith.constant dense<0.000000e+00> : vector<16x32xf32>
    %79 = tpu.matmul %62, %78, %cst_25 {dimension_numbers = #tpu.dot_dimension_numbers<[1], [0], [0], [1], [0, 0, 1, 1], [], []>} : vector<16x32xbf16>, vector<32x32xbf16>, vector<16x32xf32> -> vector<16x32xf32>
    %c0_26 = arith.constant 0 : index
    %c0_27 = arith.constant 0 : index
    %c0_28 = arith.constant 0 : index
    %80 = vector.load %arg9[%c0_26, %c0_27, %c0_28] : memref<2x1x32xf32, #tpu.memory_space<vmem>>, vector<1x1x32xf32>
    %81 = vector.shape_cast %80 : vector<1x1x32xf32> to vector<1x32xf32>
    %82 = vector.broadcast %81 : vector<1x32xf32> to vector<16x32xf32>
    %83 = arith.addf %79, %82 : vector<16x32xf32>
    %cst_29 = arith.constant 2.500000e-01 : f32
    %84 = vector.broadcast %cst_29 : f32 to vector<16x32xf32>
    %85 = arith.mulf %69, %84 : vector<16x32xf32>
    %86 = vector.extract_strided_slice %85 {offsets = [0, 0], sizes = [16, 16], strides = [1, 1]} : vector<16x32xf32> to vector<16x16xf32>
    %87 = vector.extract_strided_slice %85 {offsets = [0, 16], sizes = [16, 16], strides = [1, 1]} : vector<16x32xf32> to vector<16x16xf32>
    %88 = vector.shape_cast %86 : vector<16x16xf32> to vector<1x16x16xf32>
    %89 = vector.shape_cast %87 : vector<16x16xf32> to vector<1x16x16xf32>
    %90 = tpu.concatenate %88, %89 in 0 : vector<1x16x16xf32>, vector<1x16x16xf32> -> vector<2x16x16xf32>
    %91 = arith.truncf %90 : vector<2x16x16xf32> to vector<2x16x16xbf16>
    %92 = vector.extract_strided_slice %76 {offsets = [0, 0], sizes = [16, 16], strides = [1, 1]} : vector<16x32xf32> to vector<16x16xf32>
    %93 = vector.extract_strided_slice %76 {offsets = [0, 16], sizes = [16, 16], strides = [1, 1]} : vector<16x32xf32> to vector<16x16xf32>
    %94 = vector.shape_cast %92 : vector<16x16xf32> to vector<1x16x16xf32>
    %95 = vector.shape_cast %93 : vector<16x16xf32> to vector<1x16x16xf32>
    %96 = tpu.concatenate %94, %95 in 0 : vector<1x16x16xf32>, vector<1x16x16xf32> -> vector<2x16x16xf32>
    %97 = arith.truncf %96 : vector<2x16x16xf32> to vector<2x16x16xbf16>
    %98 = vector.extract_strided_slice %83 {offsets = [0, 0], sizes = [16, 16], strides = [1, 1]} : vector<16x32xf32> to vector<16x16xf32>
    %99 = vector.extract_strided_slice %83 {offsets = [0, 16], sizes = [16, 16], strides = [1, 1]} : vector<16x32xf32> to vector<16x16xf32>
    %100 = vector.shape_cast %98 : vector<16x16xf32> to vector<1x16x16xf32>
    %101 = vector.shape_cast %99 : vector<16x16xf32> to vector<1x16x16xf32>
    %102 = tpu.concatenate %100, %101 in 0 : vector<1x16x16xf32>, vector<1x16x16xf32> -> vector<2x16x16xf32>
    %103 = arith.truncf %102 : vector<2x16x16xf32> to vector<2x16x16xbf16>
    "tpu.trace_start"() <{level = 10 : i32, message = "hqd,hkd->hqk"}> : () -> ()
    %cst_30 = arith.constant dense<0.000000e+00> : vector<2x16x16xf32>
    %104 = tpu.matmul %91, %97, %cst_30 {dimension_numbers = #tpu.dot_dimension_numbers<[2], [2], [1], [1], [0, 0, 0, 1, 1, 1], [0], [0]>} : vector<2x16x16xbf16>, vector<2x16x16xbf16>, vector<2x16x16xf32> -> vector<2x16x16xf32>
    "tpu.trace_stop"() : () -> ()
    %c0_31 = arith.constant 0 : index
    %c0_32 = arith.constant 0 : index
    %c0_33 = arith.constant 0 : index
    %105 = vector.load %arg12[%c0_31, %c0_32, %c0_33] : memref<2x9x16xbf16, #tpu.memory_space<vmem>>, vector<1x9x16xbf16>
    %106 = vector.shape_cast %105 : vector<1x9x16xbf16> to vector<9x16xbf16>
    "tpu.trace_start"() <{level = 10 : i32, message = "hqd,rd->hqr"}> : () -> ()
    %cst_34 = arith.constant dense<0.000000e+00> : vector<2x16x9xf32>
    %107 = tpu.matmul %91, %106, %cst_34 {dimension_numbers = #tpu.dot_dimension_numbers<[2], [1], [0, 1], [0], [0, 0, 0, 1, 1, 0], [], []>} : vector<2x16x16xbf16>, vector<9x16xbf16>, vector<2x16x9xf32> -> vector<2x16x9xf32>
    "tpu.trace_stop"() : () -> ()
    %108 = vector.extract_strided_slice %107 {offsets = [0, 0, 0], sizes = [2, 16, 1], strides = [1, 1, 1]} : vector<2x16x9xf32> to vector<2x16x1xf32>
    %109 = vector.broadcast %108 : vector<2x16x1xf32> to vector<2x16x16xf32>
    %110 = vector.broadcast %21 : vector<1x16x16xf32> to vector<2x16x16xf32>
    %111 = arith.mulf %109, %110 : vector<2x16x16xf32>
    %112 = arith.addf %104, %111 : vector<2x16x16xf32>
    %113 = vector.extract_strided_slice %107 {offsets = [0, 0, 1], sizes = [2, 16, 1], strides = [1, 1, 1]} : vector<2x16x9xf32> to vector<2x16x1xf32>
    %114 = vector.broadcast %113 : vector<2x16x1xf32> to vector<2x16x16xf32>
    %115 = vector.broadcast %26 : vector<1x16x16xf32> to vector<2x16x16xf32>
    %116 = arith.mulf %114, %115 : vector<2x16x16xf32>
    %117 = arith.addf %112, %116 : vector<2x16x16xf32>
    %118 = vector.extract_strided_slice %107 {offsets = [0, 0, 2], sizes = [2, 16, 1], strides = [1, 1, 1]} : vector<2x16x9xf32> to vector<2x16x1xf32>
    %119 = vector.broadcast %118 : vector<2x16x1xf32> to vector<2x16x16xf32>
    %120 = vector.broadcast %31 : vector<1x16x16xf32> to vector<2x16x16xf32>
    %121 = arith.mulf %119, %120 : vector<2x16x16xf32>
    %122 = arith.addf %117, %121 : vector<2x16x16xf32>
    %123 = vector.extract_strided_slice %107 {offsets = [0, 0, 3], sizes = [2, 16, 1], strides = [1, 1, 1]} : vector<2x16x9xf32> to vector<2x16x1xf32>
    %124 = vector.broadcast %123 : vector<2x16x1xf32> to vector<2x16x16xf32>
    %125 = vector.broadcast %36 : vector<1x16x16xf32> to vector<2x16x16xf32>
    %126 = arith.mulf %124, %125 : vector<2x16x16xf32>
    %127 = arith.addf %122, %126 : vector<2x16x16xf32>
    %128 = vector.extract_strided_slice %107 {offsets = [0, 0, 4], sizes = [2, 16, 1], strides = [1, 1, 1]} : vector<2x16x9xf32> to vector<2x16x1xf32>
    %129 = vector.broadcast %128 : vector<2x16x1xf32> to vector<2x16x16xf32>
    %130 = vector.broadcast %41 : vector<1x16x16xf32> to vector<2x16x16xf32>
    %131 = arith.mulf %129, %130 : vector<2x16x16xf32>
    %132 = arith.addf %127, %131 : vector<2x16x16xf32>
    %133 = vector.extract_strided_slice %107 {offsets = [0, 0, 5], sizes = [2, 16, 1], strides = [1, 1, 1]} : vector<2x16x9xf32> to vector<2x16x1xf32>
    %134 = vector.broadcast %133 : vector<2x16x1xf32> to vector<2x16x16xf32>
    %135 = vector.broadcast %46 : vector<1x16x16xf32> to vector<2x16x16xf32>
    %136 = arith.mulf %134, %135 : vector<2x16x16xf32>
    %137 = arith.addf %132, %136 : vector<2x16x16xf32>
    %138 = vector.extract_strided_slice %107 {offsets = [0, 0, 6], sizes = [2, 16, 1], strides = [1, 1, 1]} : vector<2x16x9xf32> to vector<2x16x1xf32>
    %139 = vector.broadcast %138 : vector<2x16x1xf32> to vector<2x16x16xf32>
    %140 = vector.broadcast %51 : vector<1x16x16xf32> to vector<2x16x16xf32>
    %141 = arith.mulf %139, %140 : vector<2x16x16xf32>
    %142 = arith.addf %137, %141 : vector<2x16x16xf32>
    %143 = vector.extract_strided_slice %107 {offsets = [0, 0, 7], sizes = [2, 16, 1], strides = [1, 1, 1]} : vector<2x16x9xf32> to vector<2x16x1xf32>
    %144 = vector.broadcast %143 : vector<2x16x1xf32> to vector<2x16x16xf32>
    %145 = vector.broadcast %56 : vector<1x16x16xf32> to vector<2x16x16xf32>
    %146 = arith.mulf %144, %145 : vector<2x16x16xf32>
    %147 = arith.addf %142, %146 : vector<2x16x16xf32>
    %148 = vector.extract_strided_slice %107 {offsets = [0, 0, 8], sizes = [2, 16, 1], strides = [1, 1, 1]} : vector<2x16x9xf32> to vector<2x16x1xf32>
    %149 = vector.broadcast %148 : vector<2x16x1xf32> to vector<2x16x16xf32>
    %150 = vector.broadcast %61 : vector<1x16x16xf32> to vector<2x16x16xf32>
    %151 = arith.mulf %149, %150 : vector<2x16x16xf32>
    %152 = arith.addf %147, %151 : vector<2x16x16xf32>
    %cst_35 = arith.constant -1.000000e+04 : f32
    %153 = vector.shape_cast %9 : vector<1x16x16xi1> to vector<1x16x16xi1>
    %154 = vector.broadcast %153 : vector<1x16x16xi1> to vector<2x16x16xi1>
    %155 = vector.broadcast %cst_35 : f32 to vector<2x16x16xf32>
    %156 = arith.select %154, %152, %155 : vector<2x16x16xi1>, vector<2x16x16xf32>
    %cst_36 = arith.constant dense<0xFF800000> : vector<2x16xf32>
    %157 = vector.multi_reduction <maximumf>, %156, %cst_36 [2] : vector<2x16x16xf32> to vector<2x16xf32>
    %158 = vector.shape_cast %157 : vector<2x16xf32> to vector<2x16x1xf32>
    %159 = vector.broadcast %158 : vector<2x16x1xf32> to vector<2x16x16xf32>
    %160 = arith.subf %156, %159 : vector<2x16x16xf32>
    %161 = math.exp %160 : vector<2x16x16xf32>
    %cst_37 = arith.constant dense<0.000000e+00> : vector<2x16xf32>
    %162 = vector.multi_reduction <add>, %161, %cst_37 [2] : vector<2x16x16xf32> to vector<2x16xf32>
    %163 = vector.shape_cast %162 : vector<2x16xf32> to vector<2x16x1xf32>
    %164 = tpu.reciprocal %163 {approx = true} : vector<2x16x1xf32> -> vector<2x16x1xf32>
    %165 = vector.broadcast %164 : vector<2x16x1xf32> to vector<2x16x16xf32>
    %166 = arith.mulf %161, %165 : vector<2x16x16xf32>
    %167 = arith.truncf %166 : vector<2x16x16xf32> to vector<2x16x16xbf16>
    "tpu.trace_start"() <{level = 10 : i32, message = "hqk,hkd->hqd"}> : () -> ()
    %cst_38 = arith.constant dense<0.000000e+00> : vector<2x16x16xf32>
    %168 = tpu.matmul %167, %103, %cst_38 {dimension_numbers = #tpu.dot_dimension_numbers<[2], [1], [1], [2], [0, 0, 0, 1, 1, 2], [0], [0]>} : vector<2x16x16xbf16>, vector<2x16x16xbf16>, vector<2x16x16xf32> -> vector<2x16x16xf32>
    "tpu.trace_stop"() : () -> ()
    %169 = vector.broadcast %21 : vector<1x16x16xf32> to vector<2x16x16xf32>
    %170 = arith.mulf %166, %169 : vector<2x16x16xf32>
    %cst_39 = arith.constant dense<0.000000e+00> : vector<2x16xf32>
    %171 = vector.multi_reduction <add>, %170, %cst_39 [2] : vector<2x16x16xf32> to vector<2x16xf32>
    %172 = vector.shape_cast %171 : vector<2x16xf32> to vector<2x16x1xf32>
    %173 = vector.broadcast %26 : vector<1x16x16xf32> to vector<2x16x16xf32>
    %174 = arith.mulf %166, %173 : vector<2x16x16xf32>
    %cst_40 = arith.constant dense<0.000000e+00> : vector<2x16xf32>
    %175 = vector.multi_reduction <add>, %174, %cst_40 [2] : vector<2x16x16xf32> to vector<2x16xf32>
    %176 = vector.shape_cast %175 : vector<2x16xf32> to vector<2x16x1xf32>
    %177 = vector.broadcast %31 : vector<1x16x16xf32> to vector<2x16x16xf32>
    %178 = arith.mulf %166, %177 : vector<2x16x16xf32>
    %cst_41 = arith.constant dense<0.000000e+00> : vector<2x16xf32>
    %179 = vector.multi_reduction <add>, %178, %cst_41 [2] : vector<2x16x16xf32> to vector<2x16xf32>
    %180 = vector.shape_cast %179 : vector<2x16xf32> to vector<2x16x1xf32>
    %181 = vector.broadcast %36 : vector<1x16x16xf32> to vector<2x16x16xf32>
    %182 = arith.mulf %166, %181 : vector<2x16x16xf32>
    %cst_42 = arith.constant dense<0.000000e+00> : vector<2x16xf32>
    %183 = vector.multi_reduction <add>, %182, %cst_42 [2] : vector<2x16x16xf32> to vector<2x16xf32>
    %184 = vector.shape_cast %183 : vector<2x16xf32> to vector<2x16x1xf32>
    %185 = vector.broadcast %41 : vector<1x16x16xf32> to vector<2x16x16xf32>
    %186 = arith.mulf %166, %185 : vector<2x16x16xf32>
    %cst_43 = arith.constant dense<0.000000e+00> : vector<2x16xf32>
    %187 = vector.multi_reduction <add>, %186, %cst_43 [2] : vector<2x16x16xf32> to vector<2x16xf32>
    %188 = vector.shape_cast %187 : vector<2x16xf32> to vector<2x16x1xf32>
    %189 = vector.broadcast %46 : vector<1x16x16xf32> to vector<2x16x16xf32>
    %190 = arith.mulf %166, %189 : vector<2x16x16xf32>
    %cst_44 = arith.constant dense<0.000000e+00> : vector<2x16xf32>
    %191 = vector.multi_reduction <add>, %190, %cst_44 [2] : vector<2x16x16xf32> to vector<2x16xf32>
    %192 = vector.shape_cast %191 : vector<2x16xf32> to vector<2x16x1xf32>
    %193 = vector.broadcast %51 : vector<1x16x16xf32> to vector<2x16x16xf32>
    %194 = arith.mulf %166, %193 : vector<2x16x16xf32>
    %cst_45 = arith.constant dense<0.000000e+00> : vector<2x16xf32>
    %195 = vector.multi_reduction <add>, %194, %cst_45 [2] : vector<2x16x16xf32> to vector<2x16xf32>
    %196 = vector.shape_cast %195 : vector<2x16xf32> to vector<2x16x1xf32>
    %197 = vector.broadcast %56 : vector<1x16x16xf32> to vector<2x16x16xf32>
    %198 = arith.mulf %166, %197 : vector<2x16x16xf32>
    %cst_46 = arith.constant dense<0.000000e+00> : vector<2x16xf32>
    %199 = vector.multi_reduction <add>, %198, %cst_46 [2] : vector<2x16x16xf32> to vector<2x16xf32>
    %200 = vector.shape_cast %199 : vector<2x16xf32> to vector<2x16x1xf32>
    %201 = vector.broadcast %61 : vector<1x16x16xf32> to vector<2x16x16xf32>
    %202 = arith.mulf %166, %201 : vector<2x16x16xf32>
    %cst_47 = arith.constant dense<0.000000e+00> : vector<2x16xf32>
    %203 = vector.multi_reduction <add>, %202, %cst_47 [2] : vector<2x16x16xf32> to vector<2x16xf32>
    %204 = vector.shape_cast %203 : vector<2x16xf32> to vector<2x16x1xf32>
    %205 = tpu.concatenate %172, %176, %180, %184, %188, %192, %196, %200, %204 in 2 : vector<2x16x1xf32>, vector<2x16x1xf32>, vector<2x16x1xf32>, vector<2x16x1xf32>, vector<2x16x1xf32>, vector<2x16x1xf32>, vector<2x16x1xf32>, vector<2x16x1xf32>, vector<2x16x1xf32> -> vector<2x16x9xf32>
    %206 = arith.truncf %205 : vector<2x16x9xf32> to vector<2x16x9xbf16>
    %c0_48 = arith.constant 0 : index
    %c0_49 = arith.constant 0 : index
    %c0_50 = arith.constant 0 : index
    %207 = vector.load %arg13[%c0_48, %c0_49, %c0_50] : memref<2x9x16xbf16, #tpu.memory_space<vmem>>, vector<1x9x16xbf16>
    %208 = vector.shape_cast %207 : vector<1x9x16xbf16> to vector<9x16xbf16>
    "tpu.trace_start"() <{level = 10 : i32, message = "hqr,rd->hqd"}> : () -> ()
    %cst_51 = arith.constant dense<0.000000e+00> : vector<2x16x16xf32>
    %209 = tpu.matmul %206, %208, %cst_51 {dimension_numbers = #tpu.dot_dimension_numbers<[2], [0], [0, 1], [1], [0, 0, 0, 1, 1, 1], [], []>} : vector<2x16x9xbf16>, vector<9x16xbf16>, vector<2x16x16xf32> -> vector<2x16x16xf32>
    "tpu.trace_stop"() : () -> ()
    %210 = arith.addf %168, %209 : vector<2x16x16xf32>
    %211 = vector.extract_strided_slice %210 {offsets = [0, 0, 0], sizes = [1, 16, 16], strides = [1, 1, 1]} : vector<2x16x16xf32> to vector<1x16x16xf32>
    %212 = vector.shape_cast %211 : vector<1x16x16xf32> to vector<16x16xf32>
    %213 = vector.extract_strided_slice %210 {offsets = [1, 0, 0], sizes = [1, 16, 16], strides = [1, 1, 1]} : vector<2x16x16xf32> to vector<1x16x16xf32>
    %214 = vector.shape_cast %213 : vector<1x16x16xf32> to vector<16x16xf32>
    %215 = tpu.concatenate %212, %214 in 1 : vector<16x16xf32>, vector<16x16xf32> -> vector<16x32xf32>
    %216 = arith.truncf %215 : vector<16x32xf32> to vector<16x32xbf16>
    %c0_52 = arith.constant 0 : index
    %c0_53 = arith.constant 0 : index
    %c0_54 = arith.constant 0 : index
    %217 = vector.load %arg10[%c0_52, %c0_53, %c0_54] : memref<2x32x32xbf16, #tpu.memory_space<vmem>>, vector<1x32x32xbf16>
    %218 = vector.shape_cast %217 : vector<1x32x32xbf16> to vector<32x32xbf16>
    %cst_55 = arith.constant dense<0.000000e+00> : vector<16x32xf32>
    %219 = tpu.matmul %216, %218, %cst_55 {dimension_numbers = #tpu.dot_dimension_numbers<[1], [0], [0], [1], [0, 0, 1, 1], [], []>} : vector<16x32xbf16>, vector<32x32xbf16>, vector<16x32xf32> -> vector<16x32xf32>
    %c0_56 = arith.constant 0 : index
    %c0_57 = arith.constant 0 : index
    %c0_58 = arith.constant 0 : index
    %220 = vector.load %arg11[%c0_56, %c0_57, %c0_58] : memref<2x1x32xf32, #tpu.memory_space<vmem>>, vector<1x1x32xf32>
    %221 = vector.shape_cast %220 : vector<1x1x32xf32> to vector<1x32xf32>
    %222 = vector.broadcast %221 : vector<1x32xf32> to vector<16x32xf32>
    %223 = arith.addf %219, %222 : vector<16x32xf32>
    %224 = arith.addf %13, %223 : vector<16x32xf32>
    %c0_59 = arith.constant 0 : index
    %c0_60 = arith.constant 0 : index
    %c0_61 = arith.constant 0 : index
    %225 = vector.load %arg14[%c0_59, %c0_60, %c0_61] : memref<2x1x32xf32, #tpu.memory_space<vmem>>, vector<1x1x32xf32>
    %226 = vector.shape_cast %225 : vector<1x1x32xf32> to vector<1x32xf32>
    %c0_62 = arith.constant 0 : index
    %c0_63 = arith.constant 0 : index
    %c0_64 = arith.constant 0 : index
    %227 = vector.load %arg15[%c0_62, %c0_63, %c0_64] : memref<2x1x32xf32, #tpu.memory_space<vmem>>, vector<1x1x32xf32>
    %228 = vector.shape_cast %227 : vector<1x1x32xf32> to vector<1x32xf32>
    %cst_65 = arith.constant dense<0.000000e+00> : vector<16xf32>
    %229 = vector.multi_reduction <add>, %224, %cst_65 [1] : vector<16x32xf32> to vector<16xf32>
    %230 = vector.shape_cast %229 : vector<16xf32> to vector<16x1xf32>
    %cst_66 = arith.constant 3.200000e+01 : f32
    %231 = vector.broadcast %cst_66 : f32 to vector<16x1xf32>
    %232 = arith.divf %230, %231 : vector<16x1xf32>
    %233 = vector.broadcast %232 : vector<16x1xf32> to vector<16x32xf32>
    %234 = arith.subf %224, %233 : vector<16x32xf32>
    %235 = arith.mulf %234, %234 : vector<16x32xf32>
    %cst_67 = arith.constant dense<0.000000e+00> : vector<16xf32>
    %236 = vector.multi_reduction <add>, %235, %cst_67 [1] : vector<16x32xf32> to vector<16xf32>
    %237 = vector.shape_cast %236 : vector<16xf32> to vector<16x1xf32>
    %cst_68 = arith.constant 3.200000e+01 : f32
    %238 = vector.broadcast %cst_68 : f32 to vector<16x1xf32>
    %239 = arith.divf %237, %238 : vector<16x1xf32>
    %cst_69 = arith.constant 9.99999974E-6 : f32
    %240 = vector.broadcast %cst_69 : f32 to vector<16x1xf32>
    %241 = arith.addf %239, %240 : vector<16x1xf32>
    %242 = math.rsqrt %241 : vector<16x1xf32>
    %243 = vector.broadcast %242 : vector<16x1xf32> to vector<16x32xf32>
    %244 = arith.mulf %234, %243 : vector<16x32xf32>
    %245 = vector.broadcast %226 : vector<1x32xf32> to vector<16x32xf32>
    %246 = arith.mulf %244, %245 : vector<16x32xf32>
    %247 = vector.broadcast %228 : vector<1x32xf32> to vector<16x32xf32>
    %248 = arith.addf %246, %247 : vector<16x32xf32>
    %249 = vector.broadcast %1 : vector<16x1xf32> to vector<16x32xf32>
    %250 = arith.mulf %248, %249 : vector<16x32xf32>
    %c0_70 = arith.constant 0 : index
    %c0_71 = arith.constant 0 : index
    %c0_72 = arith.constant 0 : index
    %251 = vector.load %arg16[%c0_70, %c0_71, %c0_72] : memref<2x96x64xbf16, #tpu.memory_space<vmem>>, vector<1x96x64xbf16>
    %252 = vector.shape_cast %251 : vector<1x96x64xbf16> to vector<96x64xbf16>
    %c0_73 = arith.constant 0 : index
    %c0_74 = arith.constant 0 : index
    %c0_75 = arith.constant 0 : index
    %253 = vector.load %arg17[%c0_73, %c0_74, %c0_75] : memref<2x1x64xf32, #tpu.memory_space<vmem>>, vector<1x1x64xf32>
    %254 = vector.shape_cast %253 : vector<1x1x64xf32> to vector<1x64xf32>
    %cst_76 = arith.constant 0.000000e+00 : f32
    %255 = vector.broadcast %cst_76 : f32 to vector<1x32xf32>
    %256 = vector.extract_strided_slice %250 {offsets = [0, 0], sizes = [15, 32], strides = [1, 1]} : vector<16x32xf32> to vector<15x32xf32>
    %257 = tpu.concatenate %255, %256 in 0 : vector<1x32xf32>, vector<15x32xf32> -> vector<16x32xf32>
    %cst_77 = arith.constant 0.000000e+00 : f32
    %258 = vector.broadcast %cst_77 : f32 to vector<1x32xf32>
    %259 = vector.extract_strided_slice %250 {offsets = [1, 0], sizes = [15, 32], strides = [1, 1]} : vector<16x32xf32> to vector<15x32xf32>
    %260 = tpu.concatenate %259, %258 in 0 : vector<15x32xf32>, vector<1x32xf32> -> vector<16x32xf32>
    %261 = tpu.concatenate %257, %250, %260 in 1 : vector<16x32xf32>, vector<16x32xf32>, vector<16x32xf32> -> vector<16x96xf32>
    %262 = arith.truncf %261 : vector<16x96xf32> to vector<16x96xbf16>
    %cst_78 = arith.constant dense<0.000000e+00> : vector<16x64xf32>
    %263 = tpu.matmul %262, %252, %cst_78 {dimension_numbers = #tpu.dot_dimension_numbers<[1], [0], [0], [1], [0, 0, 1, 1], [], []>} : vector<16x96xbf16>, vector<96x64xbf16>, vector<16x64xf32> -> vector<16x64xf32>
    %264 = vector.broadcast %254 : vector<1x64xf32> to vector<16x64xf32>
    %265 = arith.addf %263, %264 : vector<16x64xf32>
    %cst_79 = arith.constant 0.000000e+00 : f32
    %266 = vector.broadcast %cst_79 : f32 to vector<16x64xf32>
    %267 = arith.maximumf %265, %266 : vector<16x64xf32>
    %268 = vector.broadcast %1 : vector<16x1xf32> to vector<16x64xf32>
    %269 = arith.mulf %267, %268 : vector<16x64xf32>
    %c0_80 = arith.constant 0 : index
    %c0_81 = arith.constant 0 : index
    %c0_82 = arith.constant 0 : index
    %270 = vector.load %arg18[%c0_80, %c0_81, %c0_82] : memref<2x192x32xbf16, #tpu.memory_space<vmem>>, vector<1x192x32xbf16>
    %271 = vector.shape_cast %270 : vector<1x192x32xbf16> to vector<192x32xbf16>
    %c0_83 = arith.constant 0 : index
    %c0_84 = arith.constant 0 : index
    %c0_85 = arith.constant 0 : index
    %272 = vector.load %arg19[%c0_83, %c0_84, %c0_85] : memref<2x1x32xf32, #tpu.memory_space<vmem>>, vector<1x1x32xf32>
    %273 = vector.shape_cast %272 : vector<1x1x32xf32> to vector<1x32xf32>
    %cst_86 = arith.constant 0.000000e+00 : f32
    %274 = vector.broadcast %cst_86 : f32 to vector<1x64xf32>
    %275 = vector.extract_strided_slice %269 {offsets = [0, 0], sizes = [15, 64], strides = [1, 1]} : vector<16x64xf32> to vector<15x64xf32>
    %276 = tpu.concatenate %274, %275 in 0 : vector<1x64xf32>, vector<15x64xf32> -> vector<16x64xf32>
    %cst_87 = arith.constant 0.000000e+00 : f32
    %277 = vector.broadcast %cst_87 : f32 to vector<1x64xf32>
    %278 = vector.extract_strided_slice %269 {offsets = [1, 0], sizes = [15, 64], strides = [1, 1]} : vector<16x64xf32> to vector<15x64xf32>
    %279 = tpu.concatenate %278, %277 in 0 : vector<15x64xf32>, vector<1x64xf32> -> vector<16x64xf32>
    %280 = tpu.concatenate %276, %269, %279 in 1 : vector<16x64xf32>, vector<16x64xf32>, vector<16x64xf32> -> vector<16x192xf32>
    %281 = arith.truncf %280 : vector<16x192xf32> to vector<16x192xbf16>
    %cst_88 = arith.constant dense<0.000000e+00> : vector<16x32xf32>
    %282 = tpu.matmul %281, %271, %cst_88 {dimension_numbers = #tpu.dot_dimension_numbers<[1], [0], [0], [1], [0, 0, 1, 1], [], []>} : vector<16x192xbf16>, vector<192x32xbf16>, vector<16x32xf32> -> vector<16x32xf32>
    %283 = vector.broadcast %273 : vector<1x32xf32> to vector<16x32xf32>
    %284 = arith.addf %282, %283 : vector<16x32xf32>
    %285 = vector.broadcast %1 : vector<16x1xf32> to vector<16x32xf32>
    %286 = arith.mulf %284, %285 : vector<16x32xf32>
    %287 = arith.addf %248, %286 : vector<16x32xf32>
    %c0_89 = arith.constant 0 : index
    %c0_90 = arith.constant 0 : index
    %c0_91 = arith.constant 0 : index
    %288 = vector.load %arg20[%c0_89, %c0_90, %c0_91] : memref<2x1x32xf32, #tpu.memory_space<vmem>>, vector<1x1x32xf32>
    %289 = vector.shape_cast %288 : vector<1x1x32xf32> to vector<1x32xf32>
    %c0_92 = arith.constant 0 : index
    %c0_93 = arith.constant 0 : index
    %c0_94 = arith.constant 0 : index
    %290 = vector.load %arg21[%c0_92, %c0_93, %c0_94] : memref<2x1x32xf32, #tpu.memory_space<vmem>>, vector<1x1x32xf32>
    %291 = vector.shape_cast %290 : vector<1x1x32xf32> to vector<1x32xf32>
    %cst_95 = arith.constant dense<0.000000e+00> : vector<16xf32>
    %292 = vector.multi_reduction <add>, %287, %cst_95 [1] : vector<16x32xf32> to vector<16xf32>
    %293 = vector.shape_cast %292 : vector<16xf32> to vector<16x1xf32>
    %cst_96 = arith.constant 3.200000e+01 : f32
    %294 = vector.broadcast %cst_96 : f32 to vector<16x1xf32>
    %295 = arith.divf %293, %294 : vector<16x1xf32>
    %296 = vector.broadcast %295 : vector<16x1xf32> to vector<16x32xf32>
    %297 = arith.subf %287, %296 : vector<16x32xf32>
    %298 = arith.mulf %297, %297 : vector<16x32xf32>
    %cst_97 = arith.constant dense<0.000000e+00> : vector<16xf32>
    %299 = vector.multi_reduction <add>, %298, %cst_97 [1] : vector<16x32xf32> to vector<16xf32>
    %300 = vector.shape_cast %299 : vector<16xf32> to vector<16x1xf32>
    %cst_98 = arith.constant 3.200000e+01 : f32
    %301 = vector.broadcast %cst_98 : f32 to vector<16x1xf32>
    %302 = arith.divf %300, %301 : vector<16x1xf32>
    %cst_99 = arith.constant 9.99999974E-6 : f32
    %303 = vector.broadcast %cst_99 : f32 to vector<16x1xf32>
    %304 = arith.addf %302, %303 : vector<16x1xf32>
    %305 = math.rsqrt %304 : vector<16x1xf32>
    %306 = vector.broadcast %305 : vector<16x1xf32> to vector<16x32xf32>
    %307 = arith.mulf %297, %306 : vector<16x32xf32>
    %308 = vector.broadcast %289 : vector<1x32xf32> to vector<16x32xf32>
    %309 = arith.mulf %307, %308 : vector<16x32xf32>
    %310 = vector.broadcast %291 : vector<1x32xf32> to vector<16x32xf32>
    %311 = arith.addf %309, %310 : vector<16x32xf32>
    %312 = arith.truncf %311 : vector<16x32xf32> to vector<16x32xbf16>
    %c1 = arith.constant 1 : index
    %c0_100 = arith.constant 0 : index
    %c0_101 = arith.constant 0 : index
    %313 = vector.load %arg4[%c1, %c0_100, %c0_101] : memref<2x32x32xbf16, #tpu.memory_space<vmem>>, vector<1x32x32xbf16>
    %314 = vector.shape_cast %313 : vector<1x32x32xbf16> to vector<32x32xbf16>
    %cst_102 = arith.constant dense<0.000000e+00> : vector<16x32xf32>
    %315 = tpu.matmul %312, %314, %cst_102 {dimension_numbers = #tpu.dot_dimension_numbers<[1], [0], [0], [1], [0, 0, 1, 1], [], []>} : vector<16x32xbf16>, vector<32x32xbf16>, vector<16x32xf32> -> vector<16x32xf32>
    %c1_103 = arith.constant 1 : index
    %c0_104 = arith.constant 0 : index
    %c0_105 = arith.constant 0 : index
    %316 = vector.load %arg5[%c1_103, %c0_104, %c0_105] : memref<2x1x32xf32, #tpu.memory_space<vmem>>, vector<1x1x32xf32>
    %317 = vector.shape_cast %316 : vector<1x1x32xf32> to vector<1x32xf32>
    %318 = vector.broadcast %317 : vector<1x32xf32> to vector<16x32xf32>
    %319 = arith.addf %315, %318 : vector<16x32xf32>
    %c1_106 = arith.constant 1 : index
    %c0_107 = arith.constant 0 : index
    %c0_108 = arith.constant 0 : index
    %320 = vector.load %arg6[%c1_106, %c0_107, %c0_108] : memref<2x32x32xbf16, #tpu.memory_space<vmem>>, vector<1x32x32xbf16>
    %321 = vector.shape_cast %320 : vector<1x32x32xbf16> to vector<32x32xbf16>
    %cst_109 = arith.constant dense<0.000000e+00> : vector<16x32xf32>
    %322 = tpu.matmul %312, %321, %cst_109 {dimension_numbers = #tpu.dot_dimension_numbers<[1], [0], [0], [1], [0, 0, 1, 1], [], []>} : vector<16x32xbf16>, vector<32x32xbf16>, vector<16x32xf32> -> vector<16x32xf32>
    %c1_110 = arith.constant 1 : index
    %c0_111 = arith.constant 0 : index
    %c0_112 = arith.constant 0 : index
    %323 = vector.load %arg7[%c1_110, %c0_111, %c0_112] : memref<2x1x32xf32, #tpu.memory_space<vmem>>, vector<1x1x32xf32>
    %324 = vector.shape_cast %323 : vector<1x1x32xf32> to vector<1x32xf32>
    %325 = vector.broadcast %324 : vector<1x32xf32> to vector<16x32xf32>
    %326 = arith.addf %322, %325 : vector<16x32xf32>
    %c1_113 = arith.constant 1 : index
    %c0_114 = arith.constant 0 : index
    %c0_115 = arith.constant 0 : index
    %327 = vector.load %arg8[%c1_113, %c0_114, %c0_115] : memref<2x32x32xbf16, #tpu.memory_space<vmem>>, vector<1x32x32xbf16>
    %328 = vector.shape_cast %327 : vector<1x32x32xbf16> to vector<32x32xbf16>
    %cst_116 = arith.constant dense<0.000000e+00> : vector<16x32xf32>
    %329 = tpu.matmul %312, %328, %cst_116 {dimension_numbers = #tpu.dot_dimension_numbers<[1], [0], [0], [1], [0, 0, 1, 1], [], []>} : vector<16x32xbf16>, vector<32x32xbf16>, vector<16x32xf32> -> vector<16x32xf32>
    %c1_117 = arith.constant 1 : index
    %c0_118 = arith.constant 0 : index
    %c0_119 = arith.constant 0 : index
    %330 = vector.load %arg9[%c1_117, %c0_118, %c0_119] : memref<2x1x32xf32, #tpu.memory_space<vmem>>, vector<1x1x32xf32>
    %331 = vector.shape_cast %330 : vector<1x1x32xf32> to vector<1x32xf32>
    %332 = vector.broadcast %331 : vector<1x32xf32> to vector<16x32xf32>
    %333 = arith.addf %329, %332 : vector<16x32xf32>
    %cst_120 = arith.constant 2.500000e-01 : f32
    %334 = vector.broadcast %cst_120 : f32 to vector<16x32xf32>
    %335 = arith.mulf %319, %334 : vector<16x32xf32>
    %336 = vector.extract_strided_slice %335 {offsets = [0, 0], sizes = [16, 16], strides = [1, 1]} : vector<16x32xf32> to vector<16x16xf32>
    %337 = vector.extract_strided_slice %335 {offsets = [0, 16], sizes = [16, 16], strides = [1, 1]} : vector<16x32xf32> to vector<16x16xf32>
    %338 = vector.shape_cast %336 : vector<16x16xf32> to vector<1x16x16xf32>
    %339 = vector.shape_cast %337 : vector<16x16xf32> to vector<1x16x16xf32>
    %340 = tpu.concatenate %338, %339 in 0 : vector<1x16x16xf32>, vector<1x16x16xf32> -> vector<2x16x16xf32>
    %341 = arith.truncf %340 : vector<2x16x16xf32> to vector<2x16x16xbf16>
    %342 = vector.extract_strided_slice %326 {offsets = [0, 0], sizes = [16, 16], strides = [1, 1]} : vector<16x32xf32> to vector<16x16xf32>
    %343 = vector.extract_strided_slice %326 {offsets = [0, 16], sizes = [16, 16], strides = [1, 1]} : vector<16x32xf32> to vector<16x16xf32>
    %344 = vector.shape_cast %342 : vector<16x16xf32> to vector<1x16x16xf32>
    %345 = vector.shape_cast %343 : vector<16x16xf32> to vector<1x16x16xf32>
    %346 = tpu.concatenate %344, %345 in 0 : vector<1x16x16xf32>, vector<1x16x16xf32> -> vector<2x16x16xf32>
    %347 = arith.truncf %346 : vector<2x16x16xf32> to vector<2x16x16xbf16>
    %348 = vector.extract_strided_slice %333 {offsets = [0, 0], sizes = [16, 16], strides = [1, 1]} : vector<16x32xf32> to vector<16x16xf32>
    %349 = vector.extract_strided_slice %333 {offsets = [0, 16], sizes = [16, 16], strides = [1, 1]} : vector<16x32xf32> to vector<16x16xf32>
    %350 = vector.shape_cast %348 : vector<16x16xf32> to vector<1x16x16xf32>
    %351 = vector.shape_cast %349 : vector<16x16xf32> to vector<1x16x16xf32>
    %352 = tpu.concatenate %350, %351 in 0 : vector<1x16x16xf32>, vector<1x16x16xf32> -> vector<2x16x16xf32>
    %353 = arith.truncf %352 : vector<2x16x16xf32> to vector<2x16x16xbf16>
    "tpu.trace_start"() <{level = 10 : i32, message = "hqd,hkd->hqk"}> : () -> ()
    %cst_121 = arith.constant dense<0.000000e+00> : vector<2x16x16xf32>
    %354 = tpu.matmul %341, %347, %cst_121 {dimension_numbers = #tpu.dot_dimension_numbers<[2], [2], [1], [1], [0, 0, 0, 1, 1, 1], [0], [0]>} : vector<2x16x16xbf16>, vector<2x16x16xbf16>, vector<2x16x16xf32> -> vector<2x16x16xf32>
    "tpu.trace_stop"() : () -> ()
    %c1_122 = arith.constant 1 : index
    %c0_123 = arith.constant 0 : index
    %c0_124 = arith.constant 0 : index
    %355 = vector.load %arg12[%c1_122, %c0_123, %c0_124] : memref<2x9x16xbf16, #tpu.memory_space<vmem>>, vector<1x9x16xbf16>
    %356 = vector.shape_cast %355 : vector<1x9x16xbf16> to vector<9x16xbf16>
    "tpu.trace_start"() <{level = 10 : i32, message = "hqd,rd->hqr"}> : () -> ()
    %cst_125 = arith.constant dense<0.000000e+00> : vector<2x16x9xf32>
    %357 = tpu.matmul %341, %356, %cst_125 {dimension_numbers = #tpu.dot_dimension_numbers<[2], [1], [0, 1], [0], [0, 0, 0, 1, 1, 0], [], []>} : vector<2x16x16xbf16>, vector<9x16xbf16>, vector<2x16x9xf32> -> vector<2x16x9xf32>
    "tpu.trace_stop"() : () -> ()
    %358 = vector.extract_strided_slice %357 {offsets = [0, 0, 0], sizes = [2, 16, 1], strides = [1, 1, 1]} : vector<2x16x9xf32> to vector<2x16x1xf32>
    %359 = vector.broadcast %358 : vector<2x16x1xf32> to vector<2x16x16xf32>
    %360 = vector.broadcast %21 : vector<1x16x16xf32> to vector<2x16x16xf32>
    %361 = arith.mulf %359, %360 : vector<2x16x16xf32>
    %362 = arith.addf %354, %361 : vector<2x16x16xf32>
    %363 = vector.extract_strided_slice %357 {offsets = [0, 0, 1], sizes = [2, 16, 1], strides = [1, 1, 1]} : vector<2x16x9xf32> to vector<2x16x1xf32>
    %364 = vector.broadcast %363 : vector<2x16x1xf32> to vector<2x16x16xf32>
    %365 = vector.broadcast %26 : vector<1x16x16xf32> to vector<2x16x16xf32>
    %366 = arith.mulf %364, %365 : vector<2x16x16xf32>
    %367 = arith.addf %362, %366 : vector<2x16x16xf32>
    %368 = vector.extract_strided_slice %357 {offsets = [0, 0, 2], sizes = [2, 16, 1], strides = [1, 1, 1]} : vector<2x16x9xf32> to vector<2x16x1xf32>
    %369 = vector.broadcast %368 : vector<2x16x1xf32> to vector<2x16x16xf32>
    %370 = vector.broadcast %31 : vector<1x16x16xf32> to vector<2x16x16xf32>
    %371 = arith.mulf %369, %370 : vector<2x16x16xf32>
    %372 = arith.addf %367, %371 : vector<2x16x16xf32>
    %373 = vector.extract_strided_slice %357 {offsets = [0, 0, 3], sizes = [2, 16, 1], strides = [1, 1, 1]} : vector<2x16x9xf32> to vector<2x16x1xf32>
    %374 = vector.broadcast %373 : vector<2x16x1xf32> to vector<2x16x16xf32>
    %375 = vector.broadcast %36 : vector<1x16x16xf32> to vector<2x16x16xf32>
    %376 = arith.mulf %374, %375 : vector<2x16x16xf32>
    %377 = arith.addf %372, %376 : vector<2x16x16xf32>
    %378 = vector.extract_strided_slice %357 {offsets = [0, 0, 4], sizes = [2, 16, 1], strides = [1, 1, 1]} : vector<2x16x9xf32> to vector<2x16x1xf32>
    %379 = vector.broadcast %378 : vector<2x16x1xf32> to vector<2x16x16xf32>
    %380 = vector.broadcast %41 : vector<1x16x16xf32> to vector<2x16x16xf32>
    %381 = arith.mulf %379, %380 : vector<2x16x16xf32>
    %382 = arith.addf %377, %381 : vector<2x16x16xf32>
    %383 = vector.extract_strided_slice %357 {offsets = [0, 0, 5], sizes = [2, 16, 1], strides = [1, 1, 1]} : vector<2x16x9xf32> to vector<2x16x1xf32>
    %384 = vector.broadcast %383 : vector<2x16x1xf32> to vector<2x16x16xf32>
    %385 = vector.broadcast %46 : vector<1x16x16xf32> to vector<2x16x16xf32>
    %386 = arith.mulf %384, %385 : vector<2x16x16xf32>
    %387 = arith.addf %382, %386 : vector<2x16x16xf32>
    %388 = vector.extract_strided_slice %357 {offsets = [0, 0, 6], sizes = [2, 16, 1], strides = [1, 1, 1]} : vector<2x16x9xf32> to vector<2x16x1xf32>
    %389 = vector.broadcast %388 : vector<2x16x1xf32> to vector<2x16x16xf32>
    %390 = vector.broadcast %51 : vector<1x16x16xf32> to vector<2x16x16xf32>
    %391 = arith.mulf %389, %390 : vector<2x16x16xf32>
    %392 = arith.addf %387, %391 : vector<2x16x16xf32>
    %393 = vector.extract_strided_slice %357 {offsets = [0, 0, 7], sizes = [2, 16, 1], strides = [1, 1, 1]} : vector<2x16x9xf32> to vector<2x16x1xf32>
    %394 = vector.broadcast %393 : vector<2x16x1xf32> to vector<2x16x16xf32>
    %395 = vector.broadcast %56 : vector<1x16x16xf32> to vector<2x16x16xf32>
    %396 = arith.mulf %394, %395 : vector<2x16x16xf32>
    %397 = arith.addf %392, %396 : vector<2x16x16xf32>
    %398 = vector.extract_strided_slice %357 {offsets = [0, 0, 8], sizes = [2, 16, 1], strides = [1, 1, 1]} : vector<2x16x9xf32> to vector<2x16x1xf32>
    %399 = vector.broadcast %398 : vector<2x16x1xf32> to vector<2x16x16xf32>
    %400 = vector.broadcast %61 : vector<1x16x16xf32> to vector<2x16x16xf32>
    %401 = arith.mulf %399, %400 : vector<2x16x16xf32>
    %402 = arith.addf %397, %401 : vector<2x16x16xf32>
    %cst_126 = arith.constant -1.000000e+04 : f32
    %403 = vector.shape_cast %9 : vector<1x16x16xi1> to vector<1x16x16xi1>
    %404 = vector.broadcast %403 : vector<1x16x16xi1> to vector<2x16x16xi1>
    %405 = vector.broadcast %cst_126 : f32 to vector<2x16x16xf32>
    %406 = arith.select %404, %402, %405 : vector<2x16x16xi1>, vector<2x16x16xf32>
    %cst_127 = arith.constant dense<0xFF800000> : vector<2x16xf32>
    %407 = vector.multi_reduction <maximumf>, %406, %cst_127 [2] : vector<2x16x16xf32> to vector<2x16xf32>
    %408 = vector.shape_cast %407 : vector<2x16xf32> to vector<2x16x1xf32>
    %409 = vector.broadcast %408 : vector<2x16x1xf32> to vector<2x16x16xf32>
    %410 = arith.subf %406, %409 : vector<2x16x16xf32>
    %411 = math.exp %410 : vector<2x16x16xf32>
    %cst_128 = arith.constant dense<0.000000e+00> : vector<2x16xf32>
    %412 = vector.multi_reduction <add>, %411, %cst_128 [2] : vector<2x16x16xf32> to vector<2x16xf32>
    %413 = vector.shape_cast %412 : vector<2x16xf32> to vector<2x16x1xf32>
    %414 = tpu.reciprocal %413 {approx = true} : vector<2x16x1xf32> -> vector<2x16x1xf32>
    %415 = vector.broadcast %414 : vector<2x16x1xf32> to vector<2x16x16xf32>
    %416 = arith.mulf %411, %415 : vector<2x16x16xf32>
    %417 = arith.truncf %416 : vector<2x16x16xf32> to vector<2x16x16xbf16>
    "tpu.trace_start"() <{level = 10 : i32, message = "hqk,hkd->hqd"}> : () -> ()
    %cst_129 = arith.constant dense<0.000000e+00> : vector<2x16x16xf32>
    %418 = tpu.matmul %417, %353, %cst_129 {dimension_numbers = #tpu.dot_dimension_numbers<[2], [1], [1], [2], [0, 0, 0, 1, 1, 2], [0], [0]>} : vector<2x16x16xbf16>, vector<2x16x16xbf16>, vector<2x16x16xf32> -> vector<2x16x16xf32>
    "tpu.trace_stop"() : () -> ()
    %419 = vector.broadcast %21 : vector<1x16x16xf32> to vector<2x16x16xf32>
    %420 = arith.mulf %416, %419 : vector<2x16x16xf32>
    %cst_130 = arith.constant dense<0.000000e+00> : vector<2x16xf32>
    %421 = vector.multi_reduction <add>, %420, %cst_130 [2] : vector<2x16x16xf32> to vector<2x16xf32>
    %422 = vector.shape_cast %421 : vector<2x16xf32> to vector<2x16x1xf32>
    %423 = vector.broadcast %26 : vector<1x16x16xf32> to vector<2x16x16xf32>
    %424 = arith.mulf %416, %423 : vector<2x16x16xf32>
    %cst_131 = arith.constant dense<0.000000e+00> : vector<2x16xf32>
    %425 = vector.multi_reduction <add>, %424, %cst_131 [2] : vector<2x16x16xf32> to vector<2x16xf32>
    %426 = vector.shape_cast %425 : vector<2x16xf32> to vector<2x16x1xf32>
    %427 = vector.broadcast %31 : vector<1x16x16xf32> to vector<2x16x16xf32>
    %428 = arith.mulf %416, %427 : vector<2x16x16xf32>
    %cst_132 = arith.constant dense<0.000000e+00> : vector<2x16xf32>
    %429 = vector.multi_reduction <add>, %428, %cst_132 [2] : vector<2x16x16xf32> to vector<2x16xf32>
    %430 = vector.shape_cast %429 : vector<2x16xf32> to vector<2x16x1xf32>
    %431 = vector.broadcast %36 : vector<1x16x16xf32> to vector<2x16x16xf32>
    %432 = arith.mulf %416, %431 : vector<2x16x16xf32>
    %cst_133 = arith.constant dense<0.000000e+00> : vector<2x16xf32>
    %433 = vector.multi_reduction <add>, %432, %cst_133 [2] : vector<2x16x16xf32> to vector<2x16xf32>
    %434 = vector.shape_cast %433 : vector<2x16xf32> to vector<2x16x1xf32>
    %435 = vector.broadcast %41 : vector<1x16x16xf32> to vector<2x16x16xf32>
    %436 = arith.mulf %416, %435 : vector<2x16x16xf32>
    %cst_134 = arith.constant dense<0.000000e+00> : vector<2x16xf32>
    %437 = vector.multi_reduction <add>, %436, %cst_134 [2] : vector<2x16x16xf32> to vector<2x16xf32>
    %438 = vector.shape_cast %437 : vector<2x16xf32> to vector<2x16x1xf32>
    %439 = vector.broadcast %46 : vector<1x16x16xf32> to vector<2x16x16xf32>
    %440 = arith.mulf %416, %439 : vector<2x16x16xf32>
    %cst_135 = arith.constant dense<0.000000e+00> : vector<2x16xf32>
    %441 = vector.multi_reduction <add>, %440, %cst_135 [2] : vector<2x16x16xf32> to vector<2x16xf32>
    %442 = vector.shape_cast %441 : vector<2x16xf32> to vector<2x16x1xf32>
    %443 = vector.broadcast %51 : vector<1x16x16xf32> to vector<2x16x16xf32>
    %444 = arith.mulf %416, %443 : vector<2x16x16xf32>
    %cst_136 = arith.constant dense<0.000000e+00> : vector<2x16xf32>
    %445 = vector.multi_reduction <add>, %444, %cst_136 [2] : vector<2x16x16xf32> to vector<2x16xf32>
    %446 = vector.shape_cast %445 : vector<2x16xf32> to vector<2x16x1xf32>
    %447 = vector.broadcast %56 : vector<1x16x16xf32> to vector<2x16x16xf32>
    %448 = arith.mulf %416, %447 : vector<2x16x16xf32>
    %cst_137 = arith.constant dense<0.000000e+00> : vector<2x16xf32>
    %449 = vector.multi_reduction <add>, %448, %cst_137 [2] : vector<2x16x16xf32> to vector<2x16xf32>
    %450 = vector.shape_cast %449 : vector<2x16xf32> to vector<2x16x1xf32>
    %451 = vector.broadcast %61 : vector<1x16x16xf32> to vector<2x16x16xf32>
    %452 = arith.mulf %416, %451 : vector<2x16x16xf32>
    %cst_138 = arith.constant dense<0.000000e+00> : vector<2x16xf32>
    %453 = vector.multi_reduction <add>, %452, %cst_138 [2] : vector<2x16x16xf32> to vector<2x16xf32>
    %454 = vector.shape_cast %453 : vector<2x16xf32> to vector<2x16x1xf32>
    %455 = tpu.concatenate %422, %426, %430, %434, %438, %442, %446, %450, %454 in 2 : vector<2x16x1xf32>, vector<2x16x1xf32>, vector<2x16x1xf32>, vector<2x16x1xf32>, vector<2x16x1xf32>, vector<2x16x1xf32>, vector<2x16x1xf32>, vector<2x16x1xf32>, vector<2x16x1xf32> -> vector<2x16x9xf32>
    %456 = arith.truncf %455 : vector<2x16x9xf32> to vector<2x16x9xbf16>
    %c1_139 = arith.constant 1 : index
    %c0_140 = arith.constant 0 : index
    %c0_141 = arith.constant 0 : index
    %457 = vector.load %arg13[%c1_139, %c0_140, %c0_141] : memref<2x9x16xbf16, #tpu.memory_space<vmem>>, vector<1x9x16xbf16>
    %458 = vector.shape_cast %457 : vector<1x9x16xbf16> to vector<9x16xbf16>
    "tpu.trace_start"() <{level = 10 : i32, message = "hqr,rd->hqd"}> : () -> ()
    %cst_142 = arith.constant dense<0.000000e+00> : vector<2x16x16xf32>
    %459 = tpu.matmul %456, %458, %cst_142 {dimension_numbers = #tpu.dot_dimension_numbers<[2], [0], [0, 1], [1], [0, 0, 0, 1, 1, 1], [], []>} : vector<2x16x9xbf16>, vector<9x16xbf16>, vector<2x16x16xf32> -> vector<2x16x16xf32>
    "tpu.trace_stop"() : () -> ()
    %460 = arith.addf %418, %459 : vector<2x16x16xf32>
    %461 = vector.extract_strided_slice %460 {offsets = [0, 0, 0], sizes = [1, 16, 16], strides = [1, 1, 1]} : vector<2x16x16xf32> to vector<1x16x16xf32>
    %462 = vector.shape_cast %461 : vector<1x16x16xf32> to vector<16x16xf32>
    %463 = vector.extract_strided_slice %460 {offsets = [1, 0, 0], sizes = [1, 16, 16], strides = [1, 1, 1]} : vector<2x16x16xf32> to vector<1x16x16xf32>
    %464 = vector.shape_cast %463 : vector<1x16x16xf32> to vector<16x16xf32>
    %465 = tpu.concatenate %462, %464 in 1 : vector<16x16xf32>, vector<16x16xf32> -> vector<16x32xf32>
    %466 = arith.truncf %465 : vector<16x32xf32> to vector<16x32xbf16>
    %c1_143 = arith.constant 1 : index
    %c0_144 = arith.constant 0 : index
    %c0_145 = arith.constant 0 : index
    %467 = vector.load %arg10[%c1_143, %c0_144, %c0_145] : memref<2x32x32xbf16, #tpu.memory_space<vmem>>, vector<1x32x32xbf16>
    %468 = vector.shape_cast %467 : vector<1x32x32xbf16> to vector<32x32xbf16>
    %cst_146 = arith.constant dense<0.000000e+00> : vector<16x32xf32>
    %469 = tpu.matmul %466, %468, %cst_146 {dimension_numbers = #tpu.dot_dimension_numbers<[1], [0], [0], [1], [0, 0, 1, 1], [], []>} : vector<16x32xbf16>, vector<32x32xbf16>, vector<16x32xf32> -> vector<16x32xf32>
    %c1_147 = arith.constant 1 : index
    %c0_148 = arith.constant 0 : index
    %c0_149 = arith.constant 0 : index
    %470 = vector.load %arg11[%c1_147, %c0_148, %c0_149] : memref<2x1x32xf32, #tpu.memory_space<vmem>>, vector<1x1x32xf32>
    %471 = vector.shape_cast %470 : vector<1x1x32xf32> to vector<1x32xf32>
    %472 = vector.broadcast %471 : vector<1x32xf32> to vector<16x32xf32>
    %473 = arith.addf %469, %472 : vector<16x32xf32>
    %474 = arith.addf %311, %473 : vector<16x32xf32>
    %c1_150 = arith.constant 1 : index
    %c0_151 = arith.constant 0 : index
    %c0_152 = arith.constant 0 : index
    %475 = vector.load %arg14[%c1_150, %c0_151, %c0_152] : memref<2x1x32xf32, #tpu.memory_space<vmem>>, vector<1x1x32xf32>
    %476 = vector.shape_cast %475 : vector<1x1x32xf32> to vector<1x32xf32>
    %c1_153 = arith.constant 1 : index
    %c0_154 = arith.constant 0 : index
    %c0_155 = arith.constant 0 : index
    %477 = vector.load %arg15[%c1_153, %c0_154, %c0_155] : memref<2x1x32xf32, #tpu.memory_space<vmem>>, vector<1x1x32xf32>
    %478 = vector.shape_cast %477 : vector<1x1x32xf32> to vector<1x32xf32>
    %cst_156 = arith.constant dense<0.000000e+00> : vector<16xf32>
    %479 = vector.multi_reduction <add>, %474, %cst_156 [1] : vector<16x32xf32> to vector<16xf32>
    %480 = vector.shape_cast %479 : vector<16xf32> to vector<16x1xf32>
    %cst_157 = arith.constant 3.200000e+01 : f32
    %481 = vector.broadcast %cst_157 : f32 to vector<16x1xf32>
    %482 = arith.divf %480, %481 : vector<16x1xf32>
    %483 = vector.broadcast %482 : vector<16x1xf32> to vector<16x32xf32>
    %484 = arith.subf %474, %483 : vector<16x32xf32>
    %485 = arith.mulf %484, %484 : vector<16x32xf32>
    %cst_158 = arith.constant dense<0.000000e+00> : vector<16xf32>
    %486 = vector.multi_reduction <add>, %485, %cst_158 [1] : vector<16x32xf32> to vector<16xf32>
    %487 = vector.shape_cast %486 : vector<16xf32> to vector<16x1xf32>
    %cst_159 = arith.constant 3.200000e+01 : f32
    %488 = vector.broadcast %cst_159 : f32 to vector<16x1xf32>
    %489 = arith.divf %487, %488 : vector<16x1xf32>
    %cst_160 = arith.constant 9.99999974E-6 : f32
    %490 = vector.broadcast %cst_160 : f32 to vector<16x1xf32>
    %491 = arith.addf %489, %490 : vector<16x1xf32>
    %492 = math.rsqrt %491 : vector<16x1xf32>
    %493 = vector.broadcast %492 : vector<16x1xf32> to vector<16x32xf32>
    %494 = arith.mulf %484, %493 : vector<16x32xf32>
    %495 = vector.broadcast %476 : vector<1x32xf32> to vector<16x32xf32>
    %496 = arith.mulf %494, %495 : vector<16x32xf32>
    %497 = vector.broadcast %478 : vector<1x32xf32> to vector<16x32xf32>
    %498 = arith.addf %496, %497 : vector<16x32xf32>
    %499 = vector.broadcast %1 : vector<16x1xf32> to vector<16x32xf32>
    %500 = arith.mulf %498, %499 : vector<16x32xf32>
    %c1_161 = arith.constant 1 : index
    %c0_162 = arith.constant 0 : index
    %c0_163 = arith.constant 0 : index
    %501 = vector.load %arg16[%c1_161, %c0_162, %c0_163] : memref<2x96x64xbf16, #tpu.memory_space<vmem>>, vector<1x96x64xbf16>
    %502 = vector.shape_cast %501 : vector<1x96x64xbf16> to vector<96x64xbf16>
    %c1_164 = arith.constant 1 : index
    %c0_165 = arith.constant 0 : index
    %c0_166 = arith.constant 0 : index
    %503 = vector.load %arg17[%c1_164, %c0_165, %c0_166] : memref<2x1x64xf32, #tpu.memory_space<vmem>>, vector<1x1x64xf32>
    %504 = vector.shape_cast %503 : vector<1x1x64xf32> to vector<1x64xf32>
    %cst_167 = arith.constant 0.000000e+00 : f32
    %505 = vector.broadcast %cst_167 : f32 to vector<1x32xf32>
    %506 = vector.extract_strided_slice %500 {offsets = [0, 0], sizes = [15, 32], strides = [1, 1]} : vector<16x32xf32> to vector<15x32xf32>
    %507 = tpu.concatenate %505, %506 in 0 : vector<1x32xf32>, vector<15x32xf32> -> vector<16x32xf32>
    %cst_168 = arith.constant 0.000000e+00 : f32
    %508 = vector.broadcast %cst_168 : f32 to vector<1x32xf32>
    %509 = vector.extract_strided_slice %500 {offsets = [1, 0], sizes = [15, 32], strides = [1, 1]} : vector<16x32xf32> to vector<15x32xf32>
    %510 = tpu.concatenate %509, %508 in 0 : vector<15x32xf32>, vector<1x32xf32> -> vector<16x32xf32>
    %511 = tpu.concatenate %507, %500, %510 in 1 : vector<16x32xf32>, vector<16x32xf32>, vector<16x32xf32> -> vector<16x96xf32>
    %512 = arith.truncf %511 : vector<16x96xf32> to vector<16x96xbf16>
    %cst_169 = arith.constant dense<0.000000e+00> : vector<16x64xf32>
    %513 = tpu.matmul %512, %502, %cst_169 {dimension_numbers = #tpu.dot_dimension_numbers<[1], [0], [0], [1], [0, 0, 1, 1], [], []>} : vector<16x96xbf16>, vector<96x64xbf16>, vector<16x64xf32> -> vector<16x64xf32>
    %514 = vector.broadcast %504 : vector<1x64xf32> to vector<16x64xf32>
    %515 = arith.addf %513, %514 : vector<16x64xf32>
    %cst_170 = arith.constant 0.000000e+00 : f32
    %516 = vector.broadcast %cst_170 : f32 to vector<16x64xf32>
    %517 = arith.maximumf %515, %516 : vector<16x64xf32>
    %518 = vector.broadcast %1 : vector<16x1xf32> to vector<16x64xf32>
    %519 = arith.mulf %517, %518 : vector<16x64xf32>
    %c1_171 = arith.constant 1 : index
    %c0_172 = arith.constant 0 : index
    %c0_173 = arith.constant 0 : index
    %520 = vector.load %arg18[%c1_171, %c0_172, %c0_173] : memref<2x192x32xbf16, #tpu.memory_space<vmem>>, vector<1x192x32xbf16>
    %521 = vector.shape_cast %520 : vector<1x192x32xbf16> to vector<192x32xbf16>
    %c1_174 = arith.constant 1 : index
    %c0_175 = arith.constant 0 : index
    %c0_176 = arith.constant 0 : index
    %522 = vector.load %arg19[%c1_174, %c0_175, %c0_176] : memref<2x1x32xf32, #tpu.memory_space<vmem>>, vector<1x1x32xf32>
    %523 = vector.shape_cast %522 : vector<1x1x32xf32> to vector<1x32xf32>
    %cst_177 = arith.constant 0.000000e+00 : f32
    %524 = vector.broadcast %cst_177 : f32 to vector<1x64xf32>
    %525 = vector.extract_strided_slice %519 {offsets = [0, 0], sizes = [15, 64], strides = [1, 1]} : vector<16x64xf32> to vector<15x64xf32>
    %526 = tpu.concatenate %524, %525 in 0 : vector<1x64xf32>, vector<15x64xf32> -> vector<16x64xf32>
    %cst_178 = arith.constant 0.000000e+00 : f32
    %527 = vector.broadcast %cst_178 : f32 to vector<1x64xf32>
    %528 = vector.extract_strided_slice %519 {offsets = [1, 0], sizes = [15, 64], strides = [1, 1]} : vector<16x64xf32> to vector<15x64xf32>
    %529 = tpu.concatenate %528, %527 in 0 : vector<15x64xf32>, vector<1x64xf32> -> vector<16x64xf32>
    %530 = tpu.concatenate %526, %519, %529 in 1 : vector<16x64xf32>, vector<16x64xf32>, vector<16x64xf32> -> vector<16x192xf32>
    %531 = arith.truncf %530 : vector<16x192xf32> to vector<16x192xbf16>
    %cst_179 = arith.constant dense<0.000000e+00> : vector<16x32xf32>
    %532 = tpu.matmul %531, %521, %cst_179 {dimension_numbers = #tpu.dot_dimension_numbers<[1], [0], [0], [1], [0, 0, 1, 1], [], []>} : vector<16x192xbf16>, vector<192x32xbf16>, vector<16x32xf32> -> vector<16x32xf32>
    %533 = vector.broadcast %523 : vector<1x32xf32> to vector<16x32xf32>
    %534 = arith.addf %532, %533 : vector<16x32xf32>
    %535 = vector.broadcast %1 : vector<16x1xf32> to vector<16x32xf32>
    %536 = arith.mulf %534, %535 : vector<16x32xf32>
    %537 = arith.addf %498, %536 : vector<16x32xf32>
    %c1_180 = arith.constant 1 : index
    %c0_181 = arith.constant 0 : index
    %c0_182 = arith.constant 0 : index
    %538 = vector.load %arg20[%c1_180, %c0_181, %c0_182] : memref<2x1x32xf32, #tpu.memory_space<vmem>>, vector<1x1x32xf32>
    %539 = vector.shape_cast %538 : vector<1x1x32xf32> to vector<1x32xf32>
    %c1_183 = arith.constant 1 : index
    %c0_184 = arith.constant 0 : index
    %c0_185 = arith.constant 0 : index
    %540 = vector.load %arg21[%c1_183, %c0_184, %c0_185] : memref<2x1x32xf32, #tpu.memory_space<vmem>>, vector<1x1x32xf32>
    %541 = vector.shape_cast %540 : vector<1x1x32xf32> to vector<1x32xf32>
    %cst_186 = arith.constant dense<0.000000e+00> : vector<16xf32>
    %542 = vector.multi_reduction <add>, %537, %cst_186 [1] : vector<16x32xf32> to vector<16xf32>
    %543 = vector.shape_cast %542 : vector<16xf32> to vector<16x1xf32>
    %cst_187 = arith.constant 3.200000e+01 : f32
    %544 = vector.broadcast %cst_187 : f32 to vector<16x1xf32>
    %545 = arith.divf %543, %544 : vector<16x1xf32>
    %546 = vector.broadcast %545 : vector<16x1xf32> to vector<16x32xf32>
    %547 = arith.subf %537, %546 : vector<16x32xf32>
    %548 = arith.mulf %547, %547 : vector<16x32xf32>
    %cst_188 = arith.constant dense<0.000000e+00> : vector<16xf32>
    %549 = vector.multi_reduction <add>, %548, %cst_188 [1] : vector<16x32xf32> to vector<16xf32>
    %550 = vector.shape_cast %549 : vector<16xf32> to vector<16x1xf32>
    %cst_189 = arith.constant 3.200000e+01 : f32
    %551 = vector.broadcast %cst_189 : f32 to vector<16x1xf32>
    %552 = arith.divf %550, %551 : vector<16x1xf32>
    %cst_190 = arith.constant 9.99999974E-6 : f32
    %553 = vector.broadcast %cst_190 : f32 to vector<16x1xf32>
    %554 = arith.addf %552, %553 : vector<16x1xf32>
    %555 = math.rsqrt %554 : vector<16x1xf32>
    %556 = vector.broadcast %555 : vector<16x1xf32> to vector<16x32xf32>
    %557 = arith.mulf %547, %556 : vector<16x32xf32>
    %558 = vector.broadcast %539 : vector<1x32xf32> to vector<16x32xf32>
    %559 = arith.mulf %557, %558 : vector<16x32xf32>
    %560 = vector.broadcast %541 : vector<1x32xf32> to vector<16x32xf32>
    %561 = arith.addf %559, %560 : vector<16x32xf32>
    %562 = vector.broadcast %1 : vector<16x1xf32> to vector<16x32xf32>
    %563 = arith.mulf %561, %562 : vector<16x32xf32>
    %564 = arith.truncf %563 : vector<16x32xf32> to vector<16x32xbf16>
    %c0_191 = arith.constant 0 : index
    %c0_192 = arith.constant 0 : index
    %565 = vector.load %arg22[%c0_191, %c0_192] : memref<32x128xbf16, #tpu.memory_space<vmem>>, vector<32x128xbf16>
    %cst_193 = arith.constant dense<0.000000e+00> : vector<16x128xf32>
    %566 = tpu.matmul %564, %565, %cst_193 {dimension_numbers = #tpu.dot_dimension_numbers<[1], [0], [0], [1], [0, 0, 1, 1], [], []>} : vector<16x32xbf16>, vector<32x128xbf16>, vector<16x128xf32> -> vector<16x128xf32>
    %c0_194 = arith.constant 0 : index
    %c0_195 = arith.constant 0 : index
    %567 = vector.load %arg23[%c0_194, %c0_195] : memref<1x128xf32, #tpu.memory_space<vmem>>, vector<1x128xf32>
    %568 = vector.broadcast %567 : vector<1x128xf32> to vector<16x128xf32>
    %569 = arith.addf %566, %568 : vector<16x128xf32>
    %cst_196 = arith.constant dense<0xFF800000> : vector<16xf32>
    %570 = vector.multi_reduction <maximumf>, %569, %cst_196 [1] : vector<16x128xf32> to vector<16xf32>
    %571 = vector.shape_cast %570 : vector<16xf32> to vector<16x1xf32>
    %572 = vector.broadcast %571 : vector<16x1xf32> to vector<16x128xf32>
    %573 = arith.subf %569, %572 : vector<16x128xf32>
    %574 = math.exp %573 : vector<16x128xf32>
    %cst_197 = arith.constant dense<0.000000e+00> : vector<16xf32>
    %575 = vector.multi_reduction <add>, %574, %cst_197 [1] : vector<16x128xf32> to vector<16xf32>
    %576 = vector.shape_cast %575 : vector<16xf32> to vector<16x1xf32>
    %577 = math.log %576 : vector<16x1xf32>
    %578 = vector.broadcast %577 : vector<16x1xf32> to vector<16x128xf32>
    %579 = arith.subf %573, %578 : vector<16x128xf32>
    %c0_198 = arith.constant 0 : index
    %c0_199 = arith.constant 0 : index
    %c0_200 = arith.constant 0 : index
    %580 = vector.load %arg24[%c0_198, %c0_199, %c0_200] : memref<1x16x128xf32, #tpu.memory_space<vmem>>, vector<1x16x128xf32>
    %581 = vector.shape_cast %580 : vector<1x16x128xf32> to vector<16x128xf32>
    %582 = vector.shape_cast %579 : vector<16x128xf32> to vector<1x16x128xf32>
    tpu.vector_store %arg24[%c0_198, %c0_199, %c0_200], %582 {strides = array<i32>} : memref<1x16x128xf32, #tpu.memory_space<vmem>>, vector<1x16x128xf32>,
    return
  }
  func.func @transform_0(%arg0: i32) -> (i32, i32, i32) {
    %c0_i32 = arith.constant 0 : i32
    %c0_i32_0 = arith.constant 0 : i32
    %c0_i32_1 = arith.constant 0 : i32
    return %arg0, %c0_i32, %c0_i32_0 : i32, i32, i32
  }
  func.func @transform_1(%arg0: i32) -> (i32, i32, i32) {
    %c0_i32 = arith.constant 0 : i32
    %c0_i32_0 = arith.constant 0 : i32
    %c0_i32_1 = arith.constant 0 : i32
    return %arg0, %c0_i32, %c0_i32_0 : i32, i32, i32
  }
  func.func @transform_2(%arg0: i32) -> (i32, i32, i32) {
    %c0_i32 = arith.constant 0 : i32
    %c0_i32_0 = arith.constant 0 : i32
    %c0_i32_1 = arith.constant 0 : i32
    return %arg0, %c0_i32, %c0_i32_0 : i32, i32, i32
  }
  func.func @transform_3(%arg0: i32) -> (i32, i32, i32) {
    %c0_i32 = arith.constant 0 : i32
    %c0_i32_0 = arith.constant 0 : i32
    %c0_i32_1 = arith.constant 0 : i32
    %c0_i32_2 = arith.constant 0 : i32
    return %c0_i32, %c0_i32_0, %c0_i32_1 : i32, i32, i32
  }
  func.func @transform_4(%arg0: i32) -> (i32, i32, i32) {
    %c0_i32 = arith.constant 0 : i32
    %c0_i32_0 = arith.constant 0 : i32
    %c0_i32_1 = arith.constant 0 : i32
    %c0_i32_2 = arith.constant 0 : i32
    return %c0_i32, %c0_i32_0, %c0_i32_1 : i32, i32, i32
  }
  func.func @transform_5(%arg0: i32) -> (i32, i32, i32) {
    %c0_i32 = arith.constant 0 : i32
    %c0_i32_0 = arith.constant 0 : i32
    %c0_i32_1 = arith.constant 0 : i32
    %c0_i32_2 = arith.constant 0 : i32
    return %c0_i32, %c0_i32_0, %c0_i32_1 : i32, i32, i32
  }
  func.func @transform_6(%arg0: i32) -> (i32, i32, i32) {
    %c0_i32 = arith.constant 0 : i32
    %c0_i32_0 = arith.constant 0 : i32
    %c0_i32_1 = arith.constant 0 : i32
    %c0_i32_2 = arith.constant 0 : i32
    return %c0_i32, %c0_i32_0, %c0_i32_1 : i32, i32, i32
  }
  func.func @transform_7(%arg0: i32) -> (i32, i32, i32) {
    %c0_i32 = arith.constant 0 : i32
    %c0_i32_0 = arith.constant 0 : i32
    %c0_i32_1 = arith.constant 0 : i32
    %c0_i32_2 = arith.constant 0 : i32
    return %c0_i32, %c0_i32_0, %c0_i32_1 : i32, i32, i32
  }
  func.func @transform_8(%arg0: i32) -> (i32, i32, i32) {
    %c0_i32 = arith.constant 0 : i32
    %c0_i32_0 = arith.constant 0 : i32
    %c0_i32_1 = arith.constant 0 : i32
    %c0_i32_2 = arith.constant 0 : i32
    return %c0_i32, %c0_i32_0, %c0_i32_1 : i32, i32, i32
  }
  func.func @transform_9(%arg0: i32) -> (i32, i32, i32) {
    %c0_i32 = arith.constant 0 : i32
    %c0_i32_0 = arith.constant 0 : i32
    %c0_i32_1 = arith.constant 0 : i32
    %c0_i32_2 = arith.constant 0 : i32
    return %c0_i32, %c0_i32_0, %c0_i32_1 : i32, i32, i32
  }
  func.func @transform_10(%arg0: i32) -> (i32, i32, i32) {
    %c0_i32 = arith.constant 0 : i32
    %c0_i32_0 = arith.constant 0 : i32
    %c0_i32_1 = arith.constant 0 : i32
    %c0_i32_2 = arith.constant 0 : i32
    return %c0_i32, %c0_i32_0, %c0_i32_1 : i32, i32, i32
  }
  func.func @transform_11(%arg0: i32) -> (i32, i32, i32) {
    %c0_i32 = arith.constant 0 : i32
    %c0_i32_0 = arith.constant 0 : i32
    %c0_i32_1 = arith.constant 0 : i32
    %c0_i32_2 = arith.constant 0 : i32
    return %c0_i32, %c0_i32_0, %c0_i32_1 : i32, i32, i32
  }
  func.func @transform_12(%arg0: i32) -> (i32, i32, i32) {
    %c0_i32 = arith.constant 0 : i32
    %c0_i32_0 = arith.constant 0 : i32
    %c0_i32_1 = arith.constant 0 : i32
    %c0_i32_2 = arith.constant 0 : i32
    return %c0_i32, %c0_i32_0, %c0_i32_1 : i32, i32, i32
  }
  func.func @transform_13(%arg0: i32) -> (i32, i32, i32) {
    %c0_i32 = arith.constant 0 : i32
    %c0_i32_0 = arith.constant 0 : i32
    %c0_i32_1 = arith.constant 0 : i32
    %c0_i32_2 = arith.constant 0 : i32
    return %c0_i32, %c0_i32_0, %c0_i32_1 : i32, i32, i32
  }
  func.func @transform_14(%arg0: i32) -> (i32, i32, i32) {
    %c0_i32 = arith.constant 0 : i32
    %c0_i32_0 = arith.constant 0 : i32
    %c0_i32_1 = arith.constant 0 : i32
    %c0_i32_2 = arith.constant 0 : i32
    return %c0_i32, %c0_i32_0, %c0_i32_1 : i32, i32, i32
  }
  func.func @transform_15(%arg0: i32) -> (i32, i32, i32) {
    %c0_i32 = arith.constant 0 : i32
    %c0_i32_0 = arith.constant 0 : i32
    %c0_i32_1 = arith.constant 0 : i32
    %c0_i32_2 = arith.constant 0 : i32
    return %c0_i32, %c0_i32_0, %c0_i32_1 : i32, i32, i32
  }
  func.func @transform_16(%arg0: i32) -> (i32, i32, i32) {
    %c0_i32 = arith.constant 0 : i32
    %c0_i32_0 = arith.constant 0 : i32
    %c0_i32_1 = arith.constant 0 : i32
    %c0_i32_2 = arith.constant 0 : i32
    return %c0_i32, %c0_i32_0, %c0_i32_1 : i32, i32, i32
  }
  func.func @transform_17(%arg0: i32) -> (i32, i32, i32) {
    %c0_i32 = arith.constant 0 : i32
    %c0_i32_0 = arith.constant 0 : i32
    %c0_i32_1 = arith.constant 0 : i32
    %c0_i32_2 = arith.constant 0 : i32
    return %c0_i32, %c0_i32_0, %c0_i32_1 : i32, i32, i32
  }
  func.func @transform_18(%arg0: i32) -> (i32, i32, i32) {
    %c0_i32 = arith.constant 0 : i32
    %c0_i32_0 = arith.constant 0 : i32
    %c0_i32_1 = arith.constant 0 : i32
    %c0_i32_2 = arith.constant 0 : i32
    return %c0_i32, %c0_i32_0, %c0_i32_1 : i32, i32, i32
  }
  func.func @transform_19(%arg0: i32) -> (i32, i32, i32) {
    %c0_i32 = arith.constant 0 : i32
    %c0_i32_0 = arith.constant 0 : i32
    %c0_i32_1 = arith.constant 0 : i32
    %c0_i32_2 = arith.constant 0 : i32
    return %c0_i32, %c0_i32_0, %c0_i32_1 : i32, i32, i32
  }
  func.func @transform_20(%arg0: i32) -> (i32, i32, i32) {
    %c0_i32 = arith.constant 0 : i32
    %c0_i32_0 = arith.constant 0 : i32
    %c0_i32_1 = arith.constant 0 : i32
    %c0_i32_2 = arith.constant 0 : i32
    return %c0_i32, %c0_i32_0, %c0_i32_1 : i32, i32, i32
  }
  func.func @transform_21(%arg0: i32) -> (i32, i32) {
    %c0_i32 = arith.constant 0 : i32
    %c0_i32_0 = arith.constant 0 : i32
    %c0_i32_1 = arith.constant 0 : i32
    return %c0_i32, %c0_i32_0 : i32, i32
  }
  func.func @transform_22(%arg0: i32) -> (i32, i32) {
    %c0_i32 = arith.constant 0 : i32
    %c0_i32_0 = arith.constant 0 : i32
    %c0_i32_1 = arith.constant 0 : i32
    return %c0_i32, %c0_i32_0 : i32, i32
  }
  func.func @transform_23(%arg0: i32) -> (i32, i32, i32) {
    %c0_i32 = arith.constant 0 : i32
    %c0_i32_0 = arith.constant 0 : i32
    %c0_i32_1 = arith.constant 0 : i32
    return %arg0, %c0_i32, %c0_i32_0 : i32, i32, i32
  }
}

</mosaic_0001>

<bundles_post_ra>
// kernel: phonemes_predictor_forward.1
= control target key start
LH: loop header
LB: loop body
LE: loop exit
PB: predicated region body
PF: predicated region fallthrough
CT: control target
= control target key end

     0   :  { %s5301_s0 = inlined_call_operand.vmem [shape: f32[2,16,32], index: 0, kind: input, shape index: {}]   ;;  %s5302_s1 = inlined_call_operand.vmem [shape: f32[2,16,1], index: 1, kind: input, shape index: {}]   ;;  %s5303_s2 = inlined_call_operand.vmem [shape: f32[2,1,16], index: 2, kind: input, shape index: {}]   ;;  %s5304_s3 = inlined_call_operand.vmem [shape: bf16[2,32,32], index: 3, kind: input, shape index: {}]   ;;  %s5305_s4 = inlined_call_operand.vmem [shape: f32[2,1,32], index: 4, kind: input, shape index: {}]   ;;  %s5306_s5 = inlined_call_operand.vmem [shape: bf16[2,32,32], index: 5, kind: input, shape index: {}]   ;;  %s5307_s6 = inlined_call_operand.vmem [shape: f32[2,1,32], index: 6, kind: input, shape index: {}]   ;;  %s5308_s7 = inlined_call_operand.vmem [shape: bf16[2,32,32], index: 7, kind: input, shape index: {}]   ;;  %s5309_s8 = inlined_call_operand.vmem [shape: f32[2,1,32], index: 8, kind: input, shape index: {}]   ;;  %s5310_s9 = inlined_call_operand.vmem [shape: bf16[2,32,32], index: 9, kind: input, shape index: {}]   ;;  %s5311_s10 = inlined_call_operand.vmem [shape: f32[2,1,32], index: 10, kind: input, shape index: {}]   ;;  %s5312_s11 = inlined_call_operand.vmem [shape: bf16[2,9,16], index: 11, kind: input, shape index: {}]   ;;  %s5313_s12 = inlined_call_operand.vmem [shape: bf16[2,9,16], index: 12, kind: input, shape index: {}]   ;;  %s5314_s13 = inlined_call_operand.vmem [shape: f32[2,1,32], index: 13, kind: input, shape index: {}]   ;;  %s5315_s14 = inlined_call_operand.vmem [shape: f32[2,1,32], index: 14, kind: input, shape index: {}]   ;;  %s5316_s15 = inlined_call_operand.vmem [shape: bf16[2,96,64], index: 15, kind: input, shape index: {}]   ;;  %s5317_s16 = inlined_call_operand.vmem [shape: f32[2,1,64], index: 16, kind: input, shape index: {}]   ;;  %s5318_s17 = inlined_call_operand.vmem [shape: bf16[2,192,32], index: 17, kind: input, shape index: {}]   ;;  %s5319_s18 = inlined_call_operand.vmem [shape: f32[2,1,32], index: 18, kind: input, shape index: {}]   ;;  %s5320_s19 = inlined_call_operand.vmem [shape: f32[2,1,32], index: 19, kind: input, shape index: {}]   ;;  %s5321_s20 = inlined_call_operand.vmem [shape: f32[2,1,32], index: 20, kind: input, shape index: {}]   ;;  %s5322_s21 = inlined_call_operand.vmem [shape: bf16[32,128], index: 21, kind: input, shape index: {}]   ;;  %s5323_s22 = inlined_call_operand.vmem [shape: f32[1,128], index: 22, kind: input, shape index: {}]   ;;  %s5324_s23 = inlined_call_operand.vmem [shape: f32[2,16,128], index: 23, kind: output, shape index: {}]  }
   0x1   :  { %5347 = sst [smem:[#allocation4_spill]] %s5301_s0 }
   0x2   :  { %5348 = sst [smem:[#allocation5_spill]] %s5302_s1 }
   0x3   :  { %5349 = sst [smem:[#allocation6_spill]] %s5303_s2 }
   0x4   :  { %5350 = sst [smem:[#allocation7_spill]] %s5304_s3 }
   0x5   :  { %5351 = sst [smem:[#allocation8_spill]] %s5305_s4  ;;  %s4246_s4 = smov 0  }
   0x6   :  { %5352 = sst [smem:[#allocation9_spill]] %s5306_s5 }
   0x7   :  { %5353 = sst [smem:[#allocation10_spill]] %s5307_s6 }
   0x8   :  { %5354 = sst [smem:[#allocation11_spill]] %s5308_s7 }
   0x9   :  { %5355 = sst [smem:[#allocation12_spill]] %s5324_s23 }
   0xa LB: > { %5356 = sst [smem:[#allocation2_spill]] %s4108_s4  ;;  %s3435_s30 = sadd.s32 4294967295, %s4108_s4   ;;  %s4108_s4 = sphi %s4246_s4, %s33_s4  }
   0xb   : > { %p3439_p0 = scmp.ge.s32.totalorder %s4108_s4, 1  ;;  %p655_p1 = scmp.lt.s32.totalorder %s4108_s4, 3 }
   0xd   : > { %p656_p2 = pnand %p3439_p0, %p655_p1 }
   0xf   : > { %659 = sbr.rel (%p656_p2) target bundleno = 5515 (0x158b), region = 112 }
  0x14   : > { %p727_p3 = scmp.lt.s32.totalorder %s3435_s30, 1  ;;  %v4110_v0 = vmov 0   ;;  %s5358_s1 = sld [smem:[#allocation6_spill]]  ;;  %vm852_vm0 = vcmask 261120   ;;  %v3493_v16 = vld [vmem:[%s5312_s11] sm:$0xf] }
  0x15   : > { %3878 = vset.pattern.permute.xlu0 %v4110_v0  ;;  %3889 = vset.pattern.permute.xlu2 %v4110_v0  ;;  %s5359_s27 = sld [smem:[#allocation5_spill]]  ;;  %v3802_v17 = vld [vmem:[%s5312_s11] sm:$0x10]  ;;  %vm993_vm1 = vcmask 130048   ;;  %v4024_v28 = vld [vmem:[%s5309_s8] ss:$0 sm:$0xff] }
  0x16   : > { %s5400_s30 = smov (!%p727_p3, %s3435_s30), 1  ;;  %s5360_s3 = sld [smem:[#allocation7_spill]]  ;;  %v3494_v18 = vor.u32 %v3802_v17, %v3493_v16  ;;  %v4112_v56 = vmov 4   ;;  %v4113_v57 = vmov 1   ;;  %v4114_v17 = vmov 5  }
  0x17   : > { %s4259_s24 = sshll.u32 %s5400_s30, 4  ;;  %s5361_s23 = sld [smem:[#allocation9_spill]]  ;;  %3893 = vset.pattern.permute.xlu1 %v4112_v56 }
  0x18   : > { %5357 = sst [smem:[#allocation3_spill]] %s4259_s24  ;;  %v1001_v19 = vsel %vm993_vm1, %v3494_v18, 0  ;;  %v4115_v18 = vmov 6   ;;  %s5336_s28 = smov 32  }
  0x19   : > { %s5362_s26 = sld [smem:[#allocation11_spill]]  ;;  %1010 = vmatpush.bf16.xpose.msra.mxu3 %v1001_v19  ;;  %v4116_v19 = vmov 2  }
  0x1a   : > { %s5363_s25 = sld [smem:[#allocation4_spill]]  ;;  %s5367_s29 = scalar_lea.vmem %s5358_s1, %s5400_s30 }
  0x1b   : > { %s736_s7 = scalar_lea.vmem %s5359_s27, %s4259_s24  ;;  %s5364_s4 = sld [smem:[#allocation8_spill]] }
  0x1c   : > { %v746_v1 = vld [vmem:[%s736_s7] sm:$0xff]  ;;  %v747_v2 = vld [vmem:[%s736_s7 + $0x8] sm:$0xff]  ;;  %s5338_s27 = smov 112   ;;  %s5337_s7 = smov 16  }
  0x1d   : > { %751 = vperm.xlu0 %3878, %v746_v1   ;;  %v3797_v3 = vld [vmem:[%s5360_s3 + $0x8] sm:$0xff]  ;;  %v3796_v6 = vld [vmem:[%s5360_s3] sm:$0xff] }
  0x1e   : > { %v3799_v4 = vld [vmem:[%s5361_s23 + $0x8] sm:$0xff]  ;;  %862 = vmatpush.bf16.msra.mxu0 %v3797_v3  ;;  %v3798_v7 = vld [vmem:[%s5361_s23] sm:$0xff] }
  0x1f   : > { %v3801_v5 = vld [vmem:[%s5362_s26 + $0x8] sm:$0xff]  ;;  %896 = vmatpush.bf16.msra.mxu1 %v3799_v4  ;;  %v3800_v8 = vld [vmem:[%s5362_s26] sm:$0xff] }
  0x20   : > { %930 = vmatpush.bf16.msra.mxu2 %v3801_v5  ;;  %s731_s5 = scalar_lea.vmem %s5363_s25, %s4259_s24  ;;  %s5366_s24 = sld [smem:[#allocation10_spill]] }
  0x21   : > { %v766_v10 = vld [vmem:[%s731_s5] sm:$0xff]  ;;  %v767_v11 = vld [vmem:[%s731_s5 + $0x8] sm:$0xff]  ;;  %s5365_s0 = smov %s5364_s4  ;;  %s5368_s25 = smov 64  }
  0x22   : > { %863 = vmatpush.bf16.msra.mxu0 %v3796_v6  ;;  %v4022_v20 = vld [vmem:[%s5364_s4] ss:$0 sm:$0xff]  ;;  %s5369_s4 = smov 112  }
  0x23   : > { %897 = vmatpush.bf16.msra.mxu1 %v3798_v7 }
  0x24   : > { %931 = vmatpush.bf16.msra.mxu2 %v3800_v8 }
  0x25   : > { %756 = vperm.xlu0 %3878, %v747_v2  }
  0x26   : > { %v4023_v23 = vld [vmem:[%s5366_s24] ss:$0 sm:$0xff] }
  0x2d   : > { %3890 = vset.pattern.permute.xlu0 %v4113_v57 }
  0x8f   : > { %v4287_v9 = vpop.permute.xlu0 %751 }
  0x90   : > { %v4296_v13 = vmul.f32 %v766_v10, %v4287_v9 }
  0x97   : > { %v4293_v12 = vpop.permute.xlu0 %756 }
  0x98   : > { %v4299_v14 = vmul.f32 %v767_v11, %v4293_v12 }
  0x9a   : > { %v831_v15 = vpack.c.bf16 %v4299_v14, %v4296_v13 }
  0x9c   : > { %3472 = vmatmul.msk.bf16.vlgmr.msra.gmra.mxu0 %vm852_vm0, %v831_v15  ;;  %3481 = vmatmul.msk.bf16.vlgmr.msra.gmra.mxu1 %vm852_vm0, %v831_v15 }
  0x9d   : > { %3490 = vmatmul.msk.bf16.vlgmr.msra.gmra.mxu2 %vm852_vm0, %v831_v15 }
 0x119   : > { %v865_v21 = vpop.f32.mrf.mxu0  ;;  %v899_v22 = vpop.f32.mrf.mxu1 }
 0x11a   : > { %v866_v24 = vadd.f32 %v4022_v20, %v865_v21  ;;  %v900_v25 = vadd.f32 %v4023_v23, %v899_v22  ;;  %v4118_v21 = vmov 3  }
 0x11c   : > { %v938_v26 = vmul.f32 0.25, %v866_v24  ;;  %v960_v31 = vpack.c.bf16 %v900_v25, %v900_v25 }
 0x11e   : > { %v948_v34 = vpack.c.bf16 %v938_v26, %v938_v26  ;;  %v1048_v38 = vunpack.c.l.b16 %v960_v31  ;;  %v770_v31 = vlaneseq }
 0x120   : > { %v933_v27 = vpop.f32.mrf.mxu2  ;;  %v982_v42 = vunpack.c.l.b16 %v948_v34 }
 0x121   : > { %v867_v29 = vpop.f32.mrf.mxu0  ;;  %v901_v30 = vpop.f32.mrf.mxu1  ;;  %v4322_v37 = vadd.f32 %v4024_v28, %v933_v27 }
 0x122   : > { %v868_v32 = vadd.f32 %v4022_v20, %v867_v29  ;;  %v902_v33 = vadd.f32 %v4023_v23, %v901_v30  ;;  %v4117_v20 = vmov 8   ;;  %v4119_v23 = vmov 7  }
 0x123   : > { %v972_v46 = vpack.c.bf16 %v4322_v37, %v4322_v37 }
 0x124   : > { %v939_v35 = vmul.f32 0.25, %v868_v32  ;;  %v961_v36 = vpack.c.bf16 %v902_v33, %v902_v33  ;;  %v3884_v54 = vpack.i.bf16 %v902_v33, %v900_v25  ;;  %v771_v33 = vshrl.u32 %v770_v31, 7 }
 0x125   : > { %v1583_v52 = vunpack.c.l.b16 %v972_v46 }
 0x126   : > { %v949_v39 = vpack.c.bf16 %v939_v35, %v939_v35  ;;  %v1049_v40 = vunpack.c.l.b16 %v961_v36  ;;  %v3879_v41 = vpack.i.bf16 %v939_v35, %v938_v26  ;;  %v772_v35 = vadd.s32 8, %v771_v33 }
 0x128   : > { %v983_v43 = vunpack.c.l.b16 %v949_v39  ;;  %v935_v44 = vpop.f32.mrf.mxu2  ;;  %3880 = vrot.lane.b32.xlu1 %v3879_v41, %s5338_s27  ;;  %v1050_v45 = vpack.c.b16 %v1049_v40, %v1048_v38  ;;  %v774_v38 = vand.u32 127, %v770_v31 }
 0x129   : > { %v4327_v47 = vadd.f32 %v4024_v28, %v935_v44  ;;  %v4120_v44 = vmov 0.0  }
 0x12a   : > { %v1052_v48 = vsel %vm993_vm1, %v1050_v45, 0  ;;  %v986_v49 = vpack.c.b16 %v983_v43, %v982_v42  ;;  %v4395_v39 = vsub.s32 %v774_v38, %v772_v35 }
 0x12b   : > { %v973_v50 = vpack.c.bf16 %v4327_v47, %v4327_v47  ;;  %v3925_v51 = vpack.i.bf16 %v4327_v47, %v4322_v37  ;;  %1061 = vmatpush.bf16.xpose.msrb.mxu0 %v1052_v48 }
 0x12c   : > { %3495 = vmatmul.msk.bf16.vlgmr.msra.gmra.mxu3 %vm993_vm1, %v986_v49  ;;  %vm778_vm2 = vcmp.eq.s32.totalorder %v4395_v39, 4294967292  ;;  %vm784_vm3 = vcmp.eq.s32.totalorder %v4395_v39, 4294967293  ;;  %vm790_vm4 = vcmp.eq.s32.totalorder %v4395_v39, 4294967294  ;;  %vm796_vm5 = vcmp.eq.s32.totalorder %v4395_v39, 4294967295 }
 0x12d   : > { %v1584_v53 = vunpack.c.l.b16 %v973_v50  ;;  %v4410_v45 = vsel %vm778_vm2, 1.0, %v4120_v44  ;;  %v4414_v46 = vsel %vm784_vm3, 1.0, %v4120_v44  ;;  %v4418_v50 = vsel %vm790_vm4, 1.0, %v4120_v44 }
 0x12e   : > { %vm802_vm6 = vcmp.eq.s32.totalorder %v4395_v39, 0  ;;  %vm808_vm7 = vcmp.eq.s32.totalorder %v4395_v39, 1  ;;  %vm814_vm8 = vcmp.eq.s32.totalorder %v4395_v39, 2  ;;  %vm820_vm9 = vcmp.eq.s32.totalorder %v4395_v39, 3 }
 0x12f   : > { %v1585_v55 = vpack.c.b16 %v1584_v53, %v1583_v52  ;;  %vm826_vm12 = vcmp.eq.s32.totalorder %v4395_v39, 4 }
 0x130   : > { %3885 = vrot.lane.b32.xlu1 %v3884_v54, %s5338_s27 }
 0x132   : > { %3497 = vmatmul.msk.bf16.vlgmr.msrb.gmra.mxu0 %vm993_vm1, %v986_v49 }
 0x133   : > { %1597 = vmatpush.bf16.msra.mxu0 %v1585_v55 }
 0x19a   : > { %v3881_v58 = vpop.permute.xlu1 %3880 }
 0x19b   : > { %v3883_v59 = vunpack.i.h.bf16 %v3881_v58  ;;  %v3882_v60 = vunpack.i.l.bf16 %v3881_v58 }
 0x19d   : > { %v951_v61 = vpack.c.bf16 %v3883_v59, %v3883_v59  ;;  %v950_v62 = vpack.c.bf16 %v3882_v60, %v3882_v60  ;;  %v4429_v60 = vsel %vm796_vm5, 1.0, %v4120_v44 }
 0x19f   : > { %v985_v63 = vunpack.c.l.b16 %v951_v61  ;;  %v984_v1 = vunpack.c.l.b16 %v950_v62 }
 0x1a1   : > { %v987_v2 = vpack.c.b16 %v985_v63, %v984_v1 }
 0x1a2   : > { %v3886_v3 = vpop.permute.xlu1 %3885 }
 0x1a3   : > { %v3888_v4 = vunpack.i.h.bf16 %v3886_v3  ;;  %v3887_v5 = vunpack.i.l.bf16 %v3886_v3  ;;  %3496 = vmatmul.msk.bf16.gmra.mxu3 %vm993_vm1, %v987_v2 }
 0x1a5   : > { %v963_v6 = vpack.c.bf16 %v3888_v4, %v3888_v4  ;;  %v962_v7 = vpack.c.bf16 %v3887_v5, %v3887_v5  ;;  %v4440_v4 = vsub.s32 %v774_v38, %v771_v33 }
 0x1a7   : > { %v1070_v8 = vunpack.c.l.b16 %v962_v7  ;;  %v1071_v10 = vunpack.c.l.b16 %v963_v6  ;;  %v4446_v6 = vsel %vm808_vm7, 1.0, %v4120_v44  ;;  %vm777_vm10 = vcmp.eq.s32.totalorder %v4440_v4, 4294967292 }
 0x1a8   : > { %vm783_vm11 = vcmp.eq.s32.totalorder %v4440_v4, 4294967293  ;;  %v4460_v33 = vsel %vm777_vm10, 1.0, %v4120_v44  ;;  %vm789_vm13 = vcmp.eq.s32.totalorder %v4440_v4, 4294967294  ;;  %vm795_vm14 = vcmp.eq.s32.totalorder %v4440_v4, 4294967295 }
 0x1a9   : > { %v1072_v11 = vpack.c.b16 %v1071_v10, %v1070_v8  ;;  %v4450_v10 = vsel %vm814_vm8, 1.0, %v4120_v44  ;;  %v4468_v38 = vsel %vm783_vm11, 1.0, %v4120_v44  ;;  %vm801_vm2 = vcmp.eq.s32.totalorder %v4440_v4, 0 }
 0x1aa   : > { %vm807_vm3 = vcmp.eq.s32.totalorder %v4440_v4, 1  ;;  %vm813_vm4 = vcmp.eq.s32.totalorder %v4440_v4, 2  ;;  %vm819_vm5 = vcmp.eq.s32.totalorder %v4440_v4, 3  ;;  %vm1550_vm8 = vcmask 1043456  }
 0x1ab   : > { %v1074_v15 = vsel %vm993_vm1, %v1072_v11, 0  ;;  %vm1482_vm10 = vcmask 7168   ;;  %vm1487_vm11 = vcmask 15360  }
 0x1ac   : > { %1083 = vmatpush.bf16.xpose.msrb.mxu1 %v1074_v15  ;;  %v4455_v15 = vsel %vm820_vm9, 1.0, %v4120_v44  ;;  %vm1551_vm9 = vcmask 1044480  }
 0x1af   : > { %v1012_v16 = vpop.f32.mrf.mxu3  ;;  %v4397_v41 = vpop.f32.mrf.mxu0 }
 0x1b0   : > { %1163 = vperm.xlu1 %3893, %v1012_v16   ;;  %1091 = vperm.xlu0 %3890, %v1012_v16  }
 0x1b1   : > { %1024 = vperm.xlu2 %3889, %v1012_v16  }
 0x1b3   : > { %3498 = vmatmul.msk.bf16.vlgmr.msrb.gmra.mxu1 %vm993_vm1, %v987_v2  ;;  %v4434_v2 = vsel %vm802_vm6, 1.0, %v4120_v44  ;;  %vm825_vm6 = vcmp.eq.s32.totalorder %v4440_v4, 4 }
 0x1b7   : > { %v1014_v22 = vpop.f32.mrf.mxu3  ;;  %v1065_v53 = vpop.f32.mrf.mxu0 }
 0x1b8   : > { %3894 = vset.pattern.permute.xlu1 %v4114_v17  ;;  %3895 = vset.pattern.permute.xlu0 %v4115_v18 }
 0x1b9   : > { %3891 = vset.pattern.permute.xlu2 %v4116_v19  ;;  %1187 = vperm.xlu1 %3894, %v1012_v16  }
 0x1ba   : > { %1211 = vperm.xlu0 %3895, %v1012_v16   ;;  %1115 = vperm.xlu2 %3891, %v1012_v16  }
 0x1c1   : > { %3897 = vset.pattern.permute.xlu1 %v4117_v20 }
 0x1c2   : > { %3901 = vset.pattern.permute.xlu0 %v4118_v21  ;;  %3892 = vset.pattern.permute.xlu2 %v4118_v21 }
 0x1c3   : > { %1259 = vperm.xlu1 %3897, %v1012_v16   ;;  %1139 = vperm.xlu2 %3892, %v1012_v16  }
 0x1c4   : > { %1143 = vperm.xlu0 %3901, %v1014_v22  }
 0x1cb   : > { %3899 = vset.pattern.permute.xlu1 %v4113_v57  ;;  %3896 = vset.pattern.permute.xlu2 %v4119_v23 }
 0x1cc   : > { %1235 = vperm.xlu2 %3896, %v1012_v16   ;;  %1095 = vperm.xlu1 %3899, %v1014_v22  }
 0x1cd   : > { %3909 = vset.pattern.permute.xlu0 %v4116_v19 }
 0x1d4   : > { %3898 = vset.pattern.permute.xlu2 %v4110_v0  ;;  %3900 = vset.pattern.permute.xlu1 %v4116_v19 }
 0x1d5   : > { %1119 = vperm.xlu1 %3900, %v1014_v22   ;;  %1029 = vperm.xlu2 %3898, %v1014_v22  }
 0x1dd   : > { %3904 = vset.pattern.permute.xlu1 %v4115_v18  ;;  %3902 = vset.pattern.permute.xlu2 %v4112_v56 }
 0x1de   : > { %1215 = vperm.xlu1 %3904, %v1014_v22   ;;  %1167 = vperm.xlu2 %3902, %v1014_v22  }
 0x1e6   : > { %3905 = vset.pattern.permute.xlu1 %v4119_v23  ;;  %3903 = vset.pattern.permute.xlu2 %v4114_v17 }
 0x1e7   : > { %1239 = vperm.xlu1 %3905, %v1014_v22   ;;  %1191 = vperm.xlu2 %3903, %v1014_v22  }
 0x1ef   : > { %3906 = vset.pattern.permute.xlu2 %v4117_v20  ;;  %3908 = vset.pattern.permute.xlu1 %v4113_v57 }
 0x1f0   : > { %1263 = vperm.xlu2 %3906, %v1014_v22  }
 0x1f8   : > { %3907 = vset.pattern.permute.xlu2 %v4110_v0 }
 0x20b   : > { %v4360_v24 = vpop.permute.xlu2 %1024 }
 0x214   : > { %v4364_v26 = vpop.permute.xlu2 %1115 }
 0x21d   : > { %v4375_v30 = vpop.permute.xlu2 %1139 }
 0x222   : > { %v4362_v25 = vpop.permute.xlu1 %1163  ;;  %v4392_v36 = vpop.permute.xlu0 %1091 }
 0x223   : > { %v1106_v39 = vmul.f32 %v4468_v38, %v4392_v36 }
 0x226   : > { %v4366_v27 = vpop.f32.mrf.mxu3  ;;  %v4386_v34 = vpop.permute.xlu2 %1235 }
 0x227   : > { %1123 = vperm.xlu0 %3909, %v4366_v27   ;;  %1099 = vperm.xlu1 %3908, %v4366_v27  }
 0x228   : > { %1034 = vperm.xlu2 %3907, %v4366_v27  }
 0x22b   : > { %v4371_v28 = vpop.permute.xlu1 %1187 }
 0x22c   : > { %v4407_v43 = vpop.permute.xlu0 %1211 }
 0x22e   : > { %v4373_v29 = vpop.f32.mrf.mxu3 }
 0x22f   : > { %3914 = vset.pattern.permute.xlu0 %v4110_v0  ;;  %3912 = vset.pattern.permute.xlu1 %v4114_v17  ;;  %v1030_v42 = vpop.permute.xlu2 %1029 }
 0x230   : > { %3910 = vset.pattern.permute.xlu2 %v4118_v21  ;;  %1195 = vperm.xlu1 %3912, %v4366_v27   ;;  %v1043_v49 = vmul.f32 %v4410_v45, %v1030_v42 }
 0x231   : > { %1147 = vperm.xlu2 %3910, %v4366_v27   ;;  %1039 = vperm.xlu0 %3914, %v4373_v29  }
 0x232   : > { %v1066_v54 = vadd.f32 %v1065_v53, %v1043_v49  ;;  %v4487_v53 = vsel %vm789_vm13, 1.0, %v4120_v44  ;;  %vm1497_vm13 = vcmask 31744  }
 0x235   : > { %v4383_v32 = vpop.permute.xlu1 %1259 }
 0x236   : > { %v1144_v61 = vpop.permute.xlu0 %1143 }
 0x237   : > { %v1155_v1 = vmul.f32 %v4429_v60, %v1144_v61 }
 0x238   : > { %3913 = vset.pattern.permute.xlu1 %v4115_v18  ;;  %v1168_v58 = vpop.permute.xlu2 %1167 }
 0x239   : > { %3911 = vset.pattern.permute.xlu2 %v4112_v56  ;;  %3918 = vset.pattern.permute.xlu0 %v4112_v56  ;;  %v1179_v5 = vmul.f32 %v4434_v2, %v1168_v58  ;;  %v1130_v58 = vmul.f32 %v4487_v53, %v4364_v26 }
 0x23a   : > { %1219 = vperm.xlu1 %3913, %v4366_v27   ;;  %1171 = vperm.xlu2 %3911, %v4366_v27  }
 0x23b   : > { %1175 = vperm.xlu0 %3918, %v4373_v29  }
 0x23e   : > { %v1096_v40 = vpop.permute.xlu1 %1095 }
 0x23f   : > { %v1107_v52 = vmul.f32 %v4414_v46, %v1096_v40  ;;  %v1042_v40 = vmul.f32 %v4460_v33, %v4360_v24 }
 0x241   : > { %v1111_v59 = vadd.f32 %v1107_v52, %v1066_v54  ;;  %v1192_v7 = vpop.permute.xlu2 %1191 }
 0x242   : > { %3916 = vset.pattern.permute.xlu1 %v4116_v19  ;;  %3915 = vset.pattern.permute.xlu2 %v4113_v57  ;;  %v1203_v11 = vmul.f32 %v4446_v6, %v1192_v7 }
 0x243   : > { %3919 = vset.pattern.permute.xlu0 %v4119_v23  ;;  %1127 = vperm.xlu1 %3916, %v4373_v29  }
 0x244   : > { %1103 = vperm.xlu2 %3915, %v4373_v29   ;;  %1243 = vperm.xlu0 %3919, %v4366_v27  }
 0x247   : > { %v1120_v48 = vpop.permute.xlu1 %1119 }
 0x248   : > { %v1131_v55 = vmul.f32 %v4418_v50, %v1120_v48  ;;  %v4474_v48 = vsel %vm826_vm12, 1.0, %v4120_v44  ;;  %vm1492_vm12 = vcmask 23552  }
 0x24a   : > { %v1135_v62 = vadd.f32 %v1131_v55, %v1111_v59  ;;  %v1264_v49 = vpop.permute.xlu2 %1263 }
 0x24b   : > { %3917 = vset.pattern.permute.xlu1 %v4118_v21  ;;  %v1275_v24 = vmul.f32 %v4474_v48, %v1264_v49 }
 0x24c   : > { %3920 = vset.pattern.permute.xlu2 %v4114_v17  ;;  %1151 = vperm.xlu1 %3917, %v4373_v29   ;;  %v1159_v3 = vadd.f32 %v1155_v1, %v1135_v62 }
 0x24d   : > { %1199 = vperm.xlu2 %3920, %v4373_v29   ;;  %3964 = vset.pattern.permute.xlu0 %v4112_v56 }
 0x24e   : > { %v1183_v8 = vadd.f32 %v1179_v5, %v1159_v3  ;;  %v4515_v3 = vsel %vm807_vm3, 1.0, %v4120_v44  ;;  %vm5335_vm3 = vcmask 56320  }
 0x250   : > { %v1216_v63 = vpop.permute.xlu1 %1215  ;;  %v1207_v22 = vadd.f32 %v1203_v11, %v1183_v8  ;;  %v4523_v8 = vsel %vm813_vm4, 1.0, %v4120_v44  ;;  %vm5334_vm4 = vcmask 64512  }
 0x251   : > { %v1227_v31 = vmul.f32 %v4450_v10, %v1216_v63  ;;  %v4510_v63 = vsel %vm801_vm2, 1.0, %v4120_v44  ;;  %vm1507_vm2 = vcmask 48128  }
 0x252   : > { %v1178_v5 = vmul.f32 %v4510_v63, %v4362_v25  ;;  %v4533_v25 = vsel %vm825_vm6, 1.0, %v4120_v44 }
 0x253   : > { %v1231_v42 = vadd.f32 %v1227_v31, %v1207_v22  ;;  %v4530_v22 = vsel %vm819_vm5, 1.0, %v4120_v44  ;;  %vm5333_vm5 = vcmask 72704  }
 0x254   : > { %3923 = vset.pattern.permute.xlu1 %v4119_v23  ;;  %v1250_v31 = vmul.f32 %v4530_v22, %v4386_v34 }
 0x255   : > { %3921 = vset.pattern.permute.xlu2 %v4115_v18  ;;  %1247 = vperm.xlu1 %3923, %v4373_v29  }
 0x256   : > { %1223 = vperm.xlu2 %3921, %v4373_v29  }
 0x259   : > { %v1240_v16 = vpop.permute.xlu1 %1239 }
 0x25a   : > { %v1251_v35 = vmul.f32 %v4455_v15, %v1240_v16  ;;  %v1226_v16 = vmul.f32 %v4523_v8, %v4407_v43 }
 0x25c   : > { %v1255_v52 = vadd.f32 %v1251_v35, %v1231_v42  ;;  %v1274_v35 = vmul.f32 %v4533_v25, %v4383_v32 }
 0x25d   : > { %3924 = vset.pattern.permute.xlu1 %v4117_v20 }
 0x25e   : > { %3922 = vset.pattern.permute.xlu2 %v4117_v20  ;;  %1271 = vperm.xlu1 %3924, %v4373_v29   ;;  %v4025_v29 = vld [vmem:[%s5367_s29] ss:$0 sm:$0xff]  ;;  %v1279_v36 = vadd.f32 %v1275_v24, %v1255_v52  ;;  %s5340_s29 = smov 64  }
 0x25f   : > { %1267 = vperm.xlu2 %3922, %v4366_v27   ;;  %v1064_v27 = vadd.f32 %v4397_v41, %v1042_v40  ;;  %v4490_v54 = vmul.f32 %v4025_v29, %v4293_v12  ;;  %v4498_v41 = vsel %vm795_vm14, 1.0, %v4120_v44  ;;  %v4540_v42 = vmul.f32 %v4025_v29, %v4287_v9 }
 0x260   : > { %v1154_v62 = vmul.f32 %v4498_v41, %v4375_v30  ;;  %v1202_v30 = vmul.f32 %v4515_v3, %v4371_v28  ;;  %vm1502_vm14 = vcmask 39936  }
 0x261   : > { %v1110_v55 = vadd.f32 %v1106_v39, %v1064_v27  ;;  %vm765_vm15 = vcmp.gt.f32.partialorder %v4490_v54, 0.0  ;;  %vm764_vm7 = vcmp.gt.f32.partialorder %v4540_v42, 0.0 }
 0x262   : > { %v4504_v61 = vsel %vm765_vm15, %v1279_v36, -10000.0 }
 0x263   : > { %v1134_v59 = vadd.f32 %v1130_v58, %v1110_v55  ;;  %v1293_v26 = vsel %vm993_vm1, %v4504_v61, -inf  ;;  %v1085_v55 = vpop.f32.mrf.mxu1 }
 0x265   : > { %v1158_v1 = vadd.f32 %v1154_v62, %v1134_v59 }
 0x266   : > { %3961 = vset.pattern.permute.xlu1 %v4113_v57 }
 0x267   : > { %3960 = vset.pattern.permute.xlu2 %v4110_v0  ;;  %v1182_v7 = vadd.f32 %v1178_v5, %v1158_v1 }
 0x269   : > { %v1206_v11 = vadd.f32 %v1202_v30, %v1182_v7 }
 0x26b   : > { %v1230_v28 = vadd.f32 %v1226_v16, %v1206_v11 }
 0x26d   : > { %v1254_v40 = vadd.f32 %v1250_v31, %v1230_v28 }
 0x26e   : > { %1294 = vmax.xlane.f32.xlu0 %v1293_v26 }
 0x26f   : > { %v1278_v4 = vadd.f32 %v1274_v35, %v1254_v40 }
 0x271   : > { %v4545_v43 = vsel %vm764_vm7, %v1278_v4, -10000.0 }
 0x272   : > { %v1290_v44 = vsel %vm993_vm1, %v4545_v43, -inf }
 0x282   : > { %v1035_v49 = vpop.permute.xlu2 %1034 }
 0x283   : > { %v1044_v29 = vmul.f32 %v4460_v33, %v1035_v49 }
 0x285   : > { %v1086_v58 = vadd.f32 %v1085_v55, %v1044_v29 }
 0x288   : > { %1291 = vmax.xlane.f32.xlu2 %v1290_v44 }
 0x28b   : > { %v1148_v34 = vpop.permute.xlu2 %1147 }
 0x28c   : > { %v1156_v7 = vmul.f32 %v4498_v41, %v1148_v34  ;;  %v1087_v34 = vpop.f32.mrf.mxu1 }
 0x294   : > { %v1172_v39 = vpop.permute.xlu2 %1171 }
 0x295   : > { %v1180_v28 = vmul.f32 %v4510_v63, %v1172_v39 }
 0x299   : > { %v1124_v52 = vpop.permute.xlu0 %1123  ;;  %v1100_v32 = vpop.permute.xlu1 %1099 }
 0x29a   : > { %v1108_v24 = vmul.f32 %v4468_v38, %v1100_v32  ;;  %v1132_v26 = vmul.f32 %v4487_v53, %v1124_v52 }
 0x29c   : > { %v1112_v62 = vadd.f32 %v1108_v24, %v1086_v58 }
 0x29e   : > { %v1104_v27 = vpop.permute.xlu2 %1103  ;;  %v1136_v5 = vadd.f32 %v1132_v26, %v1112_v62 }
 0x29f   : > { %v1109_v26 = vmul.f32 %v4414_v46, %v1104_v27 }
 0x2a0   : > { %v1160_v11 = vadd.f32 %v1156_v7, %v1136_v5 }
 0x2a2   : > { %v1196_v36 = vpop.permute.xlu1 %1195  ;;  %v1184_v35 = vadd.f32 %v1180_v28, %v1160_v11 }
 0x2a3   : > { %v1040_v59 = vpop.permute.xlu0 %1039  ;;  %v1204_v40 = vmul.f32 %v4515_v3, %v1196_v36 }
 0x2a4   : > { %v1045_v44 = vmul.f32 %v4410_v45, %v1040_v59 }
 0x2a5   : > { %v1208_v49 = vadd.f32 %v1204_v40, %v1184_v35 }
 0x2a6   : > { %v1088_v55 = vadd.f32 %v1087_v34, %v1045_v44 }
 0x2a7   : > { %v1200_v1 = vpop.permute.xlu2 %1199 }
 0x2a8   : > { %v1113_v7 = vadd.f32 %v1109_v26, %v1088_v55  ;;  %v1205_v27 = vmul.f32 %v4446_v6, %v1200_v1 }
 0x2ac   : > { %v1220_v30 = vpop.permute.xlu1 %1219 }
 0x2ad   : > { %v1176_v16 = vpop.permute.xlu0 %1175  ;;  %v1228_v4 = vmul.f32 %v4523_v8, %v1220_v30 }
 0x2af   : > { %v1232_v29 = vadd.f32 %v1228_v4, %v1208_v49  ;;  %v1181_v4 = vmul.f32 %v4434_v2, %v1176_v16 }
 0x2b0   : > { %v1224_v31 = vpop.permute.xlu2 %1223 }
 0x2b5   : > { %v1128_v32 = vpop.permute.xlu1 %1127 }
 0x2b6   : > { %v1244_v52 = vpop.permute.xlu0 %1243  ;;  %v1133_v36 = vmul.f32 %v4418_v50, %v1128_v32 }
 0x2b7   : > { %v1252_v24 = vmul.f32 %v4530_v22, %v1244_v52  ;;  %v1229_v52 = vmul.f32 %v4450_v10, %v1224_v31 }
 0x2b8   : > { %v1137_v11 = vadd.f32 %v1133_v36, %v1113_v7 }
 0x2b9   : > { %v1256_v58 = vadd.f32 %v1252_v24, %v1232_v29  ;;  %v1268_v62 = vpop.permute.xlu2 %1267 }
 0x2ba   : > { %v1276_v39 = vmul.f32 %v4533_v25, %v1268_v62 }
 0x2bc   : > { %v1280_v5 = vadd.f32 %v1276_v39, %v1256_v58 }
 0x2be   : > { %v1152_v30 = vpop.permute.xlu1 %1151  ;;  %v1288_v59 = vsel %vm764_vm7, %v1280_v5, -10000.0 }
 0x2bf   : > { %v1157_v28 = vmul.f32 %v4429_v60, %v1152_v30  ;;  %v1296_v35 = vsel %vm993_vm1, %v1288_v59, -inf }
 0x2c0   : > { %1297 = vmax.xlane.f32.xlu1 %v1296_v35 }
 0x2c1   : > { %v1161_v40 = vadd.f32 %v1157_v28, %v1137_v11 }
 0x2c3   : > { %v1185_v49 = vadd.f32 %v1181_v4, %v1161_v40 }
 0x2c5   : > { %v1209_v32 = vadd.f32 %v1205_v27, %v1185_v49 }
 0x2c7   : > { %v1248_v44 = vpop.permute.xlu1 %1247  ;;  %v1233_v29 = vadd.f32 %v1229_v52, %v1209_v32 }
 0x2c8   : > { %v1253_v24 = vmul.f32 %v4455_v15, %v1248_v44 }
 0x2ca   : > { %v1257_v55 = vadd.f32 %v1253_v24, %v1233_v29 }
 0x2d0   : > { %v1272_v34 = vpop.permute.xlu1 %1271 }
 0x2d1   : > { %v1277_v58 = vmul.f32 %v4474_v48, %v1272_v34 }
 0x2d3   : > { %v1281_v62 = vadd.f32 %v1277_v58, %v1257_v55 }
 0x2d5   : > { %v1289_v39 = vsel %vm765_vm15, %v1281_v62, -10000.0 }
 0x2d6   : > { %v1299_v16 = vsel %vm993_vm1, %v1289_v39, -inf }
 0x2d7   : > { %1300 = vmax.xlane.f32.xlu2 %v1299_v16 }
 0x2e1   : > { %v1295_v26 = vpop.xlane.xlu0 %1294 }
 0x2e2   : > { %v1303_v1 = vsub.f32 %v4504_v61, %v1295_v26 }
 0x2e4   : > { %v1308_v36 = vmul.f32 1.442695, %v1303_v1 }
 0x2e6   : > { %4044 = vpow2.f32 %v1308_v36 }
 0x2ec   : > { %v4045_v31 = vpop.eup %4044 }
 0x2ed   : > { %v1317_v5 = vsel %vm993_vm1, %v4045_v31, 0.0 }
 0x2ee   : > { %1318 = vadd.xlane.f32.xlu0 %v1317_v5 }
 0x2fb   : > { %v1292_v7 = vpop.xlane.xlu2 %1291 }
 0x2fc   : > { %v1302_v30 = vsub.f32 %v4545_v43, %v1292_v7 }
 0x2fe   : > { %v1306_v11 = vmul.f32 1.442695, %v1302_v30 }
 0x300   : > { %4046 = vpow2.f32 %v1306_v11 }
 0x306   : > { %v4047_v28 = vpop.eup %4046 }
 0x307   : > { %v1314_v35 = vsel %vm993_vm1, %v4047_v28, 0.0 }
 0x308   : > { %1315 = vadd.xlane.f32.xlu2 %v1314_v35 }
 0x333   : > { %v1298_v40 = vpop.xlane.xlu1 %1297 }
 0x334   : > { %v1304_v4 = vsub.f32 %v1288_v59, %v1298_v40 }
 0x336   : > { %v1310_v49 = vmul.f32 1.442695, %v1304_v4 }
 0x338   : > { %4048 = vpow2.f32 %v1310_v49 }
 0x33e   : > { %v4577_v61 = vpop.eup %4048 }
 0x33f   : > { %v1320_v27 = vsel %vm993_vm1, %v4577_v61, 0.0 }
 0x340   : > { %1321 = vadd.xlane.f32.xlu1 %v1320_v27 }
 0x34a   : > { %v1301_v44 = vpop.xlane.xlu2 %1300 }
 0x34b   : > { %v1305_v32 = vsub.f32 %v1289_v39, %v1301_v44 }
 0x34d   : > { %v1312_v52 = vmul.f32 1.442695, %v1305_v32 }
 0x34f   : > { %4050 = vpow2.f32 %v1312_v52 }
 0x355   : > { %v4581_v43 = vpop.eup %4050 }
 0x356   : > { %v1323_v29 = vsel %vm993_vm1, %v4581_v43, 0.0 }
 0x357   : > { %1324 = vadd.xlane.f32.xlu2 %v1323_v29 }
 0x361   : > { %v1319_v24 = vpop.xlane.xlu0 %1318 }
 0x362   : > { %4052 = vrcp.f32 %v1319_v24 }
 0x368   : > { %v4053_v59 = vpop.eup %4052 }
 0x369   : > { %v1331_v55 = vmul.f32 %v4053_v59, %v4045_v31 }
 0x36b   : > { %v1335_v62 = vpack.c.bf16 %v1331_v55, %v1331_v55 }
 0x36d   : > { %v1579_v5 = vunpack.c.l.b16 %v1335_v62  ;;  %v1339_v62 = vmul.f32 %v4410_v45, %v1331_v55 }
 0x37b   : > { %v1316_v34 = vpop.xlane.xlu2 %1315 }
 0x37c   : > { %4054 = vrcp.f32 %v1316_v34 }
 0x382   : > { %v4055_v58 = vpop.eup %4054 }
 0x383   : > { %v1330_v16 = vmul.f32 %v4055_v58, %v4047_v28  ;;  %v1371_v58 = vmul.f32 %v4418_v50, %v1331_v55 }
 0x385   : > { %v1354_v26 = vmul.f32 %v4468_v38, %v1330_v16  ;;  %v1370_v39 = vmul.f32 %v4487_v53, %v1330_v16  ;;  %v1338_v1 = vmul.f32 %v4460_v33, %v1330_v16  ;;  %v1334_v36 = vpack.c.bf16 %v1330_v16, %v1330_v16 }
 0x386   : > { %v1402_v28 = vmul.f32 %v4510_v63, %v1330_v16  ;;  %v1418_v40 = vmul.f32 %v4515_v3, %v1330_v16  ;;  %v1386_v4 = vmul.f32 %v4498_v41, %v1330_v16  ;;  %v1450_v32 = vmul.f32 %v4530_v22, %v1330_v16 }
 0x387   : > { %v1358_v7 = vsel %vm993_vm1, %v1354_v26, 0.0  ;;  %v1374_v30 = vsel %vm993_vm1, %v1370_v39, 0.0  ;;  %v1342_v11 = vsel %vm993_vm1, %v1338_v1, 0.0  ;;  %v1578_v35 = vunpack.c.l.b16 %v1334_v36 }
 0x388   : > { %1359 = vadd.xlane.f32.xlu2 %v1358_v7  ;;  %1375 = vadd.xlane.f32.xlu1 %v1374_v30  ;;  %v1406_v49 = vsel %vm993_vm1, %v1402_v28, 0.0  ;;  %v1422_v27 = vsel %vm993_vm1, %v1418_v40, 0.0  ;;  %v1390_v44 = vsel %vm993_vm1, %v1386_v4, 0.0  ;;  %v1466_v52 = vmul.f32 %v4533_v25, %v1330_v16 }
 0x389   : > { %1343 = vadd.xlane.f32.xlu0 %v1342_v11  ;;  %v1580_v31 = vpack.c.b16 %v1579_v5, %v1578_v35  ;;  %v1434_v29 = vmul.f32 %v4523_v8, %v1330_v16  ;;  %v1454_v24 = vsel %vm993_vm1, %v1450_v32, 0.0  ;;  %v1355_v26 = vmul.f32 %v4414_v46, %v1331_v55 }
 0x38a   : > { %v1470_v59 = vsel %vm993_vm1, %v1466_v52, 0.0  ;;  %v1377_v39 = vsel %vm993_vm1, %v1371_v58, 0.0  ;;  %v1345_v1 = vsel %vm993_vm1, %v1339_v62, 0.0  ;;  %v1419_v36 = vmul.f32 %v4446_v6, %v1331_v55 }
 0x38b   : > { %3505 = vmatmul.msk.bf16.vlgmr.msra.gmra.mxu0 %vm993_vm1, %v1580_v31  ;;  %v1438_v34 = vsel %vm993_vm1, %v1434_v29, 0.0  ;;  %v1361_v16 = vsel %vm993_vm1, %v1355_v26, 0.0  ;;  %v1387_v5 = vmul.f32 %v4429_v60, %v1331_v55  ;;  %v1403_v7 = vmul.f32 %v4434_v2, %v1331_v55 }
 0x38c   : > { %v1425_v30 = vsel %vm993_vm1, %v1419_v36, 0.0  ;;  %v1467_v31 = vmul.f32 %v4474_v48, %v1331_v55  ;;  %v1435_v28 = vmul.f32 %v4450_v10, %v1331_v55  ;;  %v1451_v40 = vmul.f32 %v4455_v15, %v1331_v55 }
 0x38d   : > { %v1393_v11 = vsel %vm993_vm1, %v1387_v5, 0.0  ;;  %v1409_v35 = vsel %vm993_vm1, %v1403_v7, 0.0 }
 0x38e   : > { %v1473_v4 = vsel %vm993_vm1, %v1467_v31, 0.0 }
 0x390   : > { %1407 = vadd.xlane.f32.xlu2 %v1406_v49  ;;  %1423 = vadd.xlane.f32.xlu1 %v1422_v27  ;;  %v1441_v49 = vsel %vm993_vm1, %v1435_v28, 0.0  ;;  %v1457_v27 = vsel %vm993_vm1, %v1451_v40, 0.0 }
 0x391   : > { %1391 = vadd.xlane.f32.xlu0 %v1390_v44 }
 0x398   : > { %1455 = vadd.xlane.f32.xlu2 %v1454_v24  ;;  %1471 = vadd.xlane.f32.xlu1 %v1470_v59 }
 0x399   : > { %1439 = vadd.xlane.f32.xlu0 %v1438_v34 }
 0x3a0   : > { %1378 = vadd.xlane.f32.xlu2 %v1377_v39  ;;  %1346 = vadd.xlane.f32.xlu1 %v1345_v1 }
 0x3a1   : > { %1362 = vadd.xlane.f32.xlu0 %v1361_v16 }
 0x3a8   : > { %1426 = vadd.xlane.f32.xlu2 %v1425_v30  ;;  %1394 = vadd.xlane.f32.xlu1 %v1393_v11 }
 0x3a9   : > { %1410 = vadd.xlane.f32.xlu0 %v1409_v35 }
 0x3b0   : > { %1474 = vadd.xlane.f32.xlu2 %v1473_v4  ;;  %1442 = vadd.xlane.f32.xlu1 %v1441_v49 }
 0x3b1   : > { %1458 = vadd.xlane.f32.xlu0 %v1457_v27 }
 0x3b3   : > { %v1322_v44 = vpop.xlane.xlu1 %1321 }
 0x3b4   : > { %4056 = vrcp.f32 %v1322_v44 }
 0x3ba   : > { %v4057_v32 = vpop.eup %4056 }
 0x3bb   : > { %v1332_v52 = vmul.f32 %v4057_v32, %v4577_v61 }
 0x3bd   : > { %v1356_v29 = vmul.f32 %v4468_v38, %v1332_v52  ;;  %v1340_v24 = vmul.f32 %v4460_v33, %v1332_v52  ;;  %v1372_v55 = vmul.f32 %v4487_v53, %v1332_v52  ;;  %v1404_v62 = vmul.f32 %v4510_v63, %v1332_v52 }
 0x3be   : > { %v1388_v26 = vmul.f32 %v4498_v41, %v1332_v52  ;;  %v1420_v61 = vmul.f32 %v4515_v3, %v1332_v52  ;;  %v1452_v5 = vmul.f32 %v4530_v22, %v1332_v52  ;;  %v1436_v7 = vmul.f32 %v4523_v8, %v1332_v52 }
 0x3bf   : > { %v1364_v59 = vsel %vm993_vm1, %v1356_v29, 0.0  ;;  %v1348_v34 = vsel %vm993_vm1, %v1340_v24, 0.0  ;;  %v1380_v58 = vsel %vm993_vm1, %v1372_v55, 0.0  ;;  %v1412_v39 = vsel %vm993_vm1, %v1404_v62, 0.0 }
 0x3c0   : > { %1365 = vadd.xlane.f32.xlu2 %v1364_v59  ;;  %1349 = vadd.xlane.f32.xlu0 %v1348_v34  ;;  %v1396_v1 = vsel %vm993_vm1, %v1388_v26, 0.0  ;;  %v1428_v16 = vsel %vm993_vm1, %v1420_v61, 0.0  ;;  %v1460_v30 = vsel %vm993_vm1, %v1452_v5, 0.0  ;;  %v1444_v11 = vsel %vm993_vm1, %v1436_v7, 0.0 }
 0x3c1   : > { %1381 = vadd.xlane.f32.xlu1 %v1380_v58  ;;  %v1336_v32 = vpack.c.bf16 %v1332_v52, %v1332_v52 }
 0x3c8   : > { %1413 = vadd.xlane.f32.xlu2 %v1412_v39  ;;  %1397 = vadd.xlane.f32.xlu0 %v1396_v1 }
 0x3c9   : > { %1429 = vadd.xlane.f32.xlu1 %v1428_v16 }
 0x3ca   : > { %v1325_v36 = vpop.xlane.xlu2 %1324 }
 0x3cb   : > { %4058 = vrcp.f32 %v1325_v36 }
 0x3d0   : > { %1461 = vadd.xlane.f32.xlu2 %v1460_v30  ;;  %1445 = vadd.xlane.f32.xlu0 %v1444_v11  ;;  %v1468_v30 = vmul.f32 %v4533_v25, %v1332_v52  ;;  %v3803_v52 = vld [vmem:[%s5313_s12] sm:$0x10] }
 0x3d1   : > { %v4059_v35 = vpop.eup %4058 }
 0x3d2   : > { %v1333_v31 = vmul.f32 %v4059_v35, %v4581_v43  ;;  %v4647_v43 = vunpack.c.l.b16 %v1336_v32  ;;  %v1476_v11 = vsel %vm993_vm1, %v1468_v30, 0.0  ;;  %v4121_v32 = vmov 65535  }
 0x3d4   : > { %v1373_v28 = vmul.f32 %v4418_v50, %v1333_v31  ;;  %v1357_v40 = vmul.f32 %v4414_v46, %v1333_v31  ;;  %v1341_v4 = vmul.f32 %v4410_v45, %v1333_v31  ;;  %v1337_v29 = vpack.c.bf16 %v1333_v31, %v1333_v31 }
 0x3d5   : > { %v1389_v24 = vmul.f32 %v4429_v60, %v1333_v31  ;;  %v1421_v59 = vmul.f32 %v4446_v6, %v1333_v31  ;;  %v1405_v34 = vmul.f32 %v4434_v2, %v1333_v31  ;;  %v1437_v39 = vmul.f32 %v4450_v10, %v1333_v31 }
 0x3d6   : > { %v1383_v49 = vsel %vm993_vm1, %v1373_v28, 0.0  ;;  %v1367_v27 = vsel %vm993_vm1, %v1357_v40, 0.0  ;;  %v1351_v44 = vsel %vm993_vm1, %v1341_v4, 0.0  ;;  %v4649_v55 = vunpack.c.l.b16 %v1337_v29 }
 0x3d7   : > { %1352 = vadd.xlane.f32.xlu1 %v1351_v44  ;;  %v1399_v62 = vsel %vm993_vm1, %v1389_v24, 0.0  ;;  %v1431_v26 = vsel %vm993_vm1, %v1421_v59, 0.0  ;;  %v1415_v61 = vsel %vm993_vm1, %v1405_v34, 0.0  ;;  %v1469_v1 = vmul.f32 %v4474_v48, %v1333_v31 }
 0x3d8   : > { %1384 = vadd.xlane.f32.xlu2 %v1383_v49  ;;  %1368 = vadd.xlane.f32.xlu0 %v1367_v27  ;;  %v1608_v58 = vpack.c.b16 %v4649_v55, %v4647_v43  ;;  %v1453_v16 = vmul.f32 %v4455_v15, %v1333_v31  ;;  %v1447_v36 = vsel %vm993_vm1, %v1437_v39, 0.0  ;;  %v3501_v27 = vld [vmem:[%s5313_s12] sm:$0xf]  ;;  %v1552_v29 = vsel %vm1550_vm8, 4294967295, %v4121_v32 }
 0x3d9   : > { %v1479_v5 = vsel %vm993_vm1, %v1469_v1, 0.0  ;;  %v3502_v44 = vor.u32 %v3803_v52, %v3501_v27  ;;  %v4676_v37 = vsel %vm1551_vm9, %v1552_v29, 0  ;;  %v3804_v43 = vld [vmem:[%s5310_s9] sm:$0xff] }
 0x3da   : > { %v1463_v7 = vsel %vm993_vm1, %v1453_v16, 0.0 }
 0x3df   : > { %1400 = vadd.xlane.f32.xlu1 %v1399_v62 }
 0x3e0   : > { %1432 = vadd.xlane.f32.xlu2 %v1431_v26  ;;  %1416 = vadd.xlane.f32.xlu0 %v1415_v61 }
 0x3e7   : > { %1448 = vadd.xlane.f32.xlu1 %v1447_v36 }
 0x3e8   : > { %1480 = vadd.xlane.f32.xlu2 %v1479_v5  ;;  %1464 = vadd.xlane.f32.xlu0 %v1463_v7 }
 0x3ef   : > { %1477 = vadd.xlane.f32.xlu1 %v1476_v11 }
 0x3fb   : > { %v1360_v35 = vpop.xlane.xlu2 %1359  ;;  %v1376_v28 = vpop.xlane.xlu1 %1375 }
 0x3fc   : > { %v1344_v40 = vpop.xlane.xlu0 %1343  ;;  %3926 = vrot.lane.b32.xlu0 %v3925_v51, %s5338_s27  ;;  %v1555_v51 = vand.u32 %v3502_v44, %v4676_v37  ;;  %s5396_s27 = sld [smem:[#allocation3_spill]] }
 0x3fd   : > { %v1483_v34 = vsel %vm1482_vm10, %v1344_v40, %v1360_v35 }
 0x3fe   : > { %1564 = vmatpush.bf16.msrb.mxu2 %v1555_v51  ;;  %v1488_v61 = vsel %vm1487_vm11, %v1483_v34, %v1376_v28 }
 0x403   : > { %v1408_v31 = vpop.xlane.xlu2 %1407  ;;  %v1424_v4 = vpop.xlane.xlu1 %1423 }
 0x404   : > { %v1392_v49 = vpop.xlane.xlu0 %1391 }
 0x405   : > { %v1493_v1 = vsel %vm1492_vm12, %v1488_v61, %v1392_v49 }
 0x406   : > { %v1498_v16 = vsel %vm1497_vm13, %v1493_v1, %v1408_v31 }
 0x407   : > { %v1503_v5 = vsel %vm1502_vm14, %v1498_v16, %v1424_v4 }
 0x408   : > { %v1599_v55 = vpop.f32.mrf.mxu0 }
 0x40b   : > { %v1456_v24 = vpop.xlane.xlu2 %1455  ;;  %v1472_v59 = vpop.xlane.xlu1 %1471 }
 0x40c   : > { %v1440_v47 = vpop.xlane.xlu0 %1439 }
 0x40d   : > { %v1508_v11 = vsel %vm1507_vm2, %v1503_v5, %v1440_v47 }
 0x40e   : > { %v1513_v49 = vsel %vm5335_vm3, %v1508_v11, %v1456_v24 }
 0x40f   : > { %v1518_v27 = vsel %vm5334_vm4, %v1513_v49, %v1472_v59 }
 0x410   : > { %v1522_v29 = vpack.c.bf16 %v1518_v27, %v1518_v27 }
 0x413   : > { %v1379_v62 = vpop.xlane.xlu2 %1378  ;;  %v1347_v26 = vpop.xlane.xlu1 %1346 }
 0x414   : > { %v1363_v39 = vpop.xlane.xlu0 %1362 }
 0x415   : > { %v1484_v36 = vsel %vm1482_vm10, %v1347_v26, %v1363_v39  ;;  %v1532_v26 = vunpack.c.l.b16 %v1522_v29 }
 0x416   : > { %v1489_v35 = vsel %vm1487_vm11, %v1484_v36, %v1379_v62 }
 0x41b   : > { %v1427_v7 = vpop.xlane.xlu2 %1426  ;;  %v1395_v30 = vpop.xlane.xlu1 %1394 }
 0x41c   : > { %v1411_v28 = vpop.xlane.xlu0 %1410  ;;  %v1494_v40 = vsel %vm1492_vm12, %v1489_v35, %v1395_v30 }
 0x41d   : > { %v1499_v31 = vsel %vm1497_vm13, %v1494_v40, %v1411_v28 }
 0x41e   : > { %v1504_v4 = vsel %vm1502_vm14, %v1499_v31, %v1427_v7 }
 0x423   : > { %v1443_v52 = vpop.xlane.xlu1 %1442  ;;  %v1475_v47 = vpop.xlane.xlu2 %1474 }
 0x424   : > { %v1509_v44 = vsel %vm1507_vm2, %v1504_v4, %v1443_v52  ;;  %v1459_v32 = vpop.xlane.xlu0 %1458 }
 0x425   : > { %v1514_v51 = vsel %vm5335_vm3, %v1509_v44, %v1459_v32 }
 0x426   : > { %v1519_v34 = vsel %vm5334_vm4, %v1514_v51, %v1475_v47 }
 0x427   : > { %v1523_v62 = vpack.c.bf16 %v1519_v34, %v1519_v34 }
 0x429   : > { %v1533_v61 = vunpack.c.l.b16 %v1523_v62 }
 0x42b   : > { %v1536_v24 = vpack.c.b16 %v1533_v61, %v1532_v26 }
 0x42d   : > { %3503 = vmatmul.msk.bf16.vlgmr.msrb.gmra.mxu2 %vm5333_vm5, %v1536_v24 }
 0x433   : > { %v1366_v59 = vpop.xlane.xlu2 %1365  ;;  %v1350_v39 = vpop.xlane.xlu0 %1349 }
 0x434   : > { %v1382_v1 = vpop.xlane.xlu1 %1381  ;;  %v1485_v52 = vsel %vm1482_vm10, %v1350_v39, %v1366_v59 }
 0x435   : > { %v1490_v32 = vsel %vm1487_vm11, %v1485_v52, %v1382_v1 }
 0x43b   : > { %v1414_v16 = vpop.xlane.xlu2 %1413  ;;  %v1398_v36 = vpop.xlane.xlu0 %1397 }
 0x43c   : > { %v1430_v5 = vpop.xlane.xlu1 %1429  ;;  %v1495_v47 = vsel %vm1492_vm12, %v1490_v32, %v1398_v36 }
 0x43d   : > { %v1500_v62 = vsel %vm1497_vm13, %v1495_v47, %v1414_v16 }
 0x43e   : > { %v1505_v59 = vsel %vm1502_vm14, %v1500_v62, %v1430_v5 }
 0x443   : > { %v1462_v7 = vpop.xlane.xlu2 %1461  ;;  %v1446_v30 = vpop.xlane.xlu0 %1445 }
 0x44a   : > { %v1353_v11 = vpop.xlane.xlu1 %1352 }
 0x44b   : > { %v1385_v35 = vpop.xlane.xlu2 %1384  ;;  %v1369_v28 = vpop.xlane.xlu0 %1368 }
 0x44c   : > { %v1486_v40 = vsel %vm1482_vm10, %v1353_v11, %v1369_v28  ;;  %v1510_v11 = vsel %vm1507_vm2, %v1505_v59, %v1446_v30 }
 0x44d   : > { %v1491_v31 = vsel %vm1487_vm11, %v1486_v40, %v1385_v35  ;;  %v1515_v36 = vsel %vm5335_vm3, %v1510_v11, %v1462_v7 }
 0x452   : > { %v1401_v49 = vpop.xlane.xlu1 %1400 }
 0x453   : > { %v1417_v27 = vpop.xlane.xlu0 %1416  ;;  %v1433_v4 = vpop.xlane.xlu2 %1432  ;;  %v1496_v44 = vsel %vm1492_vm12, %v1491_v31, %v1401_v49 }
 0x454   : > { %v1501_v29 = vsel %vm1497_vm13, %v1496_v44, %v1417_v27 }
 0x455   : > { %v1506_v34 = vsel %vm1502_vm14, %v1501_v29, %v1433_v4 }
 0x45a   : > { %v1449_v51 = vpop.xlane.xlu1 %1448 }
 0x45b   : > { %v1511_v26 = vsel %vm1507_vm2, %v1506_v34, %v1449_v51  ;;  %v1465_v61 = vpop.xlane.xlu0 %1464  ;;  %v1481_v39 = vpop.xlane.xlu2 %1480  ;;  %v3805_v51 = vld [vmem:[%s5310_s9 + $0x8] sm:$0xff] }
 0x45c   : > { %v1516_v24 = vsel %vm5335_vm3, %v1511_v26, %v1465_v61  ;;  %1672 = vmatpush.bf16.msrb.mxu3 %v3805_v51 }
 0x45d   : > { %v1521_v1 = vsel %vm5334_vm4, %v1516_v24, %v1481_v39 }
 0x45e   : > { %v1525_v35 = vpack.c.bf16 %v1521_v1, %v1521_v1 }
 0x460   : > { %v1535_v16 = vunpack.c.l.b16 %v1525_v35  ;;  %1673 = vmatpush.bf16.msrb.mxu3 %v3804_v43 }
 0x462   : > { %v1478_v28 = vpop.xlane.xlu1 %1477 }
 0x463   : > { %v1520_v40 = vsel %vm5334_vm4, %v1515_v36, %v1478_v28 }
 0x464   : > { %v1524_v49 = vpack.c.bf16 %v1520_v40, %v1520_v40 }
 0x466   : > { %v1534_v31 = vunpack.c.l.b16 %v1524_v49 }
 0x468   : > { %v1537_v27 = vpack.c.b16 %v1535_v16, %v1534_v31 }
 0x46a   : > { %3504 = vmatmul.msk.bf16.gmra.mxu2 %vm5333_vm5, %v1537_v27  ;;  %v4026_v27 = vld [vmem:[%s5311_s10] ss:$0 sm:$0xff] }
 0x46e   : > { %v3927_v52 = vpop.permute.xlu0 %3926 }
 0x46f   : > { %v3929_v4 = vunpack.i.h.bf16 %v3927_v52  ;;  %v3928_v5 = vunpack.i.l.bf16 %v3927_v52 }
 0x471   : > { %v975_v44 = vpack.c.bf16 %v3929_v4, %v3929_v4  ;;  %v974_v32 = vpack.c.bf16 %v3928_v5, %v3928_v5 }
 0x473   : > { %v1612_v30 = vunpack.c.l.b16 %v975_v44  ;;  %v1611_v29 = vunpack.c.l.b16 %v974_v32 }
 0x475   : > { %v1613_v47 = vpack.c.b16 %v1612_v30, %v1611_v29 }
 0x477   : > { %1625 = vmatpush.bf16.msra.mxu1 %v1613_v47 }
 0x47a   : > { %3506 = vmatmul.msk.bf16.vlgmr.msra.gmra.mxu1 %vm993_vm1, %v1608_v58  ;;  %v1601_v58 = vpop.f32.mrf.mxu0 }
 0x4b0   : > { %v1566_v7 = vpop.f32.mrf.mxu2 }
 0x4b1   : > { %v1600_v35 = vadd.f32 %v1599_v55, %v1566_v7  ;;  %v4123_v7 = vmov 32.0  }
 0x4b2   : > { %4060 = vrcp.f32 %v4123_v7 }
 0x4b8   : > { %v1568_v34 = vpop.f32.mrf.mxu2  ;;  %v4061_v51 = vpop.eup %4060 }
 0x4b9   : > { %v1602_v28 = vadd.f32 %v1601_v58, %v1568_v34  ;;  %v1691_v34 = vmul.f32 32.0, %v4061_v51  ;;  %vm1695_vm6 = vweird.f32 %v4061_v51 }
 0x4ed   : > { %v1571_v62 = vpop.f32.mrf.mxu2 }
 0x4f5   : > { %v1573_v61 = vpop.f32.mrf.mxu2 }
 0x4f7   : > { %v1627_v26 = vpop.f32.mrf.mxu1 }
 0x4f8   : > { %v1628_v59 = vadd.f32 %v1627_v26, %v1571_v62  ;;  %v1692_v62 = vsub.f32 1.0, %v1691_v34 }
 0x4fa   : > { %v1693_v26 = vmul.f32 %v4061_v51, %v1692_v62 }
 0x4ff   : > { %v1629_v24 = vpop.f32.mrf.mxu1 }
 0x500   : > { %v1630_v39 = vadd.f32 %v1629_v24, %v1573_v61  ;;  %v1694_v61 = vadd.f32 %v4061_v51, %v1693_v26 }
 0x502   : > { %v3930_v11 = vpack.i.bf16 %v1630_v39, %v1628_v59  ;;  %v4734_v24 = vsel %vm1695_vm6, %v4061_v51, %v1694_v61 }
 0x504   : > { %3931 = vrot.lane.b32.xlu1 %v3930_v11, %s5337_s7  ;;  %s5381_s7 = smov 32  }
 0x576   : > { %v3932_v1 = vpop.permute.xlu1 %3931 }
 0x577   : > { %v3934_v36 = vunpack.i.h.bf16 %v3932_v1  ;;  %v3933_v40 = vunpack.i.l.bf16 %v3932_v1 }
 0x579   : > { %v1641_v49 = vsel %vm993_vm1, %v1602_v28, %v3934_v36  ;;  %v1640_v16 = vsel %vm993_vm1, %v1600_v35, %v3933_v40 }
 0x57a   : > { %v1642_v31 = vpack.c.bf16 %v1641_v49, %v1640_v16 }
 0x57c   : > { %3515 = vmatmul.msk.bf16.vlgmr.msrb.gmra.mxu3 %vm852_vm0, %v1642_v31 }
 0x5ff   : > { %v1675_v52 = vpop.f32.mrf.mxu3 }
 0x600   : > { %v1676_v4 = vadd.f32 %v4026_v27, %v1675_v52 }
 0x602   : > { %v1680_v5 = vadd.f32 %v1676_v4, %v4296_v13 }
 0x604   : > { %v1684_v44 = vsel %vm852_vm0, %v1680_v5, 0.0 }
 0x605   : > { %1685 = vadd.xlane.f32.xlu2 %v1684_v44 }
 0x607   : > { %v1677_v32 = vpop.f32.mrf.mxu3 }
 0x608   : > { %v1678_v30 = vadd.f32 %v4026_v27, %v1677_v32 }
 0x60a   : > { %v1681_v29 = vadd.f32 %v1678_v30, %v4299_v14 }
 0x60c   : > { %v1687_v47 = vsel %vm852_vm0, %v1681_v29, 0.0 }
 0x60d   : > { %1688 = vadd.xlane.f32.xlu2 %v1687_v47  ;;  %v4027_v47 = vld [vmem:[%s5314_s13] ss:$0 sm:$0xff] }
 0x678   : > { %v1686_v13 = vpop.xlane.xlu2 %1685 }
 0x679   : > { %v1697_v59 = vmul.f32 %v4734_v24, %v1686_v13  ;;  %v4028_v13 = vld [vmem:[%s5315_s14] ss:$0 sm:$0xff] }
 0x67b   : > { %v1699_v39 = vsub.f32 %v1680_v5, %v1697_v59 }
 0x67d   : > { %v1701_v11 = vmul.f32 %v1699_v39, %v1699_v39 }
 0x67f   : > { %v1703_v14 = vsel %vm852_vm0, %v1701_v11, 0.0 }
 0x680   : > { %1704 = vadd.xlane.f32.xlu0 %v1703_v14  ;;  %v1689_v43 = vpop.xlane.xlu2 %1688 }
 0x681   : > { %v1698_v55 = vmul.f32 %v4734_v24, %v1689_v43 }
 0x683   : > { %v1700_v58 = vsub.f32 %v1681_v29, %v1698_v55 }
 0x685   : > { %v1702_v1 = vmul.f32 %v1700_v58, %v1700_v58 }
 0x687   : > { %v1706_v35 = vsel %vm852_vm0, %v1702_v1, 0.0 }
 0x688   : > { %1707 = vadd.xlane.f32.xlu2 %v1706_v35 }
 0x6f3   : > { %v1705_v28 = vpop.xlane.xlu0 %1704 }
 0x6f4   : > { %v1709_v36 = vmul.f32 %v1705_v28, %v4734_v24 }
 0x6f6   : > { %v1711_v40 = vadd.f32 1e-05, %v1709_v36 }
 0x6f8   : > { %4062 = vrsqrt.f32 %v1711_v40  ;;  %vm1719_vm9 = vweird.f32 %v1711_v40 }
 0x6fb   : > { %v1708_v49 = vpop.xlane.xlu2 %1707 }
 0x6fc   : > { %v1710_v16 = vmul.f32 %v1708_v49, %v4734_v24 }
 0x6fe   : > { %v4063_v31 = vpop.eup %4062  ;;  %v1712_v27 = vadd.f32 1e-05, %v1710_v16 }
 0x6ff   : > { %v1714_v52 = vmul.f32 %v4063_v31, %v1711_v40  ;;  %vm1720_vm8 = vweird.f32 %v4063_v31 }
 0x700   : > { %4064 = vrsqrt.f32 %v1712_v27  ;;  %vm1721_vm6 = vmor %vm1719_vm9, %vm1720_vm8  ;;  %vm1729_vm4 = vweird.f32 %v1712_v27  ;;  %vm5346_vm8 = vcmask 1046528  }
 0x701   : > { %v1715_v4 = vmul.f32 %v4063_v31, %v1714_v52 }
 0x703   : > { %v1716_v5 = vmul.f32 0.5, %v1715_v4  ;;  %v3811_v4 = vld [vmem:[%s5316_s15 + $0x28] sm:$0xff] }
 0x704   : > { %1839 = vmatpush.bf16.msra.mxu2 %v3811_v4  ;;  %v3815_v4 = vld [vmem:[%s5318_s17 + $0x18] sm:$0xff] }
 0x705   : > { %v1717_v44 = vsub.f32 1.5, %v1716_v5  ;;  %v3810_v5 = vld [vmem:[%s5316_s15 + $0x20] sm:$0xff] }
 0x706   : > { %v4065_v32 = vpop.eup %4064 }
 0x707   : > { %v1718_v30 = vmul.f32 %v4063_v31, %v1717_v44  ;;  %v1724_v29 = vmul.f32 %v4065_v32, %v1712_v27  ;;  %vm1730_vm5 = vweird.f32 %v4065_v32  ;;  %v3809_v44 = vld [vmem:[%s5316_s15 + $0x18] sm:$0xff] }
 0x708   : > { %vm1731_vm3 = vmor %vm1729_vm4, %vm1730_vm5  ;;  %vm5345_vm4 = vcmask 1040384   ;;  %1840 = vmatpush.bf16.msra.mxu2 %v3810_v5  ;;  %vm5343_vm5 = vcmask 785408  }
 0x709   : > { %v1722_v7 = vsel %vm1721_vm6, %v4063_v31, %v1718_v30  ;;  %v1725_v51 = vmul.f32 %v4065_v32, %v1724_v29  ;;  %v3807_v30 = vld [vmem:[%s5316_s15 + $0x8] sm:$0xff]  ;;  %v3806_v29 = vld [vmem:[%s5316_s15] sm:$0xff] }
 0x70a   : > { %v1733_v34 = vmul.f32 %v1722_v7, %v1699_v39 }
 0x70b   : > { %v1726_v62 = vmul.f32 0.5, %v1725_v51 }
 0x70c   : > { %v1738_v26 = vmul.f32 %v4027_v47, %v1733_v34  ;;  %1841 = vmatpush.bf16.msra.mxu2 %v3809_v44  ;;  %v3814_v44 = vld [vmem:[%s5318_s17 + $0x10] sm:$0xff] }
 0x70d   : > { %v1727_v61 = vsub.f32 1.5, %v1726_v62 }
 0x70e   : > { %v4748_v14 = vadd.f32 %v4028_v13, %v1738_v26 }
 0x70f   : > { %v1728_v59 = vmul.f32 %v4065_v32, %v1727_v61 }
 0x710   : > { %v1745_v1 = vmul.f32 %v4748_v14, %v4287_v9 }
 0x711   : > { %v1732_v11 = vsel %vm1731_vm3, %v4065_v32, %v1728_v59  ;;  %v3808_v32 = vld [vmem:[%s5316_s15 + $0x10] sm:$0xff]  ;;  %vm5344_vm3 = vcmask 523264  }
 0x712   : > { %v1734_v43 = vmul.f32 %v1732_v11, %v1700_v58  ;;  %v1770_v28 = vrot.slane %v1745_v1, 1  ;;  %v1763_v49 = vrot.slane %v1745_v1, 7  ;;  %1842 = vmatpush.bf16.msra.mxu2 %v3808_v32 }
 0x714   : > { %v1739_v55 = vmul.f32 %v4027_v47, %v1734_v43  ;;  %v1768_v61 = vsel %vm5345_vm4, 0.0, %v1763_v49 }
 0x716   : > { %v4752_v39 = vadd.f32 %v4028_v13, %v1739_v55  ;;  %1843 = vmatpush.bf16.msra.mxu2 %v3807_v30 }
 0x718   : > { %v1746_v35 = vmul.f32 %v4752_v39, %v4293_v12 }
 0x71a   : > { %v3935_v36 = vpack.i.bf16 %v1746_v35, %v1745_v1  ;;  %v1771_v40 = vrot.slane %v1746_v35, 1  ;;  %v1764_v16 = vrot.slane %v1746_v35, 7  ;;  %1844 = vmatpush.bf16.msra.mxu2 %v3806_v29  ;;  %v3823_v1 = vld [vmem:[%s5318_s17 + $0x58] sm:$0xff]  ;;  %v3822_v35 = vld [vmem:[%s5318_s17 + $0x50] sm:$0xff] }
 0x71b   : > { %2000 = vmatpush.bf16.msrb.mxu1 %v3823_v1  ;;  %v3812_v1 = vld [vmem:[%s5318_s17] sm:$0xff] }
 0x71c   : > { %3936 = vrot.lane.b32.xlu1 %v3935_v36, %s5336_s28  ;;  %v1772_v58 = vsel %vm5346_vm8, %v1770_v28, %v1771_v40  ;;  %v1774_v31 = vsel %vm5346_vm8, %v1771_v40, 0.0  ;;  %v1765_v27 = vsel %vm5345_vm4, %v1763_v49, %v1764_v16  ;;  %v3821_v28 = vld [vmem:[%s5318_s17 + $0x48] sm:$0xff]  ;;  %v3820_v36 = vld [vmem:[%s5318_s17 + $0x40] sm:$0xff]  ;;  %v3819_v40 = vld [vmem:[%s5318_s17 + $0x38] sm:$0xff]  ;;  %s5380_s28 = smov 16  }
 0x71d   : > { %v3940_v52 = vpack.i.bf16 %v1774_v31, %v1772_v58  ;;  %1982 = vmatpush.bf16.msrb.mxu0 %v3819_v40  ;;  %v3818_v49 = vld [vmem:[%s5318_s17 + $0x30] sm:$0xff]  ;;  %v3817_v16 = vld [vmem:[%s5318_s17 + $0x28] sm:$0xff]  ;;  %v4029_v58 = vld [vmem:[%s5317_s16] ss:$0 sm:$0xff] }
 0x71e   : > { %v3816_v31 = vld [vmem:[%s5318_s17 + $0x20] sm:$0xff] }
 0x71f   : > { %3941 = vrot.lane.b32.xlu2 %v3940_v52, %s5340_s29  ;;  %2001 = vmatpush.bf16.msrb.mxu1 %v3822_v35  ;;  %s5397_s29 = sld [smem:[#allocation12_spill]] }
 0x721   : > { %1983 = vmatpush.bf16.msrb.mxu0 %v3818_v49 }
 0x723   : > { %2002 = vmatpush.bf16.msrb.mxu1 %v3821_v28 }
 0x725   : > { %1984 = vmatpush.bf16.msrb.mxu0 %v3817_v16  ;;  %s744_s5 = scalar_lea.vmem %s5397_s29, %s5396_s27 }
 0x727   : > { %2003 = vmatpush.bf16.msrb.mxu1 %v3820_v36 }
 0x729   : > { %1985 = vmatpush.bf16.msrb.mxu0 %v3816_v31  ;;  %v4030_v31 = vld [vmem:[%s5319_s18] ss:$0 sm:$0xff] }
 0x72d   : > { %1986 = vmatpush.bf16.msrb.mxu0 %v3815_v4 }
 0x731   : > { %1987 = vmatpush.bf16.msrb.mxu0 %v3814_v44 }
 0x779   : > { %v3942_v47 = vpop.permute.xlu2 %3941 }
 0x77a   : > { %v3944_v62 = vunpack.i.h.bf16 %v3942_v47  ;;  %v3943_v26 = vunpack.i.l.bf16 %v3942_v47  ;;  %v3813_v47 = vld [vmem:[%s5318_s17 + $0x8] sm:$0xff] }
 0x77b   : > { %1988 = vmatpush.bf16.msrb.mxu0 %v3813_v47 }
 0x77f   : > { %1989 = vmatpush.bf16.msrb.mxu0 %v3812_v1 }
 0x78e   : > { %v3937_v7 = vpop.permute.xlu1 %3936 }
 0x78f   : > { %v3939_v51 = vunpack.i.h.bf16 %v3937_v7  ;;  %v3938_v34 = vunpack.i.l.bf16 %v3937_v7 }
 0x791   : > { %v1788_v13 = vsel %vm852_vm0, %v1768_v61, %v3938_v34  ;;  %v1789_v59 = vsel %vm852_vm0, %v1765_v27, %v3939_v51 }
 0x792   : > { %v1791_v11 = vsel %vm5344_vm3, %v1788_v13, %v3943_v26  ;;  %v1792_v43 = vsel %vm5344_vm3, %v1789_v59, %v3944_v62 }
 0x793   : > { %v1793_v55 = vpack.c.bf16 %v1792_v43, %v1791_v11 }
 0x795   : > { %3540 = vmatmul.msk.bf16.vlgmr.msra.gmra.mxu2 %vm5343_vm5, %v1793_v55 }
 0x818   : > { %v1846_v27 = vpop.f32.mrf.mxu2 }
 0x819   : > { %v1847_v52 = vadd.f32 %v4029_v58, %v1846_v27 }
 0x81b   : > { %v1851_v5 = vmax.f32 %v1847_v52, 0.0 }
 0x81d   : > { %v1853_v29 = vmul.f32 %v1851_v5, %v4287_v9 }
 0x81f   : > { %v1882_v34 = vrot.slane %v1853_v29, 7  ;;  %v1888_v62 = vrot.slane %v1853_v29, 1 }
 0x820   : > { %v1848_v32 = vpop.f32.mrf.mxu2 }
 0x821   : > { %v1849_v30 = vadd.f32 %v4029_v58, %v1848_v32  ;;  %v1887_v40 = vsel %vm5345_vm4, 0.0, %v1882_v34 }
 0x823   : > { %v1852_v7 = vmax.f32 %v1849_v30, 0.0 }
 0x825   : > { %v1854_v51 = vmul.f32 %v1852_v7, %v4293_v12 }
 0x827   : > { %v1883_v26 = vrot.slane %v1854_v51, 7  ;;  %v1889_v61 = vrot.slane %v1854_v51, 1  ;;  %v3945_v13 = vpack.i.bf16 %v1854_v51, %v1853_v29 }
 0x829   : > { %v1890_v59 = vsel %vm5346_vm8, %v1888_v62, %v1889_v61  ;;  %v1893_v11 = vsel %vm5346_vm8, %v1889_v61, 0.0  ;;  %3946 = vrot.lane.b32.xlu1 %v3945_v13, %s5368_s25  ;;  %v1884_v43 = vsel %vm5345_vm4, %v1882_v34, %v1883_v26 }
 0x82a   : > { %v1903_v55 = vpack.c.bf16 %v1893_v11, %v1890_v59 }
 0x82c   : > { %3589 = vmatmul.msk.bf16.vlgmr.msrb.gmra.mxu1 %vm5344_vm3, %v1903_v55 }
 0x89b   : > { %v3947_v35 = vpop.permute.xlu1 %3946 }
 0x89c   : > { %v3949_v28 = vunpack.i.h.bf16 %v3947_v35  ;;  %v3948_v36 = vunpack.i.l.bf16 %v3947_v35 }
 0x89e   : > { %v1900_v49 = vsel %vm5344_vm3, %v1887_v40, %v3948_v36  ;;  %v1901_v16 = vsel %vm5344_vm3, %v1884_v43, %v3949_v28  ;;  %v3831_v36 = vld [vmem:[%s5313_s12 + $0x8] sm:$0x10] }
 0x89f   : > { %v1902_v58 = vpack.c.bf16 %v1901_v16, %v1900_v49 }
 0x8a1   : > { %1990 = vmatmul.bf16.vlgmr.msrb.gmra.mxu0 %v1902_v58  ;;  %v3825_v58 = vld [vmem:[%s5360_s3 + $0x18] sm:$0xff] }
 0x8a2   : > { %2102 = vmatpush.bf16.msra.mxu3 %v3825_v58 }
 0x8a9   : > { %v2005_v27 = vpop.f32.mrf.mxu1 }
 0x8b1   : > { %v2007_v7 = vpop.f32.mrf.mxu1 }
 0x91e   : > { %v1991_v52 = vpop.f32.mrf.mxu0 }
 0x91f   : > { %v1992_v4 = vadd.f32 %v4030_v31, %v1991_v52 }
 0x921   : > { %v2006_v5 = vadd.f32 %v2005_v27, %v1992_v4  ;;  %v3829_v27 = vld [vmem:[%s5362_s26 + $0x18] sm:$0xff]  ;;  %v3824_v4 = vld [vmem:[%s5360_s3 + $0x10] sm:$0xff] }
 0x922   : > { %2174 = vmatpush.bf16.msrb.mxu2 %v3829_v27  ;;  %2103 = vmatpush.bf16.msra.mxu3 %v3824_v4 }
 0x923   : > { %v2010_v44 = vmul.f32 %v2006_v5, %v4287_v9  ;;  %v3826_v5 = vld [vmem:[%s5361_s23 + $0x10] sm:$0xff] }
 0x925   : > { %v2012_v32 = vadd.f32 %v2010_v44, %v4748_v14  ;;  %v3828_v44 = vld [vmem:[%s5362_s26 + $0x10] sm:$0xff] }
 0x926   : > { %v1993_v30 = vpop.f32.mrf.mxu0  ;;  %2175 = vmatpush.bf16.msrb.mxu2 %v3828_v44 }
 0x927   : > { %v1994_v29 = vadd.f32 %v4030_v31, %v1993_v30  ;;  %v2016_v47 = vsel %vm852_vm0, %v2012_v32, 0.0  ;;  %v3827_v31 = vld [vmem:[%s5361_s23 + $0x18] sm:$0xff] }
 0x928   : > { %2017 = vadd.xlane.f32.xlu1 %v2016_v47  ;;  %2138 = vmatpush.bf16.msra.mxu1 %v3827_v31 }
 0x929   : > { %v2008_v51 = vadd.f32 %v2007_v7, %v1994_v29 }
 0x92b   : > { %v2011_v34 = vmul.f32 %v2008_v51, %v4293_v12 }
 0x92c   : > { %2139 = vmatpush.bf16.msra.mxu1 %v3826_v5 }
 0x92d   : > { %v2013_v62 = vadd.f32 %v2011_v34, %v4752_v39  ;;  %v3646_v39 = vld [vmem:[%s5313_s12 + $0x8] sm:$0xf] }
 0x92e   : > { %v3647_v16 = vor.u32 %v3831_v36, %v3646_v39 }
 0x92f   : > { %v2019_v26 = vsel %vm852_vm0, %v2013_v62, 0.0 }
 0x930   : > { %2020 = vadd.xlane.f32.xlu2 %v2019_v26 }
 0x99b   : > { %v2018_v61 = vpop.xlane.xlu1 %2017 }
 0x99c   : > { %v2022_v13 = vmul.f32 %v2018_v61, %v4734_v24 }
 0x99e   : > { %v2024_v59 = vsub.f32 %v2012_v32, %v2022_v13  ;;  %v2783_v32 = vand.u32 %v3647_v16, %v4676_v37 }
 0x9a0   : > { %v2026_v11 = vmul.f32 %v2024_v59, %v2024_v59  ;;  %2792 = vmatpush.bf16.msra.mxu2 %v2783_v32  ;;  %v4033_v32 = vld [vmem:[%s5366_s24 + $0x1] ss:$0 sm:$0xff] }
 0x9a2   : > { %v2028_v14 = vsel %vm852_vm0, %v2026_v11, 0.0 }
 0x9a3   : > { %v2021_v43 = vpop.xlane.xlu2 %2020  ;;  %2029 = vadd.xlane.f32.xlu0 %v2028_v14 }
 0x9a4   : > { %v2023_v55 = vmul.f32 %v2021_v43, %v4734_v24 }
 0x9a6   : > { %v2025_v1 = vsub.f32 %v2013_v62, %v2023_v55 }
 0x9a8   : > { %v2027_v35 = vmul.f32 %v2025_v1, %v2025_v1 }
 0x9aa   : > { %v2031_v28 = vsel %vm852_vm0, %v2027_v35, 0.0  ;;  %v4031_v35 = vld [vmem:[%s5320_s19] ss:$0 sm:$0xff] }
 0x9ab   : > { %2032 = vadd.xlane.f32.xlu0 %v2031_v28 }
 0xa16   : > { %v2030_v40 = vpop.xlane.xlu0 %2029 }
 0xa17   : > { %v2034_v49 = vmul.f32 %v2030_v40, %v4734_v24  ;;  %v4032_v40 = vld [vmem:[%s5321_s20] ss:$0 sm:$0xff] }
 0xa19   : > { %v2036_v52 = vadd.f32 1e-05, %v2034_v49 }
 0xa1b   : > { %4066 = vrsqrt.f32 %v2036_v52  ;;  %vm2044_vm6 = vweird.f32 %v2036_v52 }
 0xa1e   : > { %v2033_v30 = vpop.xlane.xlu0 %2032 }
 0xa1f   : > { %v2035_v29 = vmul.f32 %v2033_v30, %v4734_v24 }
 0xa21   : > { %v4067_v47 = vpop.eup %4066  ;;  %v2037_v7 = vadd.f32 1e-05, %v2035_v29  ;;  %v4034_v29 = vld [vmem:[%s5365_s0 + $0x1] ss:$0 sm:$0xff] }
 0xa22   : > { %v2039_v51 = vmul.f32 %v4067_v47, %v2036_v52  ;;  %vm2045_vm9 = vweird.f32 %v4067_v47 }
 0xa23   : > { %4068 = vrsqrt.f32 %v2037_v7  ;;  %vm2046_vm5 = vmor %vm2044_vm6, %vm2045_vm9  ;;  %vm2054_vm4 = vweird.f32 %v2037_v7 }
 0xa24   : > { %v2040_v34 = vmul.f32 %v4067_v47, %v2039_v51  ;;  %v4035_v51 = vld [vmem:[%s5309_s8 + $0x1] ss:$0 sm:$0xff] }
 0xa26   : > { %v2041_v62 = vmul.f32 0.5, %v2040_v34 }
 0xa28   : > { %v2042_v26 = vsub.f32 1.5, %v2041_v62 }
 0xa29   : > { %v4069_v61 = vpop.eup %4068 }
 0xa2a   : > { %v2043_v13 = vmul.f32 %v4067_v47, %v2042_v26  ;;  %v2049_v11 = vmul.f32 %v4069_v61, %v2037_v7  ;;  %vm2055_vm3 = vweird.f32 %v4069_v61 }
 0xa2b   : > { %vm2056_vm8 = vmor %vm2054_vm4, %vm2055_vm3  ;;  %vm5374_vm3 = vcmask 72704  }
 0xa2c   : > { %v2050_v37 = vmul.f32 %v4069_v61, %v2049_v11  ;;  %v2047_v14 = vsel %vm2046_vm5, %v4067_v47, %v2043_v13 }
 0xa2d   : > { %v2058_v28 = vmul.f32 %v2047_v14, %v2024_v59  ;;  %v3636_v59 = vld [vmem:[%s5312_s11 + $0x8] sm:$0xf] }
 0xa2e   : > { %v2051_v43 = vmul.f32 0.5, %v2050_v37 }
 0xa2f   : > { %v2063_v49 = vmul.f32 %v4031_v35, %v2058_v28 }
 0xa30   : > { %v2052_v55 = vsub.f32 1.5, %v2051_v43 }
 0xa31   : > { %v4880_v31 = vadd.f32 %v4032_v40, %v2063_v49 }
 0xa32   : > { %v2053_v39 = vmul.f32 %v4069_v61, %v2052_v55 }
 0xa34   : > { %v2057_v36 = vsel %vm2056_vm8, %v4069_v61, %v2053_v39 }
 0xa35   : > { %v2059_v16 = vmul.f32 %v2057_v36, %v2025_v1  ;;  %v3830_v1 = vld [vmem:[%s5312_s11 + $0x8] sm:$0x10] }
 0xa36   : > { %v3637_v4 = vor.u32 %v3830_v1, %v3636_v59 }
 0xa37   : > { %v2064_v58 = vmul.f32 %v4031_v35, %v2059_v16 }
 0xa38   : > { %v2245_v5 = vsel %vm993_vm1, %v3637_v4, 0 }
 0xa39   : > { %v4882_v27 = vadd.f32 %v4032_v40, %v2064_v58  ;;  %2254 = vmatpush.bf16.xpose.msrb.mxu3 %v2245_v5 }
 0xa3b   : > { %v2070_v52 = vpack.c.bf16 %v4882_v27, %v4880_v31 }
 0xa3d   : > { %3603 = vmatmul.msk.bf16.vlgmr.msra.gmra.mxu3 %vm852_vm0, %v2070_v52  ;;  %3617 = vmatmul.msk.bf16.vlgmr.msra.gmra.mxu1 %vm852_vm0, %v2070_v52 }
 0xa3e   : > { %3631 = vmatmul.msk.bf16.vlgmr.msrb.gmra.mxu2 %vm852_vm0, %v2070_v52 }
 0xaba   : > { %v2141_v44 = vpop.f32.mrf.mxu1 }
 0xabb   : > { %v2142_v30 = vadd.f32 %v4033_v32, %v2141_v44 }
 0xabd   : > { %v2204_v62 = vpack.c.bf16 %v2142_v30, %v2142_v30 }
 0xabf   : > { %v2292_v14 = vunpack.c.l.b16 %v2204_v62 }
 0xac0   : > { %v2105_v47 = vpop.f32.mrf.mxu3 }
 0xac1   : > { %v2177_v7 = vpop.f32.mrf.mxu2  ;;  %v2106_v26 = vadd.f32 %v4034_v29, %v2105_v47 }
 0xac2   : > { %v2143_v34 = vpop.f32.mrf.mxu1  ;;  %v4905_v37 = vadd.f32 %v4035_v51, %v2177_v7 }
 0xac3   : > { %v2144_v61 = vadd.f32 %v4033_v32, %v2143_v34  ;;  %v2182_v43 = vmul.f32 0.25, %v2106_v26 }
 0xac4   : > { %v2216_v40 = vpack.c.bf16 %v4905_v37, %v4905_v37 }
 0xac5   : > { %v2205_v13 = vpack.c.bf16 %v2144_v61, %v2144_v61  ;;  %v3955_v11 = vpack.i.bf16 %v2144_v61, %v2142_v30  ;;  %v2192_v16 = vpack.c.bf16 %v2182_v43, %v2182_v43 }
 0xac6   : > { %v2811_v44 = vunpack.c.l.b16 %v2216_v40 }
 0xac7   : > { %v2293_v55 = vunpack.c.l.b16 %v2205_v13  ;;  %3956 = vrot.lane.b32.xlu1 %v3955_v11, %s5369_s4  ;;  %v2227_v30 = vunpack.c.l.b16 %v2192_v16 }
 0xac8   : > { %v2107_v35 = vpop.f32.mrf.mxu3 }
 0xac9   : > { %v2294_v28 = vpack.c.b16 %v2293_v55, %v2292_v14  ;;  %v2108_v39 = vadd.f32 %v4034_v29, %v2107_v35  ;;  %v2179_v36 = vpop.f32.mrf.mxu2 }
 0xaca   : > { %v4910_v49 = vadd.f32 %v4035_v51, %v2179_v36 }
 0xacb   : > { %v2183_v58 = vmul.f32 0.25, %v2108_v39  ;;  %v2296_v52 = vsel %vm993_vm1, %v2294_v28, 0 }
 0xacc   : > { %v2217_v59 = vpack.c.bf16 %v4910_v49, %v4910_v49  ;;  %v3996_v1 = vpack.i.bf16 %v4910_v49, %v4905_v37  ;;  %2305 = vmatpush.bf16.xpose.msra.mxu0 %v2296_v52 }
 0xacd   : > { %v2193_v4 = vpack.c.bf16 %v2183_v58, %v2183_v58  ;;  %v3950_v5 = vpack.i.bf16 %v2183_v58, %v2182_v43 }
 0xace   : > { %v2812_v32 = vunpack.c.l.b16 %v2217_v59 }
 0xacf   : > { %v2228_v29 = vunpack.c.l.b16 %v2193_v4  ;;  %3951 = vrot.lane.b32.xlu0 %v3950_v5, %s5369_s4 }
 0xad0   : > { %v2813_v47 = vpack.c.b16 %v2812_v32, %v2811_v44 }
 0xad1   : > { %v2231_v7 = vpack.c.b16 %v2228_v29, %v2227_v30 }
 0xad3   : > { %3638 = vmatmul.msk.bf16.vlgmr.msrb.gmra.mxu3 %vm993_vm1, %v2231_v7  ;;  %3640 = vmatmul.msk.bf16.vlgmr.msra.gmra.mxu0 %vm993_vm1, %v2231_v7 }
 0xad4   : > { %2825 = vmatpush.bf16.msrb.mxu0 %v2813_v47 }
 0xb39   : > { %v3957_v51 = vpop.permute.xlu1 %3956 }
 0xb3a   : > { %v3959_v34 = vunpack.i.h.bf16 %v3957_v51  ;;  %v3958_v62 = vunpack.i.l.bf16 %v3957_v51 }
 0xb3c   : > { %v2207_v26 = vpack.c.bf16 %v3959_v34, %v3959_v34  ;;  %v2206_v61 = vpack.c.bf16 %v3958_v62, %v3958_v62 }
 0xb3e   : > { %v2315_v13 = vunpack.c.l.b16 %v2207_v26  ;;  %v2314_v11 = vunpack.c.l.b16 %v2206_v61 }
 0xb40   : > { %v2316_v14 = vpack.c.b16 %v2315_v13, %v2314_v11 }
 0xb41   : > { %v3952_v43 = vpop.permute.xlu0 %3951 }
 0xb42   : > { %v3954_v55 = vunpack.i.h.bf16 %v3952_v43  ;;  %v3953_v35 = vunpack.i.l.bf16 %v3952_v43  ;;  %v2318_v28 = vsel %vm993_vm1, %v2316_v14, 0 }
 0xb43   : > { %2327 = vmatpush.bf16.xpose.msrb.mxu1 %v2318_v28 }
 0xb44   : > { %v2195_v39 = vpack.c.bf16 %v3954_v55, %v3954_v55  ;;  %v2194_v36 = vpack.c.bf16 %v3953_v35, %v3953_v35 }
 0xb46   : > { %v2230_v40 = vunpack.c.l.b16 %v2195_v39  ;;  %v2229_v16 = vunpack.c.l.b16 %v2194_v36 }
 0xb48   : > { %v2232_v58 = vpack.c.b16 %v2230_v40, %v2229_v16 }
 0xb4a   : > { %3639 = vmatmul.msk.bf16.gmra.mxu3 %vm993_vm1, %v2232_v58  ;;  %3641 = vmatmul.msk.bf16.vlgmr.msrb.gmra.mxu1 %vm993_vm1, %v2232_v58 }
 0xb56   : > { %v2256_v52 = vpop.f32.mrf.mxu3 }
 0xb57   : > { %2407 = vperm.xlu0 %3964, %v2256_v52   ;;  %2335 = vperm.xlu1 %3961, %v2256_v52  }
 0xb58   : > { %2268 = vperm.xlu2 %3960, %v2256_v52  }
 0xb5e   : > { %v2258_v59 = vpop.f32.mrf.mxu3 }
 0xb5f   : > { %3968 = vset.pattern.permute.xlu0 %v4117_v20  ;;  %3962 = vset.pattern.permute.xlu1 %v4116_v19 }
 0xb60   : > { %3965 = vset.pattern.permute.xlu2 %v4114_v17  ;;  %2503 = vperm.xlu0 %3968, %v2256_v52  }
 0xb61   : > { %2359 = vperm.xlu1 %3962, %v2256_v52   ;;  %2431 = vperm.xlu2 %3965, %v2256_v52  }
 0xb68   : > { %3969 = vset.pattern.permute.xlu0 %v4110_v0 }
 0xb69   : > { %3963 = vset.pattern.permute.xlu1 %v4118_v21  ;;  %3966 = vset.pattern.permute.xlu2 %v4115_v18 }
 0xb6a   : > { %2383 = vperm.xlu1 %3963, %v2256_v52   ;;  %2455 = vperm.xlu2 %3966, %v2256_v52  }
 0xb6b   : > { %2273 = vperm.xlu0 %3969, %v2258_v59  }
 0xb72   : > { %3967 = vset.pattern.permute.xlu1 %v4119_v23  ;;  %3971 = vset.pattern.permute.xlu2 %v4116_v19 }
 0xb73   : > { %3970 = vset.pattern.permute.xlu0 %v4113_v57  ;;  %2479 = vperm.xlu1 %3967, %v2256_v52  }
 0xb74   : > { %2363 = vperm.xlu2 %3971, %v2258_v59   ;;  %2339 = vperm.xlu0 %3970, %v2258_v59  }
 0xb7b   : > { %3973 = vset.pattern.permute.xlu1 %v4112_v56 }
 0xb7c   : > { %3972 = vset.pattern.permute.xlu2 %v4118_v21  ;;  %3975 = vset.pattern.permute.xlu0 %v4115_v18 }
 0xb7d   : > { %2411 = vperm.xlu1 %3973, %v2258_v59   ;;  %2387 = vperm.xlu2 %3972, %v2258_v59  }
 0xb7e   : > { %2459 = vperm.xlu0 %3975, %v2258_v59  }
 0xb85   : > { %3974 = vset.pattern.permute.xlu1 %v4114_v17  ;;  %3976 = vset.pattern.permute.xlu2 %v4119_v23 }
 0xb86   : > { %2435 = vperm.xlu1 %3974, %v2258_v59   ;;  %2483 = vperm.xlu2 %3976, %v2258_v59  }
 0xb87   : > { %3983 = vset.pattern.permute.xlu0 %v4114_v17 }
 0xb8e   : > { %3977 = vset.pattern.permute.xlu1 %v4117_v20  ;;  %3979 = vset.pattern.permute.xlu2 %v4113_v57 }
 0xb8f   : > { %2507 = vperm.xlu1 %3977, %v2258_v59  }
 0xb97   : > { %3978 = vset.pattern.permute.xlu1 %v4110_v0 }
 0xbb2   : > { %v2269_v44 = vpop.permute.xlu2 %2268 }
 0xbbb   : > { %v2432_v29 = vpop.permute.xlu2 %2431 }
 0xbc4   : > { %v2456_v47 = vpop.permute.xlu2 %2455 }
 0xbc5   : > { %v2470_v59 = vmul.f32 %v4523_v8, %v2456_v47 }
 0xbc9   : > { %v2408_v32 = vpop.permute.xlu0 %2407 }
 0xbca   : > { %v2422_v55 = vmul.f32 %v4510_v63, %v2408_v32 }
 0xbcd   : > { %v2261_v4 = vpop.f32.mrf.mxu3 }
 0xbce   : > { %2439 = vperm.xlu0 %3983, %v2261_v4   ;;  %2343 = vperm.xlu2 %3979, %v2261_v4   ;;  %v2364_v62 = vpop.permute.xlu2 %2363 }
 0xbcf   : > { %2278 = vperm.xlu1 %3978, %v2261_v4   ;;  %v2375_v58 = vmul.f32 %v4418_v50, %v2364_v62 }
 0xbd5   : > { %v2263_v5 = vpop.f32.mrf.mxu3 }
 0xbd6   : > { %3988 = vset.pattern.permute.xlu0 %v4116_v19  ;;  %3980 = vset.pattern.permute.xlu2 %v4116_v19  ;;  %v2336_v19 = vpop.permute.xlu1 %2335 }
 0xbd7   : > { %3981 = vset.pattern.permute.xlu1 %v4118_v21  ;;  %2367 = vperm.xlu2 %3980, %v2261_v4   ;;  %v2350_v51 = vmul.f32 %v4468_v38, %v2336_v19  ;;  %v2388_v40 = vpop.permute.xlu2 %2387 }
 0xbd8   : > { %2391 = vperm.xlu1 %3981, %v2261_v4   ;;  %2371 = vperm.xlu0 %3988, %v2263_v5   ;;  %v2399_v19 = vmul.f32 %v4429_v60, %v2388_v40 }
 0xbde   : > { %v2360_v30 = vpop.permute.xlu1 %2359 }
 0xbdf   : > { %3984 = vset.pattern.permute.xlu2 %v4115_v18 }
 0xbe0   : > { %3982 = vset.pattern.permute.xlu1 %v4112_v56  ;;  %3994 = vset.pattern.permute.xlu0 %v4119_v23 }
 0xbe1   : > { %2463 = vperm.xlu2 %3984, %v2261_v4   ;;  %2415 = vperm.xlu1 %3982, %v2261_v4  }
 0xbe2   : > { %2491 = vperm.xlu0 %3994, %v2263_v5  }
 0xbe9   : > { %3985 = vset.pattern.permute.xlu2 %v4119_v23  ;;  %3987 = vset.pattern.permute.xlu1 %v4113_v57  ;;  %v2504_v57 = vpop.permute.xlu0 %2503  ;;  %v2384_v23 = vpop.permute.xlu1 %2383 }
 0xbea   : > { %2487 = vperm.xlu2 %3985, %v2261_v4   ;;  %2347 = vperm.xlu1 %3987, %v2263_v5   ;;  %v2398_v61 = vmul.f32 %v4498_v41, %v2384_v23 }
 0xbeb   : > { %4021 = vset.pattern.permute.xlu0 %v4117_v20 }
 0xbf1   : > { %v2480_v7 = vpop.permute.xlu1 %2479 }
 0xbf2   : > { %3986 = vset.pattern.permute.xlu2 %v4110_v0  ;;  %3991 = vset.pattern.permute.xlu1 %v4114_v17  ;;  %v2274_v0 = vpop.permute.xlu0 %2273  ;;  %v2286_v17 = vmul.f32 %v4460_v33, %v2269_v44  ;;  %v2494_v32 = vmul.f32 %v4530_v22, %v2480_v7 }
 0xbf3   : > { %2443 = vperm.xlu1 %3991, %v2263_v5   ;;  %2283 = vperm.xlu2 %3986, %v2263_v5   ;;  %v2287_v14 = vmul.f32 %v4410_v45, %v2274_v0 }
 0xbf9   : > { %v2412_v43 = vpop.permute.xlu1 %2411 }
 0xbfa   : > { %v2340_v13 = vpop.permute.xlu0 %2339 }
 0xbfb   : > { %3992 = vset.pattern.permute.xlu1 %v4115_v18  ;;  %3989 = vset.pattern.permute.xlu2 %v4118_v21  ;;  %v2307_v18 = vpop.f32.mrf.mxu0  ;;  %v2374_v21 = vmul.f32 %v4487_v53, %v2360_v30  ;;  %v2351_v35 = vmul.f32 %v4414_v46, %v2340_v13  ;;  %v2423_v30 = vmul.f32 %v4434_v2, %v2412_v43 }
 0xbfc   : > { %2467 = vperm.xlu1 %3992, %v2263_v5   ;;  %2395 = vperm.xlu2 %3989, %v2263_v5   ;;  %v2308_v34 = vadd.f32 %v2307_v18, %v2286_v17  ;;  %v2484_v17 = vpop.permute.xlu2 %2483 }
 0xbfd   : > { %v2495_v7 = vmul.f32 %v4455_v15, %v2484_v17 }
 0xbfe   : > { %v2354_v26 = vadd.f32 %v2350_v51, %v2308_v34  ;;  %v2518_v34 = vmul.f32 %v4533_v25, %v2504_v57 }
 0xc02   : > { %v2460_v18 = vpop.permute.xlu0 %2459 }
 0xc03   : > { %v2309_v28 = vpop.f32.mrf.mxu0  ;;  %v2471_v62 = vmul.f32 %v4450_v10, %v2460_v18 }
 0xc04   : > { %3993 = vset.pattern.permute.xlu1 %v4117_v20  ;;  %3990 = vset.pattern.permute.xlu2 %v4112_v56  ;;  %v2378_v56 = vadd.f32 %v2374_v21, %v2354_v26  ;;  %v2310_v36 = vadd.f32 %v2309_v28, %v2287_v14 }
 0xc05   : > { %2511 = vperm.xlu1 %3993, %v2261_v4   ;;  %2419 = vperm.xlu2 %3990, %v2263_v5  }
 0xc06   : > { %v2402_v11 = vadd.f32 %v2398_v61, %v2378_v56  ;;  %v2355_v16 = vadd.f32 %v2351_v35, %v2310_v36 }
 0xc08   : > { %v2426_v39 = vadd.f32 %v2422_v55, %v2402_v11  ;;  %v2379_v4 = vadd.f32 %v2375_v58, %v2355_v16  ;;  %v2329_v16 = vpop.f32.mrf.mxu1 }
 0xc0a   : > { %v2403_v23 = vadd.f32 %v2399_v19, %v2379_v4 }
 0xc0c   : > { %v2427_v51 = vadd.f32 %v2423_v30, %v2403_v23 }
 0xc0d   : > { %3995 = vset.pattern.permute.xlu2 %v4117_v20  ;;  %v2446_v20 = vmul.f32 %v4515_v3, %v2432_v29 }
 0xc0e   : > { %2515 = vperm.xlu2 %3995, %v2263_v5   ;;  %v2436_v5 = vpop.permute.xlu1 %2435 }
 0xc0f   : > { %v2450_v52 = vadd.f32 %v2446_v20, %v2426_v39  ;;  %v2447_v0 = vmul.f32 %v4446_v6, %v2436_v5 }
 0xc10   : > { %v2331_v5 = vpop.f32.mrf.mxu1 }
 0xc11   : > { %v2474_v44 = vadd.f32 %v2470_v59, %v2450_v52  ;;  %v2451_v21 = vadd.f32 %v2447_v0, %v2427_v51 }
 0xc13   : > { %v2498_v29 = vadd.f32 %v2494_v32, %v2474_v44  ;;  %v2475_v61 = vadd.f32 %v2471_v62, %v2451_v21 }
 0xc15   : > { %v2522_v47 = vadd.f32 %v2518_v34, %v2498_v29  ;;  %v2499_v14 = vadd.f32 %v2495_v7, %v2475_v61 }
 0xc16   : > { %v2508_v26 = vpop.permute.xlu1 %2507 }
 0xc17   : > { %v2519_v13 = vmul.f32 %v4474_v48, %v2508_v26  ;;  %v4977_v11 = vsel %vm764_vm7, %v2522_v47, -10000.0 }
 0xc18   : > { %v2530_v43 = vsel %vm993_vm1, %v4977_v11, -inf }
 0xc19   : > { %v2523_v57 = vadd.f32 %v2519_v13, %v2499_v14 }
 0xc1b   : > { %v4983_v55 = vsel %vm765_vm15, %v2523_v57, -10000.0 }
 0xc1c   : > { %v2533_v28 = vsel %vm993_vm1, %v4983_v55, -inf }
 0xc28   : > { %v2344_v56 = vpop.permute.xlu2 %2343 }
 0xc29   : > { %v2352_v18 = vmul.f32 %v4468_v38, %v2344_v56 }
 0xc2f   : > { %2531 = vmax.xlane.f32.xlu1 %v2530_v43 }
 0xc31   : > { %v2368_v35 = vpop.permute.xlu2 %2367 }
 0xc32   : > { %v2376_v26 = vmul.f32 %v4487_v53, %v2368_v35 }
 0xc37   : > { %2534 = vmax.xlane.f32.xlu2 %v2533_v28 }
 0xc3b   : > { %v2464_v39 = vpop.permute.xlu2 %2463 }
 0xc40   : > { %v2440_v59 = vpop.permute.xlu0 %2439 }
 0xc41   : > { %v2279_v36 = vpop.permute.xlu1 %2278 }
 0xc42   : > { %v2288_v19 = vmul.f32 %v4460_v33, %v2279_v36 }
 0xc44   : > { %v2488_v40 = vpop.permute.xlu2 %2487  ;;  %v2330_v29 = vadd.f32 %v2329_v16, %v2288_v19 }
 0xc46   : > { %v2356_v21 = vadd.f32 %v2352_v18, %v2330_v29 }
 0xc48   : > { %v2380_v14 = vadd.f32 %v2376_v26, %v2356_v21 }
 0xc4a   : > { %v2392_v20 = vpop.permute.xlu1 %2391  ;;  %v2372_v0 = vpop.permute.xlu0 %2371 }
 0xc4b   : > { %v2377_v51 = vmul.f32 %v4418_v50, %v2372_v0  ;;  %v2400_v61 = vmul.f32 %v4498_v41, %v2392_v20 }
 0xc4d   : > { %v2284_v58 = vpop.permute.xlu2 %2283  ;;  %v2404_v28 = vadd.f32 %v2400_v61, %v2380_v14 }
 0xc4e   : > { %v2289_v4 = vmul.f32 %v4410_v45, %v2284_v58  ;;  %v2448_v58 = vmul.f32 %v4515_v3, %v2440_v59 }
 0xc50   : > { %v2332_v30 = vadd.f32 %v2331_v5, %v2289_v4 }
 0xc53   : > { %v2416_v52 = vpop.permute.xlu1 %2415 }
 0xc54   : > { %v2424_v43 = vmul.f32 %v4510_v63, %v2416_v52  ;;  %v2492_v4 = vpop.permute.xlu0 %2491  ;;  %v2472_v52 = vmul.f32 %v4523_v8, %v2464_v39 }
 0xc56   : > { %v2396_v44 = vpop.permute.xlu2 %2395  ;;  %v2428_v16 = vadd.f32 %v2424_v43, %v2404_v28 }
 0xc57   : > { %v2401_v47 = vmul.f32 %v4429_v60, %v2396_v44 }
 0xc58   : > { %v2452_v20 = vadd.f32 %v2448_v58, %v2428_v16 }
 0xc5c   : > { %v2348_v32 = vpop.permute.xlu1 %2347 }
 0xc5d   : > { %v2353_v23 = vmul.f32 %v4414_v46, %v2348_v32  ;;  %v2497_v32 = vmul.f32 %v4455_v15, %v2492_v4 }
 0xc5f   : > { %v2357_v17 = vadd.f32 %v2353_v23, %v2332_v30  ;;  %v2420_v7 = vpop.permute.xlu2 %2419 }
 0xc60   : > { %v2425_v57 = vmul.f32 %v4434_v2, %v2420_v7 }
 0xc61   : > { %v2381_v34 = vadd.f32 %v2377_v51, %v2357_v17  ;;  %v2476_v17 = vadd.f32 %v2472_v52, %v2452_v20  ;;  %v2496_v51 = vmul.f32 %v4530_v22, %v2488_v40 }
 0xc63   : > { %v2405_v13 = vadd.f32 %v2401_v47, %v2381_v34  ;;  %v2500_v34 = vadd.f32 %v2496_v51, %v2476_v17 }
 0xc65   : > { %v2444_v62 = vpop.permute.xlu1 %2443  ;;  %v2429_v36 = vadd.f32 %v2425_v57, %v2405_v13 }
 0xc66   : > { %v2449_v56 = vmul.f32 %v4446_v6, %v2444_v62 }
 0xc68   : > { %v2453_v19 = vadd.f32 %v2449_v56, %v2429_v36  ;;  %v2516_v44 = vpop.permute.xlu2 %2515 }
 0xc69   : > { %v2521_v23 = vmul.f32 %v4474_v48, %v2516_v44 }
 0xc6e   : > { %v2468_v5 = vpop.permute.xlu1 %2467 }
 0xc6f   : > { %v2473_v35 = vmul.f32 %v4450_v10, %v2468_v5 }
 0xc71   : > { %v2477_v30 = vadd.f32 %v2473_v35, %v2453_v19 }
 0xc73   : > { %v2501_v0 = vadd.f32 %v2497_v32, %v2477_v30 }
 0xc75   : > { %v2525_v29 = vadd.f32 %v2521_v23, %v2501_v0 }
 0xc77   : > { %v2512_v59 = vpop.permute.xlu1 %2511  ;;  %v2529_v18 = vsel %vm765_vm15, %v2525_v29, -10000.0  ;;  %vm5370_vm15 = vcmask 56320  }
 0xc78   : > { %v2520_v21 = vmul.f32 %v4533_v25, %v2512_v59  ;;  %v2539_v47 = vsel %vm993_vm1, %v2529_v18, -inf  ;;  %vm5372_vm8 = vmmov %vm5370_vm15 }
 0xc79   : > { %2540 = vmax.xlane.f32.xlu1 %v2539_v47  ;;  %vm5377_vm5 = vmmov %vm5372_vm8 }
 0xc7a   : > { %v2524_v62 = vadd.f32 %v2520_v21, %v2500_v34 }
 0xc7c   : > { %v2528_v39 = vsel %vm764_vm7, %v2524_v62, -10000.0  ;;  %vm5371_vm7 = vcmask 64512  }
 0xc7d   : > { %v2536_v26 = vsel %vm993_vm1, %v2528_v39, -inf  ;;  %vm5373_vm4 = vmmov %vm5371_vm7 }
 0xc7e   : > { %2537 = vmax.xlane.f32.xlu0 %v2536_v26 }
 0xca2   : > { %v2532_v61 = vpop.xlane.xlu1 %2531 }
 0xca3   : > { %v2542_v40 = vsub.f32 %v4977_v11, %v2532_v61 }
 0xca5   : > { %v2546_v7 = vmul.f32 1.442695, %v2542_v40 }
 0xca7   : > { %4070 = vpow2.f32 %v2546_v7 }
 0xcaa   : > { %v2535_v54 = vpop.xlane.xlu2 %2534 }
 0xcab   : > { %v2543_v13 = vsub.f32 %v4983_v55, %v2535_v54 }
 0xcad   : > { %v4071_v14 = vpop.eup %4070  ;;  %v2548_v43 = vmul.f32 1.442695, %v2543_v13 }
 0xcae   : > { %v2554_v57 = vsel %vm993_vm1, %v4071_v14, 0.0 }
 0xcaf   : > { %4072 = vpow2.f32 %v2548_v43  ;;  %2555 = vadd.xlane.f32.xlu2 %v2554_v57 }
 0xcb5   : > { %v4073_v28 = vpop.eup %4072 }
 0xcb6   : > { %v2557_v42 = vsel %vm993_vm1, %v4073_v28, 0.0 }
 0xcb7   : > { %2558 = vadd.xlane.f32.xlu0 %v2557_v42 }
 0xcec   : > { %v2541_v36 = vpop.xlane.xlu1 %2540 }
 0xced   : > { %v2545_v56 = vsub.f32 %v2529_v18, %v2541_v36 }
 0xcef   : > { %v2552_v16 = vmul.f32 1.442695, %v2545_v56 }
 0xcf1   : > { %4074 = vpow2.f32 %v2552_v16  ;;  %v2538_v11 = vpop.xlane.xlu0 %2537 }
 0xcf2   : > { %v2544_v58 = vsub.f32 %v2528_v39, %v2538_v11 }
 0xcf4   : > { %v2550_v4 = vmul.f32 1.442695, %v2544_v58 }
 0xcf6   : > { %4076 = vpow2.f32 %v2550_v4 }
 0xcf7   : > { %v5015_v5 = vpop.eup %4074 }
 0xcf8   : > { %v2563_v55 = vsel %vm993_vm1, %v5015_v5, 0.0 }
 0xcf9   : > { %2564 = vadd.xlane.f32.xlu2 %v2563_v55 }
 0xcfc   : > { %v5019_v19 = vpop.eup %4076 }
 0xcfd   : > { %v2560_v35 = vsel %vm993_vm1, %v5019_v19, 0.0 }
 0xcfe   : > { %2561 = vadd.xlane.f32.xlu1 %v2560_v35 }
 0xd22   : > { %v2556_v20 = vpop.xlane.xlu2 %2555 }
 0xd23   : > { %4078 = vrcp.f32 %v2556_v20 }
 0xd29   : > { %v4079_v44 = vpop.eup %4078 }
 0xd2a   : > { %v2570_v32 = vmul.f32 %v4079_v44, %v4071_v14  ;;  %v2559_v30 = vpop.xlane.xlu0 %2558 }
 0xd2b   : > { %4080 = vrcp.f32 %v2559_v30 }
 0xd2c   : > { %v2610_v52 = vmul.f32 %v4487_v53, %v2570_v32  ;;  %v2594_v23 = vmul.f32 %v4468_v38, %v2570_v32  ;;  %v2578_v0 = vmul.f32 %v4460_v33, %v2570_v32  ;;  %v2658_v34 = vmul.f32 %v4515_v3, %v2570_v32 }
 0xd2d   : > { %v2642_v21 = vmul.f32 %v4510_v63, %v2570_v32  ;;  %v2574_v47 = vpack.c.bf16 %v2570_v32, %v2570_v32  ;;  %v2626_v62 = vmul.f32 %v4498_v41, %v2570_v32  ;;  %v2706_v14 = vmul.f32 %v4533_v25, %v2570_v32 }
 0xd2e   : > { %v2614_v17 = vsel %vm993_vm1, %v2610_v52, 0.0  ;;  %v2598_v29 = vsel %vm993_vm1, %v2594_v23, 0.0  ;;  %v2582_v51 = vsel %vm993_vm1, %v2578_v0, 0.0  ;;  %v2662_v26 = vsel %vm993_vm1, %v2658_v34, 0.0 }
 0xd2f   : > { %2615 = vadd.xlane.f32.xlu1 %v2614_v17  ;;  %2599 = vadd.xlane.f32.xlu2 %v2598_v29  ;;  %v2646_v61 = vsel %vm993_vm1, %v2642_v21, 0.0  ;;  %v2806_v40 = vunpack.c.l.b16 %v2574_v47  ;;  %v2630_v54 = vsel %vm993_vm1, %v2626_v62, 0.0  ;;  %v2690_v43 = vmul.f32 %v4530_v22, %v2570_v32 }
 0xd30   : > { %2583 = vadd.xlane.f32.xlu0 %v2582_v51  ;;  %v2674_v57 = vmul.f32 %v4523_v8, %v2570_v32 }
 0xd31   : > { %v4081_v59 = vpop.eup %4080  ;;  %v2694_v42 = vsel %vm993_vm1, %v2690_v43, 0.0 }
 0xd32   : > { %v2571_v18 = vmul.f32 %v4081_v59, %v4073_v28  ;;  %v2710_v28 = vsel %vm993_vm1, %v2706_v14, 0.0  ;;  %v2678_v36 = vsel %vm993_vm1, %v2674_v57, 0.0 }
 0xd34   : > { %v2575_v39 = vpack.c.bf16 %v2571_v18, %v2571_v18  ;;  %v2579_v56 = vmul.f32 %v4410_v45, %v2571_v18  ;;  %v2611_v16 = vmul.f32 %v4418_v50, %v2571_v18  ;;  %v2595_v11 = vmul.f32 %v4414_v46, %v2571_v18 }
 0xd35   : > { %v2627_v35 = vmul.f32 %v4429_v60, %v2571_v18  ;;  %v2659_v20 = vmul.f32 %v4446_v6, %v2571_v18  ;;  %v2643_v44 = vmul.f32 %v4434_v2, %v2571_v18  ;;  %v2675_v23 = vmul.f32 %v4450_v10, %v2571_v18 }
 0xd36   : > { %v2807_v7 = vunpack.c.l.b16 %v2575_v39  ;;  %v2585_v58 = vsel %vm993_vm1, %v2579_v56, 0.0  ;;  %v2617_v4 = vsel %vm993_vm1, %v2611_v16, 0.0  ;;  %v2601_v55 = vsel %vm993_vm1, %v2595_v11, 0.0 }
 0xd37   : > { %2663 = vadd.xlane.f32.xlu1 %v2662_v26  ;;  %2647 = vadd.xlane.f32.xlu2 %v2646_v61  ;;  %v2633_v32 = vsel %vm993_vm1, %v2627_v35, 0.0  ;;  %v2665_v30 = vsel %vm993_vm1, %v2659_v20, 0.0  ;;  %v2649_v52 = vsel %vm993_vm1, %v2643_v44, 0.0  ;;  %v2707_v0 = vmul.f32 %v4474_v48, %v2571_v18 }
 0xd38   : > { %2631 = vadd.xlane.f32.xlu0 %v2630_v54  ;;  %v2808_v13 = vpack.c.b16 %v2807_v7, %v2806_v40  ;;  %v2691_v17 = vmul.f32 %v4455_v15, %v2571_v18  ;;  %v2681_v29 = vsel %vm993_vm1, %v2675_v23, 0.0 }
 0xd39   : > { %v2713_v51 = vsel %vm993_vm1, %v2707_v0, 0.0 }
 0xd3a   : > { %3650 = vmatmul.msk.bf16.vlgmr.msrb.gmra.mxu0 %vm993_vm1, %v2808_v13  ;;  %v2697_v59 = vsel %vm993_vm1, %v2691_v17, 0.0 }
 0xd3f   : > { %2711 = vadd.xlane.f32.xlu1 %v2710_v28  ;;  %2695 = vadd.xlane.f32.xlu2 %v2694_v42 }
 0xd40   : > { %2679 = vadd.xlane.f32.xlu0 %v2678_v36 }
 0xd47   : > { %2586 = vadd.xlane.f32.xlu1 %v2585_v58  ;;  %2618 = vadd.xlane.f32.xlu2 %v2617_v4 }
 0xd48   : > { %2602 = vadd.xlane.f32.xlu0 %v2601_v55 }
 0xd4f   : > { %2634 = vadd.xlane.f32.xlu1 %v2633_v32  ;;  %2666 = vadd.xlane.f32.xlu2 %v2665_v30 }
 0xd50   : > { %2650 = vadd.xlane.f32.xlu0 %v2649_v52 }
 0xd57   : > { %2682 = vadd.xlane.f32.xlu1 %v2681_v29  ;;  %2714 = vadd.xlane.f32.xlu2 %v2713_v51 }
 0xd58   : > { %2698 = vadd.xlane.f32.xlu0 %v2697_v59 }
 0xd6c   : > { %v2565_v34 = vpop.xlane.xlu2 %2564 }
 0xd6d   : > { %4082 = vrcp.f32 %v2565_v34 }
 0xd71   : > { %v2562_v21 = vpop.xlane.xlu1 %2561 }
 0xd72   : > { %4084 = vrcp.f32 %v2562_v21 }
 0xd73   : > { %v4083_v47 = vpop.eup %4082 }
 0xd74   : > { %v2573_v39 = vmul.f32 %v4083_v47, %v5015_v5 }
 0xd76   : > { %v2577_v14 = vpack.c.bf16 %v2573_v39, %v2573_v39  ;;  %v2613_v58 = vmul.f32 %v4418_v50, %v2573_v39  ;;  %v2629_v4 = vmul.f32 %v4429_v60, %v2573_v39  ;;  %v2597_v55 = vmul.f32 %v4414_v46, %v2573_v39 }
 0xd77   : > { %v2661_v35 = vmul.f32 %v4446_v6, %v2573_v39  ;;  %v2677_v20 = vmul.f32 %v4450_v10, %v2573_v39  ;;  %v2645_v44 = vmul.f32 %v4434_v2, %v2573_v39  ;;  %v2709_v32 = vmul.f32 %v4474_v48, %v2573_v39 }
 0xd78   : > { %v4085_v62 = vpop.eup %4084  ;;  %v2693_v6 = vmul.f32 %v4455_v15, %v2573_v39 }
 0xd79   : > { %v2572_v26 = vmul.f32 %v4085_v62, %v5019_v19  ;;  %v2671_v50 = vsel %vm993_vm1, %v2661_v35, 0.0  ;;  %v2687_v60 = vsel %vm993_vm1, %v2677_v20, 0.0  ;;  %v2655_v46 = vsel %vm993_vm1, %v2645_v44, 0.0 }
 0xd7a   : > { %v2719_v2 = vsel %vm993_vm1, %v2709_v32, 0.0  ;;  %v2703_v17 = vsel %vm993_vm1, %v2693_v6, 0.0 }
 0xd7b   : > { %v2612_v18 = vmul.f32 %v4487_v53, %v2572_v26  ;;  %v2596_v61 = vmul.f32 %v4468_v38, %v2572_v26  ;;  %v2580_v40 = vmul.f32 %v4460_v33, %v2572_v26  ;;  %v2576_v43 = vpack.c.bf16 %v2572_v26, %v2572_v26 }
 0xd7c   : > { %v2660_v5 = vmul.f32 %v4515_v3, %v2572_v26  ;;  %v2644_v19 = vmul.f32 %v4510_v63, %v2572_v26  ;;  %v5072_v38 = vunpack.c.l.b16 %v2577_v14  ;;  %v2628_v33 = vmul.f32 %v4498_v41, %v2572_v26 }
 0xd7d   : > { %v2620_v7 = vsel %vm993_vm1, %v2612_v18, 0.0  ;;  %v2604_v54 = vsel %vm993_vm1, %v2596_v61, 0.0  ;;  %v2588_v13 = vsel %vm993_vm1, %v2580_v40, 0.0  ;;  %v5070_v53 = vunpack.c.l.b16 %v2576_v43 }
 0xd7e   : > { %2621 = vadd.xlane.f32.xlu1 %v2620_v7  ;;  %2605 = vadd.xlane.f32.xlu2 %v2604_v54  ;;  %v2668_v28 = vsel %vm993_vm1, %v2660_v5, 0.0  ;;  %v2652_v42 = vsel %vm993_vm1, %v2644_v19, 0.0  ;;  %v2636_v36 = vsel %vm993_vm1, %v2628_v33, 0.0  ;;  %v2692_v63 = vmul.f32 %v4530_v22, %v2572_v26 }
 0xd7f   : > { %2589 = vadd.xlane.f32.xlu0 %v2588_v13  ;;  %v2836_v57 = vpack.c.b16 %v5072_v38, %v5070_v53  ;;  %v2581_v3 = vmul.f32 %v4410_v45, %v2573_v39  ;;  %v2676_v56 = vmul.f32 %v4523_v8, %v2572_v26  ;;  %v2623_v22 = vsel %vm993_vm1, %v2613_v58, 0.0  ;;  %v3832_v53 = vld [vmem:[%s5310_s9 + $0x10] sm:$0xff] }
 0xd80   : > { %v2700_v41 = vsel %vm993_vm1, %v2692_v63, 0.0  ;;  %v2639_v45 = vsel %vm993_vm1, %v2629_v4, 0.0  ;;  %v2607_v8 = vsel %vm993_vm1, %v2597_v55, 0.0  ;;  %v2708_v30 = vmul.f32 %v4533_v25, %v2572_v26 }
 0xd81   : > { %v2591_v16 = vsel %vm993_vm1, %v2581_v3, 0.0  ;;  %v2684_v11 = vsel %vm993_vm1, %v2676_v56, 0.0 }
 0xd82   : > { %v2716_v0 = vsel %vm993_vm1, %v2708_v30, 0.0 }
 0xd86   : > { %2669 = vadd.xlane.f32.xlu1 %v2668_v28  ;;  %2653 = vadd.xlane.f32.xlu2 %v2652_v42 }
 0xd87   : > { %2637 = vadd.xlane.f32.xlu0 %v2636_v36 }
 0xd8e   : > { %2701 = vadd.xlane.f32.xlu2 %v2700_v41  ;;  %2592 = vadd.xlane.f32.xlu1 %v2591_v16 }
 0xd8f   : > { %2685 = vadd.xlane.f32.xlu0 %v2684_v11 }
 0xd96   : > { %2624 = vadd.xlane.f32.xlu2 %v2623_v22  ;;  %2640 = vadd.xlane.f32.xlu1 %v2639_v45 }
 0xd97   : > { %2608 = vadd.xlane.f32.xlu0 %v2607_v8 }
 0xd9e   : > { %2672 = vadd.xlane.f32.xlu2 %v2671_v50  ;;  %2688 = vadd.xlane.f32.xlu1 %v2687_v60 }
 0xd9f   : > { %2656 = vadd.xlane.f32.xlu0 %v2655_v46 }
 0xda2   : > { %v2616_v52 = vpop.xlane.xlu1 %2615  ;;  %v2600_v23 = vpop.xlane.xlu2 %2599 }
 0xda3   : > { %v2584_v10 = vpop.xlane.xlu0 %2583 }
 0xda4   : > { %v2722_v21 = vsel %vm1482_vm10, %v2584_v10, %v2600_v23 }
 0xda5   : > { %v2726_v62 = vsel %vm1487_vm11, %v2722_v21, %v2616_v52 }
 0xda6   : > { %2720 = vadd.xlane.f32.xlu2 %v2719_v2  ;;  %2717 = vadd.xlane.f32.xlu1 %v2716_v0 }
 0xda7   : > { %2704 = vadd.xlane.f32.xlu0 %v2703_v17 }
 0xdaa   : > { %v2664_v29 = vpop.xlane.xlu1 %2663  ;;  %v2648_v51 = vpop.xlane.xlu2 %2647 }
 0xdab   : > { %v2632_v59 = vpop.xlane.xlu0 %2631 }
 0xdac   : > { %v2730_v26 = vsel %vm1492_vm12, %v2726_v62, %v2632_v59 }
 0xdad   : > { %v2734_v18 = vsel %vm1497_vm13, %v2730_v26, %v2648_v51 }
 0xdae   : > { %v2738_v40 = vsel %vm1502_vm14, %v2734_v18, %v2664_v29 }
 0xdb2   : > { %v2712_v48 = vpop.xlane.xlu1 %2711  ;;  %v2696_v34 = vpop.xlane.xlu2 %2695 }
 0xdb3   : > { %v2680_v25 = vpop.xlane.xlu0 %2679 }
 0xdb4   : > { %v2742_v13 = vsel %vm1507_vm2, %v2738_v40, %v2680_v25 }
 0xdb5   : > { %v2746_v37 = vsel %vm5370_vm15, %v2742_v13, %v2696_v34 }
 0xdb7   : > { %v2827_v38 = vpop.f32.mrf.mxu0 }
 0xdba   : > { %v2587_v47 = vpop.xlane.xlu1 %2586  ;;  %v2619_v15 = vpop.xlane.xlu2 %2618 }
 0xdbb   : > { %v2603_v39 = vpop.xlane.xlu0 %2602  ;;  %3997 = vrot.lane.b32.xlu0 %v3996_v1, %s5369_s4  ;;  %v2750_v1 = vsel %vm5371_vm7, %v2746_v37, %v2712_v48  ;;  %vm5382_vm7 = vcmask 1046528  }
 0xdbc   : > { %v2723_v61 = vsel %vm1482_vm10, %v2587_v47, %v2603_v39  ;;  %v2754_v36 = vpack.c.bf16 %v2750_v1, %v2750_v1 }
 0xdbd   : > { %v2727_v14 = vsel %vm1487_vm11, %v2723_v61, %v2619_v15 }
 0xdbe   : > { %v2765_v16 = vunpack.c.l.b16 %v2754_v36  ;;  %v3833_v36 = vld [vmem:[%s5310_s9 + $0x18] sm:$0xff] }
 0xdbf   : > { %2902 = vmatpush.bf16.msra.mxu3 %v3833_v36 }
 0xdc2   : > { %v2635_v7 = vpop.xlane.xlu1 %2634  ;;  %v2667_v54 = vpop.xlane.xlu2 %2666 }
 0xdc3   : > { %v2651_v43 = vpop.xlane.xlu0 %2650  ;;  %v2731_v5 = vsel %vm1492_vm12, %v2727_v14, %v2635_v7  ;;  %2903 = vmatpush.bf16.msra.mxu3 %v3832_v53 }
 0xdc4   : > { %v2735_v49 = vsel %vm1497_vm13, %v2731_v5, %v2651_v43 }
 0xdc5   : > { %v2739_v19 = vsel %vm1502_vm14, %v2735_v49, %v2667_v54 }
 0xdca   : > { %v2683_v33 = vpop.xlane.xlu1 %2682  ;;  %v2715_v3 = vpop.xlane.xlu2 %2714 }
 0xdcb   : > { %v2743_v28 = vsel %vm1507_vm2, %v2739_v19, %v2683_v33  ;;  %v2699_v42 = vpop.xlane.xlu0 %2698 }
 0xdcc   : > { %v2747_v63 = vsel %vm5372_vm8, %v2743_v28, %v2699_v42 }
 0xdcd   : > { %v2751_v56 = vsel %vm5373_vm4, %v2747_v63, %v2715_v3 }
 0xdce   : > { %v2755_v41 = vpack.c.bf16 %v2751_v56, %v2751_v56 }
 0xdd0   : > { %v2766_v11 = vunpack.c.l.b16 %v2755_v41 }
 0xdd2   : > { %v2769_v58 = vpack.c.b16 %v2766_v11, %v2765_v16 }
 0xdd4   : > { %3648 = vmatmul.msk.bf16.vlgmr.msra.gmra.mxu2 %vm5374_vm3, %v2769_v58 }
 0xdf1   : > { %v2622_v4 = vpop.xlane.xlu1 %2621  ;;  %v2606_v55 = vpop.xlane.xlu2 %2605 }
 0xdf2   : > { %v2590_v22 = vpop.xlane.xlu0 %2589 }
 0xdf3   : > { %v2724_v30 = vsel %vm1482_vm10, %v2590_v22, %v2606_v55 }
 0xdf4   : > { %v2728_v23 = vsel %vm1487_vm11, %v2724_v30, %v2622_v4 }
 0xdf9   : > { %v2670_v45 = vpop.xlane.xlu1 %2669  ;;  %v2654_v8 = vpop.xlane.xlu2 %2653 }
 0xdfa   : > { %v2638_v35 = vpop.xlane.xlu0 %2637 }
 0xdfb   : > { %v2732_v6 = vsel %vm1492_vm12, %v2728_v23, %v2638_v35 }
 0xdfc   : > { %v2736_v17 = vsel %vm1497_vm13, %v2732_v6, %v2654_v8 }
 0xdfd   : > { %v2740_v48 = vsel %vm1502_vm14, %v2736_v17, %v2670_v45 }
 0xe01   : > { %v2593_v20 = vpop.xlane.xlu1 %2592  ;;  %v2702_v44 = vpop.xlane.xlu2 %2701 }
 0xe02   : > { %v2686_v50 = vpop.xlane.xlu0 %2685 }
 0xe03   : > { %v2744_v34 = vsel %vm1507_vm2, %v2740_v48, %v2686_v50 }
 0xe09   : > { %v2641_v60 = vpop.xlane.xlu1 %2640  ;;  %v2625_v46 = vpop.xlane.xlu2 %2624 }
 0xe0a   : > { %v2609_v32 = vpop.xlane.xlu0 %2608 }
 0xe0b   : > { %v2725_v52 = vsel %vm1482_vm10, %v2593_v20, %v2609_v32  ;;  %vm5375_vm10 = vmmov %vm5372_vm8 }
 0xe0c   : > { %v2729_v10 = vsel %vm1487_vm11, %v2725_v52, %v2625_v46  ;;  %v2748_v21 = vsel %vm5375_vm10, %v2744_v34, %v2702_v44  ;;  %vm5376_vm11 = vmmov %vm5373_vm4  ;;  %vm5386_vm10 = vcmask 523264  }
 0xe0d   : > { %v2733_v51 = vsel %vm1492_vm12, %v2729_v10, %v2641_v60  ;;  %vm5378_vm12 = vmmov %vm5373_vm4  ;;  %v4036_v60 = vld [vmem:[%s5311_s10 + $0x1] ss:$0 sm:$0xff]  ;;  %vm5384_vm4 = vcmask 1040384  }
 0xe0e   : > { %vm5383_vm8 = vmmov %vm5382_vm7 }
 0xe11   : > { %v2689_v2 = vpop.xlane.xlu1 %2688  ;;  %v2673_v0 = vpop.xlane.xlu2 %2672 }
 0xe12   : > { %v2657_v29 = vpop.xlane.xlu0 %2656 }
 0xe13   : > { %v2737_v59 = vsel %vm1497_vm13, %v2733_v51, %v2657_v29  ;;  %vm5379_vm13 = vmmov %vm5374_vm3 }
 0xe14   : > { %v2741_v25 = vsel %vm1502_vm14, %v2737_v59, %v2673_v0  ;;  %vm5385_vm3 = vmmov %vm5384_vm4 }
 0xe15   : > { %v2745_v39 = vsel %vm1507_vm2, %v2741_v25, %v2689_v2 }
 0xe19   : > { %v2718_v47 = vpop.xlane.xlu1 %2717  ;;  %v2721_v15 = vpop.xlane.xlu2 %2720 }
 0xe1a   : > { %v2705_v62 = vpop.xlane.xlu0 %2704  ;;  %v2752_v26 = vsel %vm5376_vm11, %v2748_v21, %v2718_v47  ;;  %vm5387_vm11 = vmmov %vm5386_vm10 }
 0xe1b   : > { %v2749_v18 = vsel %vm5377_vm5, %v2745_v39, %v2705_v62  ;;  %v2756_v61 = vpack.c.bf16 %v2752_v26, %v2752_v26  ;;  %vm5388_vm5 = vcmask 785408  }
 0xe1c   : > { %v2753_v40 = vsel %vm5378_vm12, %v2749_v18, %v2721_v15  ;;  %vm5389_vm12 = vmmov %vm5382_vm7 }
 0xe1d   : > { %v2767_v7 = vunpack.c.l.b16 %v2756_v61  ;;  %v2757_v54 = vpack.c.bf16 %v2753_v40, %v2753_v40 }
 0xe1f   : > { %v2768_v13 = vunpack.c.l.b16 %v2757_v54 }
 0xe21   : > { %v2770_v14 = vpack.c.b16 %v2768_v13, %v2767_v7 }
 0xe23   : > { %3649 = vmatmul.msk.bf16.gmra.mxu2 %vm5379_vm13, %v2770_v14  ;;  %vm5390_vm13 = vmmov %vm5382_vm7 }
 0xe2d   : > { %v3998_v43 = vpop.permute.xlu0 %3997 }
 0xe2e   : > { %v4000_v5 = vunpack.i.h.bf16 %v3998_v43  ;;  %v3999_v37 = vunpack.i.l.bf16 %v3998_v43 }
 0xe30   : > { %v2219_v49 = vpack.c.bf16 %v4000_v5, %v4000_v5  ;;  %v2218_v1 = vpack.c.bf16 %v3999_v37, %v3999_v37  ;;  %v4037_v5 = vld [vmem:[%s5314_s13 + $0x1] ss:$0 sm:$0xff] }
 0xe32   : > { %v2840_v19 = vunpack.c.l.b16 %v2219_v49  ;;  %v2839_v33 = vunpack.c.l.b16 %v2218_v1 }
 0xe34   : > { %v2841_v28 = vpack.c.b16 %v2840_v19, %v2839_v33  ;;  %v4038_v33 = vld [vmem:[%s5315_s14 + $0x1] ss:$0 sm:$0xff] }
 0xe36   : > { %2853 = vmatpush.bf16.msra.mxu1 %v2841_v28 }
 0xe39   : > { %3651 = vmatmul.msk.bf16.vlgmr.msra.gmra.mxu1 %vm993_vm1, %v2836_v57  ;;  %v2829_v57 = vpop.f32.mrf.mxu0 }
 0xe57   : > { %v2794_v42 = vpop.f32.mrf.mxu2 }
 0xe58   : > { %v2828_v22 = vadd.f32 %v2827_v38, %v2794_v42 }
 0xe5f   : > { %v2796_v63 = vpop.f32.mrf.mxu2 }
 0xe60   : > { %v2830_v45 = vadd.f32 %v2829_v57, %v2796_v63 }
 0xea6   : > { %v2799_v3 = vpop.f32.mrf.mxu2 }
 0xeae   : > { %v2801_v41 = vpop.f32.mrf.mxu2 }
 0xeb6   : > { %v2855_v56 = vpop.f32.mrf.mxu1 }
 0xeb7   : > { %v2856_v11 = vadd.f32 %v2855_v56, %v2799_v3 }
 0xebe   : > { %v2857_v16 = vpop.f32.mrf.mxu1 }
 0xebf   : > { %v2858_v58 = vadd.f32 %v2857_v16, %v2801_v41 }
 0xec1   : > { %v4001_v4 = vpack.i.bf16 %v2858_v58, %v2856_v11 }
 0xec3   : > { %4002 = vrot.lane.b32.xlu1 %v4001_v4, %s5380_s28 }
 0xf35   : > { %v4003_v55 = vpop.permute.xlu1 %4002 }
 0xf36   : > { %v4005_v8 = vunpack.i.h.bf16 %v4003_v55  ;;  %v4004_v35 = vunpack.i.l.bf16 %v4003_v55 }
 0xf38   : > { %v2869_v20 = vsel %vm993_vm1, %v2830_v45, %v4005_v8  ;;  %v2868_v44 = vsel %vm993_vm1, %v2828_v22, %v4004_v35 }
 0xf39   : > { %v2870_v50 = vpack.c.bf16 %v2869_v20, %v2868_v44  ;;  %v3839_v20 = vld [vmem:[%s5316_s15 + $0x58] sm:$0xff]  ;;  %v3838_v44 = vld [vmem:[%s5316_s15 + $0x50] sm:$0xff] }
 0xf3a   : > { %3062 = vmatpush.bf16.msrb.mxu2 %v3839_v20 }
 0xf3b   : > { %3665 = vmatmul.msk.bf16.vlgmr.msra.gmra.mxu3 %vm852_vm0, %v2870_v50  ;;  %v3837_v50 = vld [vmem:[%s5316_s15 + $0x48] sm:$0xff] }
 0xf3e   : > { %3063 = vmatpush.bf16.msrb.mxu2 %v3838_v44 }
 0xf42   : > { %3064 = vmatpush.bf16.msrb.mxu2 %v3837_v50 }
 0xfbe   : > { %v2905_v46 = vpop.f32.mrf.mxu3 }
 0xfbf   : > { %v2906_v32 = vadd.f32 %v4036_v60, %v2905_v46  ;;  %v3835_v46 = vld [vmem:[%s5316_s15 + $0x38] sm:$0xff] }
 0xfc1   : > { %v2910_v30 = vadd.f32 %v2906_v32, %v4880_v31  ;;  %v3834_v32 = vld [vmem:[%s5316_s15 + $0x30] sm:$0xff] }
 0xfc3   : > { %v2916_v52 = vsel %vm852_vm0, %v2910_v30, 0.0 }
 0xfc4   : > { %2917 = vadd.xlane.f32.xlu2 %v2916_v52 }
 0xfc6   : > { %v2907_v23 = vpop.f32.mrf.mxu3 }
 0xfc7   : > { %v2908_v6 = vadd.f32 %v4036_v60, %v2907_v23  ;;  %v3836_v60 = vld [vmem:[%s5316_s15 + $0x40] sm:$0xff] }
 0xfc8   : > { %3065 = vmatpush.bf16.msrb.mxu2 %v3836_v60 }
 0xfc9   : > { %v2911_v10 = vadd.f32 %v2908_v6, %v4882_v27 }
 0xfcb   : > { %v2919_v2 = vsel %vm852_vm0, %v2911_v10, 0.0 }
 0xfcc   : > { %2920 = vadd.xlane.f32.xlu2 %v2919_v2  ;;  %3066 = vmatpush.bf16.msrb.mxu2 %v3835_v46 }
 0xfd0   : > { %3067 = vmatpush.bf16.msrb.mxu2 %v3834_v32 }
0x1037   : > { %v2918_v0 = vpop.xlane.xlu2 %2917 }
0x1038   : > { %v2922_v17 = vmul.f32 %v2918_v0, %v4734_v24 }
0x103a   : > { %v2924_v29 = vsub.f32 %v2910_v30, %v2922_v17 }
0x103c   : > { %v2926_v51 = vmul.f32 %v2924_v29, %v2924_v29 }
0x103e   : > { %v2928_v59 = vsel %vm852_vm0, %v2926_v51, 0.0 }
0x103f   : > { %2929 = vadd.xlane.f32.xlu0 %v2928_v59  ;;  %v2921_v48 = vpop.xlane.xlu2 %2920 }
0x1040   : > { %v2923_v31 = vmul.f32 %v2921_v48, %v4734_v24 }
0x1042   : > { %v2925_v34 = vsub.f32 %v2911_v10, %v2923_v31  ;;  %v3851_v31 = vld [vmem:[%s5318_s17 + $0xb8] sm:$0xff] }
0x1043   : > { %3225 = vmatpush.bf16.msrb.mxu1 %v3851_v31 }
0x1044   : > { %v2927_v25 = vmul.f32 %v2925_v34, %v2925_v34 }
0x1046   : > { %v2931_v21 = vsel %vm852_vm0, %v2927_v25, 0.0  ;;  %v3849_v25 = vld [vmem:[%s5318_s17 + $0xa8] sm:$0xff] }
0x1047   : > { %2932 = vadd.xlane.f32.xlu2 %v2931_v21  ;;  %v3848_v21 = vld [vmem:[%s5318_s17 + $0xa0] sm:$0xff] }
0x10b2   : > { %v2930_v27 = vpop.xlane.xlu0 %2929 }
0x10b3   : > { %v2934_v47 = vmul.f32 %v2930_v27, %v4734_v24  ;;  %v3847_v27 = vld [vmem:[%s5318_s17 + $0x98] sm:$0xff] }
0x10b4   : > { %3207 = vmatpush.bf16.msra.mxu0 %v3847_v27  ;;  %v3853_v27 = vld [vmem:[%s5322_s21 + $0x8] sm:$0xff] }
0x10b5   : > { %v2936_v15 = vadd.f32 1e-05, %v2934_v47  ;;  %v3846_v47 = vld [vmem:[%s5318_s17 + $0x90] sm:$0xff]  ;;  %3329 = vmatpush.bf16.msrb.mxu3 %v3853_v27 }
0x10b7   : > { %4086 = vrsqrt.f32 %v2936_v15  ;;  %vm2944_vm14 = vweird.f32 %v2936_v15 }
0x10b8   : > { %3208 = vmatpush.bf16.msra.mxu0 %v3846_v47  ;;  %v3852_v47 = vld [vmem:[%s5322_s21] sm:$0xff] }
0x10b9   : > { %3330 = vmatpush.bf16.msrb.mxu3 %v3852_v47 }
0x10ba   : > { %v2933_v62 = vpop.xlane.xlu2 %2932 }
0x10bb   : > { %v2935_v39 = vmul.f32 %v2933_v62, %v4734_v24  ;;  %v4039_v62 = vld [vmem:[%s5317_s16 + $0x1] ss:$0 sm:$0xff] }
0x10bd   : > { %v4087_v26 = vpop.eup %4086  ;;  %v2937_v18 = vadd.f32 1e-05, %v2935_v39  ;;  %v3844_v39 = vld [vmem:[%s5318_s17 + $0x80] sm:$0xff] }
0x10be   : > { %v2939_v61 = vmul.f32 %v4087_v26, %v2936_v15  ;;  %vm2945_vm1 = vweird.f32 %v4087_v26  ;;  %v3845_v15 = vld [vmem:[%s5318_s17 + $0x88] sm:$0xff] }
0x10bf   : > { %4088 = vrsqrt.f32 %v2937_v18  ;;  %vm2946_vm2 = vmor %vm2944_vm14, %vm2945_vm1  ;;  %vm2954_vm6 = vweird.f32 %v2937_v18  ;;  %3209 = vmatpush.bf16.msra.mxu0 %v3845_v15 }
0x10c0   : > { %v2940_v40 = vmul.f32 %v4087_v26, %v2939_v61  ;;  %v3843_v61 = vld [vmem:[%s5318_s17 + $0x78] sm:$0xff]  ;;  %vm5391_vm1 = vmmov %vm5385_vm3 }
0x10c1   : > { %vm5392_vm14 = vmmov %vm5386_vm10 }
0x10c2   : > { %v2941_v7 = vmul.f32 0.5, %v2940_v40 }
0x10c3   : > { %3210 = vmatpush.bf16.msra.mxu0 %v3844_v39 }
0x10c4   : > { %v2942_v54 = vsub.f32 1.5, %v2941_v7  ;;  %v3842_v7 = vld [vmem:[%s5318_s17 + $0x70] sm:$0xff] }
0x10c5   : > { %v4089_v13 = vpop.eup %4088 }
0x10c6   : > { %v2943_v14 = vmul.f32 %v4087_v26, %v2942_v54  ;;  %v2949_v43 = vmul.f32 %v4089_v13, %v2937_v18  ;;  %vm2955_vm9 = vweird.f32 %v4089_v13 }
0x10c7   : > { %vm2956_vm15 = vmor %vm2954_vm6, %vm2955_vm9  ;;  %3211 = vmatpush.bf16.msra.mxu0 %v3843_v61 }
0x10c8   : > { %v2947_v37 = vsel %vm2946_vm2, %v4087_v26, %v2943_v14  ;;  %v2950_v49 = vmul.f32 %v4089_v13, %v2949_v43  ;;  %v3841_v43 = vld [vmem:[%s5318_s17 + $0x68] sm:$0xff]  ;;  %vm5393_vm2 = vmmov %vm5391_vm1 }
0x10c9   : > { %v2958_v1 = vmul.f32 %v2947_v37, %v2924_v29  ;;  %vm5394_vm9 = vmmov %vm5386_vm10 }
0x10ca   : > { %v2951_v19 = vmul.f32 0.5, %v2950_v49  ;;  %vm5395_vm6 = vmmov %vm5394_vm9 }
0x10cb   : > { %v2963_v28 = vmul.f32 %v4037_v5, %v2958_v1  ;;  %3212 = vmatpush.bf16.msra.mxu0 %v3842_v7 }
0x10cc   : > { %v2952_v42 = vsub.f32 1.5, %v2951_v19 }
0x10cd   : > { %v5175_v63 = vadd.f32 %v4038_v33, %v2963_v28 }
0x10ce   : > { %v2953_v36 = vmul.f32 %v4089_v13, %v2952_v42 }
0x10cf   : > { %v2970_v16 = vmul.f32 %v5175_v63, %v4287_v9  ;;  %3213 = vmatpush.bf16.msra.mxu0 %v3841_v43 }
0x10d0   : > { %v2957_v3 = vsel %vm2956_vm15, %v4089_v13, %v2953_v36 }
0x10d1   : > { %v2959_v56 = vmul.f32 %v2957_v3, %v2925_v34  ;;  %v2995_v4 = vrot.slane %v2970_v16, 1  ;;  %v2989_v57 = vrot.slane %v2970_v16, 7  ;;  %v3850_v34 = vld [vmem:[%s5318_s17 + $0xb0] sm:$0xff] }
0x10d2   : > { %3226 = vmatpush.bf16.msrb.mxu1 %v3850_v34 }
0x10d3   : > { %v2964_v41 = vmul.f32 %v4037_v5, %v2959_v56  ;;  %v2994_v0 = vsel %vm5385_vm3, 0.0, %v2989_v57 }
0x10d5   : > { %v5179_v11 = vadd.f32 %v4038_v33, %v2964_v41  ;;  %v3840_v41 = vld [vmem:[%s5318_s17 + $0x60] sm:$0xff] }
0x10d6   : > { %3227 = vmatpush.bf16.msrb.mxu1 %v3849_v25  ;;  %3214 = vmatpush.bf16.msra.mxu0 %v3840_v41 }
0x10d7   : > { %v2971_v58 = vmul.f32 %v5179_v11, %v4293_v12 }
0x10d9   : > { %v4006_v53 = vpack.i.bf16 %v2971_v58, %v2970_v16  ;;  %v2996_v38 = vrot.slane %v2971_v58, 1  ;;  %v2990_v55 = vrot.slane %v2971_v58, 7 }
0x10da   : > { %3228 = vmatpush.bf16.msrb.mxu1 %v3848_v21 }
0x10db   : > { %4007 = vrot.lane.b32.xlu1 %v4006_v53, %s5381_s7  ;;  %v2997_v22 = vsel %vm5382_vm7, %v2995_v4, %v2996_v38  ;;  %v2999_v45 = vsel %vm5383_vm8, %v2996_v38, 0.0  ;;  %v2991_v8 = vsel %vm5384_vm4, %v2989_v57, %v2990_v55 }
0x10dc   : > { %v4011_v35 = vpack.i.bf16 %v2999_v45, %v2997_v22  ;;  %v4040_v22 = vld [vmem:[%s5319_s18 + $0x1] ss:$0 sm:$0xff] }
0x10de   : > { %4012 = vrot.lane.b32.xlu2 %v4011_v35, %s5368_s25 }
0x1138   : > { %v4013_v30 = vpop.permute.xlu2 %4012 }
0x1139   : > { %v4015_v10 = vunpack.i.h.bf16 %v4013_v30  ;;  %v4014_v2 = vunpack.i.l.bf16 %v4013_v30 }
0x114d   : > { %v4008_v52 = vpop.permute.xlu1 %4007 }
0x114e   : > { %v4010_v23 = vunpack.i.h.bf16 %v4008_v52  ;;  %v4009_v6 = vunpack.i.l.bf16 %v4008_v52 }
0x1150   : > { %v3013_v17 = vsel %vm852_vm0, %v2994_v0, %v4009_v6  ;;  %v3014_v29 = vsel %vm852_vm0, %v2991_v8, %v4010_v23 }
0x1151   : > { %v3015_v51 = vsel %vm5386_vm10, %v3013_v17, %v4014_v2  ;;  %v3016_v59 = vsel %vm5387_vm11, %v3014_v29, %v4015_v10 }
0x1152   : > { %v3017_v48 = vpack.c.bf16 %v3016_v59, %v3015_v51 }
0x1154   : > { %3705 = vmatmul.msk.bf16.vlgmr.msrb.gmra.mxu2 %vm5388_vm5, %v3017_v48 }
0x11d7   : > { %v3069_v26 = vpop.f32.mrf.mxu2 }
0x11d8   : > { %v3070_v18 = vadd.f32 %v4039_v62, %v3069_v26 }
0x11da   : > { %v3074_v40 = vmax.f32 %v3070_v18, 0.0 }
0x11dc   : > { %v3076_v14 = vmul.f32 %v3074_v40, %v4287_v9 }
0x11de   : > { %v3107_v49 = vrot.slane %v3076_v14, 7  ;;  %v3113_v1 = vrot.slane %v3076_v14, 1 }
0x11df   : > { %v3071_v54 = vpop.f32.mrf.mxu2 }
0x11e0   : > { %v3072_v13 = vadd.f32 %v4039_v62, %v3071_v54  ;;  %v3112_v53 = vsel %vm5393_vm2, 0.0, %v3107_v49 }
0x11e2   : > { %v3075_v5 = vmax.f32 %v3072_v13, 0.0 }
0x11e4   : > { %v3077_v37 = vmul.f32 %v3075_v5, %v4293_v12 }
0x11e6   : > { %v3108_v19 = vrot.slane %v3077_v37, 7  ;;  %v3114_v33 = vrot.slane %v3077_v37, 1  ;;  %v4016_v28 = vpack.i.bf16 %v3077_v37, %v3076_v14 }
0x11e8   : > { %v3115_v42 = vsel %vm5389_vm12, %v3113_v1, %v3114_v33  ;;  %v3118_v36 = vsel %vm5390_vm13, %v3114_v33, 0.0  ;;  %4017 = vrot.lane.b32.xlu1 %v4016_v28, %s5368_s25  ;;  %v3109_v3 = vsel %vm5391_vm1, %v3107_v49, %v3108_v19  ;;  %v4042_v33 = vld [vmem:[%s5321_s20 + $0x1] ss:$0 sm:$0xff] }
0x11e9   : > { %v3128_v56 = vpack.c.bf16 %v3118_v36, %v3115_v42 }
0x11eb   : > { %3779 = vmatmul.msk.bf16.vlgmr.msrb.gmra.mxu1 %vm5392_vm14, %v3128_v56 }
0x125a   : > { %v4018_v16 = vpop.permute.xlu1 %4017 }
0x125b   : > { %v4020_v58 = vunpack.i.h.bf16 %v4018_v16  ;;  %v4019_v4 = vunpack.i.l.bf16 %v4018_v16 }
0x125d   : > { %v3125_v38 = vsel %vm5394_vm9, %v3112_v53, %v4019_v4  ;;  %v3126_v57 = vsel %vm5395_vm6, %v3109_v3, %v4020_v58  ;;  %v4043_v53 = vld [vmem:[%s5323_s22] ss:$0 sm:$0xff] }
0x125e   : > { %v3127_v55 = vpack.c.bf16 %v3126_v57, %v3125_v38 }
0x1260   : > { %3215 = vmatmul.bf16.vlgmr.msra.gmra.mxu0 %v3127_v55 }
0x1268   : > { %v3230_v45 = vpop.f32.mrf.mxu1 }
0x1270   : > { %v3232_v30 = vpop.f32.mrf.mxu1 }
0x12dd   : > { %v3216_v8 = vpop.f32.mrf.mxu0 }
0x12de   : > { %v3217_v35 = vadd.f32 %v4040_v22, %v3216_v8 }
0x12e0   : > { %v3231_v20 = vadd.f32 %v3230_v45, %v3217_v35 }
0x12e2   : > { %v3235_v44 = vmul.f32 %v3231_v20, %v4287_v9 }
0x12e4   : > { %v3237_v50 = vadd.f32 %v3235_v44, %v5175_v63 }
0x12e5   : > { %v3218_v60 = vpop.f32.mrf.mxu0 }
0x12e6   : > { %v3219_v46 = vadd.f32 %v4040_v22, %v3218_v60  ;;  %v3243_v32 = vsel %vm852_vm0, %v3237_v50, 0.0 }
0x12e7   : > { %3244 = vadd.xlane.f32.xlu1 %v3243_v32 }
0x12e8   : > { %v3233_v52 = vadd.f32 %v3232_v30, %v3219_v46 }
0x12ea   : > { %v3236_v23 = vmul.f32 %v3233_v52, %v4293_v12 }
0x12ec   : > { %v3238_v6 = vadd.f32 %v3236_v23, %v5179_v11 }
0x12ee   : > { %v3246_v10 = vsel %vm852_vm0, %v3238_v6, 0.0 }
0x12ef   : > { %3247 = vadd.xlane.f32.xlu2 %v3246_v10 }
0x135a   : > { %v3245_v2 = vpop.xlane.xlu1 %3244 }
0x135b   : > { %v3249_v0 = vmul.f32 %v3245_v2, %v4734_v24 }
0x135d   : > { %v3251_v17 = vsub.f32 %v3237_v50, %v3249_v0 }
0x135f   : > { %v3253_v29 = vmul.f32 %v3251_v17, %v3251_v17 }
0x1361   : > { %v3255_v63 = vsel %vm852_vm0, %v3253_v29, 0.0 }
0x1362   : > { %v3248_v51 = vpop.xlane.xlu2 %3247  ;;  %3256 = vadd.xlane.f32.xlu0 %v3255_v63 }
0x1363   : > { %v3250_v59 = vmul.f32 %v3248_v51, %v4734_v24 }
0x1365   : > { %v3252_v48 = vsub.f32 %v3238_v6, %v3250_v59 }
0x1367   : > { %v3254_v31 = vmul.f32 %v3252_v48, %v3252_v48 }
0x1369   : > { %v3258_v34 = vsel %vm852_vm0, %v3254_v31, 0.0 }
0x136a   : > { %3259 = vadd.xlane.f32.xlu0 %v3258_v34 }
0x13d5   : > { %v3257_v11 = vpop.xlane.xlu0 %3256 }
0x13d6   : > { %v3261_v25 = vmul.f32 %v3257_v11, %v4734_v24 }
0x13d8   : > { %v3263_v21 = vadd.f32 1e-05, %v3261_v25 }
0x13da   : > { %4090 = vrsqrt.f32 %v3263_v21  ;;  %vm3271_vm7 = vweird.f32 %v3263_v21 }
0x13dd   : > { %v3260_v15 = vpop.xlane.xlu0 %3259 }
0x13de   : > { %v3262_v62 = vmul.f32 %v3260_v15, %v4734_v24  ;;  %v4041_v24 = vld [vmem:[%s5320_s19 + $0x1] ss:$0 sm:$0xff] }
0x13e0   : > { %v4091_v39 = vpop.eup %4090  ;;  %v3264_v26 = vadd.f32 1e-05, %v3262_v62 }
0x13e1   : > { %v3266_v18 = vmul.f32 %v4091_v39, %v3263_v21  ;;  %vm3272_vm15 = vweird.f32 %v4091_v39 }
0x13e2   : > { %4092 = vrsqrt.f32 %v3264_v26  ;;  %vm3273_vm8 = vmor %vm3271_vm7, %vm3272_vm15  ;;  %vm3281_vm3 = vweird.f32 %v3264_v26 }
0x13e3   : > { %v3267_v61 = vmul.f32 %v4091_v39, %v3266_v18 }
0x13e5   : > { %v3268_v40 = vmul.f32 0.5, %v3267_v61 }
0x13e7   : > { %v3269_v7 = vsub.f32 1.5, %v3268_v40 }
0x13e8   : > { %v4093_v54 = vpop.eup %4092 }
0x13e9   : > { %v3270_v13 = vmul.f32 %v4091_v39, %v3269_v7  ;;  %v3276_v14 = vmul.f32 %v4093_v54, %v3264_v26  ;;  %vm3282_vm4 = vweird.f32 %v4093_v54 }
0x13ea   : > { %vm3283_vm10 = vmor %vm3281_vm3, %vm3282_vm4 }
0x13eb   : > { %v3274_v43 = vsel %vm3273_vm8, %v4091_v39, %v3270_v13  ;;  %v3277_v5 = vmul.f32 %v4093_v54, %v3276_v14 }
0x13ec   : > { %v3285_v49 = vmul.f32 %v3274_v43, %v3251_v17 }
0x13ed   : > { %v3278_v37 = vmul.f32 0.5, %v3277_v5 }
0x13ee   : > { %v3290_v28 = vmul.f32 %v4041_v24, %v3285_v49 }
0x13ef   : > { %v3279_v1 = vsub.f32 1.5, %v3278_v37 }
0x13f0   : > { %v3295_v3 = vadd.f32 %v4042_v33, %v3290_v28 }
0x13f1   : > { %v3280_v19 = vmul.f32 %v4093_v54, %v3279_v1 }
0x13f2   : > { %v3297_v16 = vmul.f32 %v3295_v3, %v4287_v9 }
0x13f3   : > { %v3284_v42 = vsel %vm3283_vm10, %v4093_v54, %v3280_v19 }
0x13f4   : > { %v3286_v36 = vmul.f32 %v3284_v42, %v3252_v48 }
0x13f6   : > { %v3291_v56 = vmul.f32 %v4041_v24, %v3286_v36 }
0x13f8   : > { %v3296_v41 = vadd.f32 %v4042_v33, %v3291_v56 }
0x13fa   : > { %v3298_v58 = vmul.f32 %v3296_v41, %v4293_v12 }
0x13fc   : > { %v3299_v4 = vpack.c.bf16 %v3298_v58, %v3297_v16 }
0x13fe   : > { %3790 = vmatmul.msk.bf16.vlgmr.msrb.gmra.mxu3 %vm852_vm0, %v3299_v4 }
0x1481   : > { %v3332_v38 = vpop.f32.mrf.mxu3 }
0x1482   : > { %v3333_v57 = vadd.f32 %v4043_v53, %v3332_v38 }
0x1484   : > { %3337 = vmax.xlane.f32.xlu0 %v3333_v57 }
0x1489   : > { %v3334_v55 = vpop.f32.mrf.mxu3 }
0x148a   : > { %v3335_v22 = vadd.f32 %v4043_v53, %v3334_v55 }
0x148c   : > { %3339 = vmax.xlane.f32.xlu1 %v3335_v22 }
0x14f7   : > { %v3338_v45 = vpop.xlane.xlu0 %3337 }
0x14f8   : > { %v3341_v8 = vsub.f32 %v3333_v57, %v3338_v45 }
0x14fa   : > { %v3343_v35 = vmul.f32 1.442695, %v3341_v8 }
0x14fc   : > { %4094 = vpow2.f32 %v3343_v35 }
0x14ff   : > { %v3340_v9 = vpop.xlane.xlu1 %3339 }
0x1500   : > { %v3342_v12 = vsub.f32 %v3335_v22, %v3340_v9 }
0x1502   : > { %v4095_v20 = vpop.eup %4094  ;;  %v3345_v44 = vmul.f32 1.442695, %v3342_v12 }
0x1503   : > { %3347 = vadd.xlane.f32.xlu0 %v4095_v20 }
0x1504   : > { %4096 = vpow2.f32 %v3345_v44 }
0x150a   : > { %v4097_v50 = vpop.eup %4096 }
0x150b   : > { %3349 = vadd.xlane.f32.xlu1 %v4097_v50 }
0x1576   : > { %v3348_v60 = vpop.xlane.xlu0 %3347 }
0x1577   : > { %4098 = vlog2.f32 %v3348_v60 }
0x157d   : > { %v4099_v46 = vpop.eup %4098 }
0x157e   : > { %v3352_v32 = vmul.f32 0.6931472, %v4099_v46  ;;  %v3350_v30 = vpop.xlane.xlu1 %3349 }
0x157f   : > { %4100 = vlog2.f32 %v3350_v30 }
0x1580   : > { %v3355_v52 = vsub.f32 %v3341_v8, %v3352_v32 }
0x1582   : > { %3357 = vst [vmem:[%s744_s5] sm:$0xff] %v3355_v52 }
0x1585   : > { %v4101_v23 = vpop.eup %4100 }
0x1586   : > { %v3354_v6 = vmul.f32 0.6931472, %v4101_v23 }
0x1588   : > { %v3356_v10 = vsub.f32 %v3342_v12, %v3354_v6 }
0x158a   : > { %3358 = vst [vmem:[%s744_s5 + $0x8] sm:$0xff] %v3356_v10 }
0x158b PF: > { %s5398_s1 = sld [smem:[#allocation2_spill]] }
0x1591   : > { %s33_s4 = sadd.s32 1, %s5398_s1  }
0x1592   : > { %p30_p4 = scmp.ge.s32.totalorder %s33_s4, 4  }
0x1594   :  { %32 = sbr.rel (!%p30_p4) target bundleno = 10 (0xa), region = 166 }

</bundles_post_ra>
